<compile_context>
chip_gen: v6e
topology: v6e:2x2x1
jax: 0.10.0
libtpu: 0.0.40
codegen_flags: <defaults>
</compile_context>

<pallas_src>
import functools

import numpy as np
import jax
import jax.numpy as jnp
from jax import lax
from jax.experimental import pallas as pl
from jax.experimental.pallas import tpu as pltpu


# ------------------------------ GRU cell math ------------------------------- #

def _sigmoid(v):
    return 1.0 / (1.0 + jnp.exp(-v))


def _gru_from_gi(gi, h_prev, whh_ref, bhh, F):
    """PyTorch-convention GRU update from a precomputed input projection.

    gi:      (B, 3F) f32  = x @ W_ih + b_ih   (gate columns [r | z | n])
    h_prev:  (B, F)  f32
    whh_ref: (F, 3F) bf16 ref; bhh: (B, 3F) f32 (pre-broadcast, hoisted)
    """
    gh = jnp.dot(h_prev.astype(jnp.bfloat16), whh_ref[...],
                 preferred_element_type=jnp.float32) + bhh
    r = _sigmoid(gi[:, 0:F] + gh[:, 0:F])
    z = _sigmoid(gi[:, F:2 * F] + gh[:, F:2 * F])
    n = jnp.tanh(gi[:, 2 * F:3 * F] + r * gh[:, 2 * F:3 * F])
    return (1.0 - z) * n + z * h_prev


def _gru_cell(x, h_prev, wih_ref, bih, whh_ref, bhh, F):
    gi = jnp.dot(x.astype(jnp.bfloat16), wih_ref[...],
                 preferred_element_type=jnp.float32) + bih
    return _gru_from_gi(gi, h_prev, whh_ref, bhh, F)


def _l2_normalize(v):
    # x / max(||x||, eps)  ==  x * rsqrt(max(||x||^2, eps^2)); rsqrt goes to the EUP.
    return v * lax.rsqrt(jnp.maximum(jnp.sum(v * v, axis=-1, keepdims=True), 1e-24))


# ------------------------------ fused kernel -------------------------------- #

def _dpcm_fused_kernel(invt_ref, x_ref, enc_w_ref, enc_b_ref,
                       wih0_ref, whh0_ref, bih0_ref, bhh0_ref,
                       wih1_ref, whh1_ref, bih1_ref, bhh1_ref,
                       pw1_ref, pb1_ref, pw2_ref, pb2_ref, perm_ref,
                       logits_ref,
                       feat_ref, gi0_ref, pred_ref,
                       *, T, B, P, F):
    F3 = 3 * F

    # ---- encoder stand-in: one bf16 MXU matmul; rows are n-major (row = n*B + b) ----
    feat = (jnp.dot(x_ref[...].astype(jnp.bfloat16), enc_w_ref[...],
                    preferred_element_type=jnp.float32) + enc_b_ref[...])
    feat_ref[...] = feat                        # raw features, reused by the logits path

    # ---- hoisted layer-0 input projection over the whole context window ----
    # ReLU fused here (agg consumes relu(feature_q)); one long-M matmul covers all T
    # timesteps and all 3 gates; result parked in VMEM scratch (bounded live range).
    ctx = jnp.maximum(feat[:T * B, :], 0.0)
    gi0_ref[...] = (jnp.dot(ctx.astype(jnp.bfloat16), wih0_ref[...],
                            preferred_element_type=jnp.float32) + bih0_ref[...])

    # ---- bias broadcasts hoisted out of the unrolled loops ----
    bih0 = jnp.broadcast_to(bih0_ref[...], (B, F3))    # used only on the rollout feedback
    bhh0 = jnp.broadcast_to(bhh0_ref[...], (B, F3))
    bih1 = jnp.broadcast_to(bih1_ref[...], (B, F3))
    bhh1 = jnp.broadcast_to(bhh1_ref[...], (B, F3))
    pb1 = jnp.broadcast_to(pb1_ref[...], (B, F))
    pb2 = jnp.broadcast_to(pb2_ref[...], (B, F))

    # ---- 2-layer GRU over the context, wavefront-scheduled ----
    # Iteration t computes h0[t] and h1[t-1]: the two recurrence matmul chains inside one
    # unrolled step are independent, overlapping MXU fill/drain with EUP sigmoid/tanh.
    h0 = jnp.zeros((B, F), jnp.float32)
    h1 = jnp.zeros((B, F), jnp.float32)
    for t in range(T):
        h0_new = _gru_from_gi(gi0_ref[pl.ds(t * B, B), :], h0, whh0_ref, bhh0, F)
        if t > 0:
            h1 = _gru_cell(h0, h1, wih1_ref, bih1, whh1_ref, bhh1, F)
        h0 = h0_new
    h1 = _gru_cell(h0, h1, wih1_ref, bih1, whh1_ref, bhh1, F)   # consume h0[T-1]

    # ---- pred_steps rollout: predictor MLP + 1-step 2-layer GRU feedback ----
    # Raw predictor output is fed back (no ReLU), exactly as in the reference forward.
    c = h1                                      # == out[:, -1, :] of the context GRU
    for p in range(P):
        hmid = jnp.maximum(
            jnp.dot(c.astype(jnp.bfloat16), pw1_ref[...],
                    preferred_element_type=jnp.float32) + pb1, 0.0)
        z = jnp.dot(hmid.astype(jnp.bfloat16), pw2_ref[...],
                    preferred_element_type=jnp.float32) + pb2
        pred_ref[pl.ds(p * B, B), :] = z        # p-major rows: p*B + b
        if p + 1 < P:                           # last aggregator step is unused upstream
            h0 = _gru_cell(z, h0, wih0_ref, bih0, whh0_ref, bhh0, F)
            h1 = _gru_cell(h0, h1, wih1_ref, bih1, whh1_ref, bhh1, F)
            c = h1

    # ---- contrastive logits ----
    # Reorder pred rows p-major -> b-major (reference stacks pred as (B, P, F)) with an
    # exact 0/1 permutation on the MXU, then L2-normalize (f32) and do one bf16 matmul
    # contracting the feature dim of both operands (no in-VMEM transpose).
    pred_bm = jnp.dot(perm_ref[...], pred_ref[...],
                      preferred_element_type=jnp.float32)       # (B*P, F), row = b*P + p
    pn = _l2_normalize(pred_bm)
    fn = _l2_normalize(feat_ref[...])                           # (N*B, F), row = n*B + b
    logits = lax.dot_general(pn.astype(jnp.bfloat16), fn.astype(jnp.bfloat16),
                             (((1,), (1,)), ((), ())),
                             preferred_element_type=jnp.float32)
    logits_ref[...] = logits * invt_ref[0]


# ----------------------------- DPCMemory forward ---------------------------- #

def dpc_memory_forward(x, params, pred_steps, use_temperature, temperature):
    B, N = x.shape[:2]
    Fd = params['enc_w'].shape[1]
    P = int(pred_steps)
    T = N - P

    # n-major flattening (row = epoch*B + batch): the context window and the logits'
    # feature operand are then plain row ranges inside the kernel (no later transposes).
    x2d = jnp.transpose(x, (1, 0, 2, 3)).reshape(N * B, -1).astype(jnp.float32)

    # 1/temperature as runtime SMEM data so changing it never triggers a recompile.
    inv_temp = jnp.asarray([1.0 / temperature if use_temperature else 1.0], jnp.float32)

    # Constant 0/1 permutation: output row b*P + p  <-  rollout row p*B + b.
    perm_np = np.zeros((B * P, P * B), np.float32)
    for b in range(B):
        for p in range(P):
            perm_np[b * P + p, p * B + b] = 1.0
    perm = jnp.asarray(perm_np)

    kernel = functools.partial(_dpcm_fused_kernel, T=T, B=B, P=P, F=Fd)
    logits = pl.pallas_call(
        kernel,
        in_specs=([pl.BlockSpec(memory_space=pltpu.MemorySpace.SMEM)]
                  + [pl.BlockSpec(memory_space=pltpu.MemorySpace.VMEM)] * 16),
        out_specs=pl.BlockSpec(memory_space=pltpu.MemorySpace.VMEM),
        out_shape=jax.ShapeDtypeStruct((B * P, N * B), jnp.float32),
        scratch_shapes=[
            pltpu.VMEM((N * B, Fd), jnp.float32),       # raw encoder features
            pltpu.VMEM((T * B, 3 * Fd), jnp.float32),   # hoisted layer-0 input gates
            pltpu.VMEM((P * B, Fd), jnp.float32),       # rollout predictions (p-major)
        ],
    )(inv_temp, x2d,
      params['enc_w'], params['enc_b'],
      params['wih0'], params['whh0'], params['bih0'], params['bhh0'],
      params['wih1'], params['whh1'], params['bih1'], params['bhh1'],
      params['p_w1'], params['p_b1'], params['p_w2'], params['p_b2'],
      perm)

    # targets (no-memory-pool branch): exactly the reference host loop
    # (every row j*B + i has exactly one 1, so argmax tie-breaking never triggers).
    tgt = np.zeros((B, N, P, B), dtype=np.float32)
    for i in range(B):
        for j in range(P):
            tgt[i, N - P + j, j, i] = 1.0
    tgt = tgt.reshape(B * N, P * B).T
    targets = jnp.asarray(np.argmax(tgt, axis=1), dtype=jnp.int32)

    return logits, targets


# ----------------------------------- main ------------------------------------ #

if __name__ == "__main__":
    # Lane/sublane-dense demo shapes: feature_dim = 128 (lane axis), batch = 8 (sublanes).
    B, N, C, Tin = 8, 8, 2, 16        # batch, num_epoch, input_channels, time
    Fd = 128                          # feature_dim
    P = 2                             # pred_steps
    use_temperature, temperature = True, 0.1

    key = jax.random.PRNGKey(0)
    ks = jax.random.split(key, 12)

    def orthogonal(k, n):
        a = jax.random.normal(k, (n, n), jnp.float32)
        q, r = jnp.linalg.qr(a)
        return q * jnp.sign(jnp.diagonal(r))[None, :]

    lim = 1.0 / np.sqrt(Fd)

    def unif(k, shape):
        return jax.random.uniform(k, shape, jnp.float32, -lim, lim)

    params = {
        # encoder stand-in (bf16 MXU weights, f32 bias/accumulation)
        'enc_w': (jax.random.normal(ks[0], (C * Tin, Fd), jnp.float32) * 0.05
                  ).astype(jnp.bfloat16),
        'enc_b': jnp.zeros((1, Fd), jnp.float32),
        # 2-layer GRU; gate-concatenated weights (F, 3F), columns [r | z | n]
        # (== PyTorch weight_ih_l{k}.T / weight_hh_l{k}.T), bf16; f32 biases (1, 3F).
        'wih0': unif(ks[1], (Fd, 3 * Fd)).astype(jnp.bfloat16),
        'whh0': unif(ks[2], (Fd, 3 * Fd)).astype(jnp.bfloat16),
        'bih0': unif(ks[3], (1, 3 * Fd)),
        'bhh0': unif(ks[4], (1, 3 * Fd)),
        'wih1': unif(ks[5], (Fd, 3 * Fd)).astype(jnp.bfloat16),
        'whh1': unif(ks[6], (Fd, 3 * Fd)).astype(jnp.bfloat16),
        'bih1': unif(ks[7], (1, 3 * Fd)),
        'bhh1': unif(ks[8], (1, 3 * Fd)),
        # predictor: Linear(F,F) -> ReLU -> Linear(F,F), orthogonal weights, zero bias
        'p_w1': orthogonal(ks[9], Fd).astype(jnp.bfloat16),
        'p_b1': jnp.zeros((1, Fd), jnp.float32),
        'p_w2': orthogonal(ks[10], Fd).astype(jnp.bfloat16),
        'p_b2': jnp.zeros((1, Fd), jnp.float32),
    }

    x = jax.random.normal(ks[11], (B, N, C, Tin), jnp.float32)

    logits, targets = dpc_memory_forward(x, params, P, use_temperature, temperature)
    jax.block_until_ready(logits)
    jax.block_until_ready(targets)

    assert logits.shape == (B * P, N * B), logits.shape
    assert targets.shape == (B * P,), targets.shape
    assert bool(jnp.all(jnp.isfinite(logits)))
    print("KERNEL_OK")
</pallas_src>

<mosaic_0001>
module attributes {stable_mosaic.version = 11 : i64} {
  func.func @_dpcm_fused_kernel(%arg0: memref<1xf32, #tpu.memory_space<smem>>, %arg1: memref<64x32xf32, #tpu.memory_space<vmem>>, %arg2: memref<32x128xbf16, #tpu.memory_space<vmem>>, %arg3: memref<1x128xf32, #tpu.memory_space<vmem>>, %arg4: memref<128x384xbf16, #tpu.memory_space<vmem>>, %arg5: memref<128x384xbf16, #tpu.memory_space<vmem>>, %arg6: memref<1x384xf32, #tpu.memory_space<vmem>>, %arg7: memref<1x384xf32, #tpu.memory_space<vmem>>, %arg8: memref<128x384xbf16, #tpu.memory_space<vmem>>, %arg9: memref<128x384xbf16, #tpu.memory_space<vmem>>, %arg10: memref<1x384xf32, #tpu.memory_space<vmem>>, %arg11: memref<1x384xf32, #tpu.memory_space<vmem>>, %arg12: memref<128x128xbf16, #tpu.memory_space<vmem>>, %arg13: memref<1x128xf32, #tpu.memory_space<vmem>>, %arg14: memref<128x128xbf16, #tpu.memory_space<vmem>>, %arg15: memref<1x128xf32, #tpu.memory_space<vmem>>, %arg16: memref<16x16xf32, #tpu.memory_space<vmem>>, %arg17: memref<16x64xf32, #tpu.memory_space<vmem>>, %arg18: memref<64x128xf32, #tpu.memory_space<vmem>>, %arg19: memref<48x384xf32, #tpu.memory_space<vmem>>, %arg20: memref<16x128xf32, #tpu.memory_space<vmem>>) attributes {dimension_semantics = [], scalar_prefetch = 0 : i64, scratch_operands = 3 : i64, tpu.core_type = #tpu.core_type<tc>} {
    %c0 = arith.constant 0 : index
    %c0_0 = arith.constant 0 : index
    %0 = vector.load %arg1[%c0, %c0_0] : memref<64x32xf32, #tpu.memory_space<vmem>>, vector<64x32xf32>
    %1 = arith.truncf %0 : vector<64x32xf32> to vector<64x32xbf16>
    %c0_1 = arith.constant 0 : index
    %c0_2 = arith.constant 0 : index
    %2 = vector.load %arg2[%c0_1, %c0_2] : memref<32x128xbf16, #tpu.memory_space<vmem>>, vector<32x128xbf16>
    %cst = arith.constant dense<0.000000e+00> : vector<64x128xf32>
    %3 = tpu.matmul %1, %2, %cst {dimension_numbers = #tpu.dot_dimension_numbers<[1], [0], [0], [1], [0, 0, 1, 1], [], []>} : vector<64x32xbf16>, vector<32x128xbf16>, vector<64x128xf32> -> vector<64x128xf32>
    %c0_3 = arith.constant 0 : index
    %c0_4 = arith.constant 0 : index
    %4 = vector.load %arg3[%c0_3, %c0_4] : memref<1x128xf32, #tpu.memory_space<vmem>>, vector<1x128xf32>
    %5 = vector.broadcast %4 : vector<1x128xf32> to vector<64x128xf32>
    %6 = arith.addf %3, %5 : vector<64x128xf32>
    %c0_5 = arith.constant 0 : index
    %c0_6 = arith.constant 0 : index
    %7 = vector.load %arg18[%c0_5, %c0_6] : memref<64x128xf32, #tpu.memory_space<vmem>>, vector<64x128xf32>
    tpu.vector_store %arg18[%c0_5, %c0_6], %6 {strides = array<i32>} : memref<64x128xf32, #tpu.memory_space<vmem>>, vector<64x128xf32>,
    %8 = vector.extract_strided_slice %6 {offsets = [0, 0], sizes = [48, 128], strides = [1, 1]} : vector<64x128xf32> to vector<48x128xf32>
    %cst_7 = arith.constant 0.000000e+00 : f32
    %9 = vector.broadcast %cst_7 : f32 to vector<48x128xf32>
    %10 = arith.maximumf %8, %9 : vector<48x128xf32>
    %11 = arith.truncf %10 : vector<48x128xf32> to vector<48x128xbf16>
    %c0_8 = arith.constant 0 : index
    %c0_9 = arith.constant 0 : index
    %12 = vector.load %arg4[%c0_8, %c0_9] : memref<128x384xbf16, #tpu.memory_space<vmem>>, vector<128x384xbf16>
    %cst_10 = arith.constant dense<0.000000e+00> : vector<48x384xf32>
    %13 = tpu.matmul %11, %12, %cst_10 {dimension_numbers = #tpu.dot_dimension_numbers<[1], [0], [0], [1], [0, 0, 1, 1], [], []>} : vector<48x128xbf16>, vector<128x384xbf16>, vector<48x384xf32> -> vector<48x384xf32>
    %c0_11 = arith.constant 0 : index
    %c0_12 = arith.constant 0 : index
    %14 = vector.load %arg6[%c0_11, %c0_12] : memref<1x384xf32, #tpu.memory_space<vmem>>, vector<1x384xf32>
    %15 = vector.broadcast %14 : vector<1x384xf32> to vector<48x384xf32>
    %16 = arith.addf %13, %15 : vector<48x384xf32>
    %c0_13 = arith.constant 0 : index
    %c0_14 = arith.constant 0 : index
    %17 = vector.load %arg19[%c0_13, %c0_14] : memref<48x384xf32, #tpu.memory_space<vmem>>, vector<48x384xf32>
    tpu.vector_store %arg19[%c0_13, %c0_14], %16 {strides = array<i32>} : memref<48x384xf32, #tpu.memory_space<vmem>>, vector<48x384xf32>,
    %c0_15 = arith.constant 0 : index
    %c0_16 = arith.constant 0 : index
    %18 = vector.load %arg6[%c0_15, %c0_16] : memref<1x384xf32, #tpu.memory_space<vmem>>, vector<1x384xf32>
    %19 = vector.shape_cast %18 : vector<1x384xf32> to vector<1x384xf32>
    %20 = vector.broadcast %19 : vector<1x384xf32> to vector<8x384xf32>
    %c0_17 = arith.constant 0 : index
    %c0_18 = arith.constant 0 : index
    %21 = vector.load %arg7[%c0_17, %c0_18] : memref<1x384xf32, #tpu.memory_space<vmem>>, vector<1x384xf32>
    %22 = vector.shape_cast %21 : vector<1x384xf32> to vector<1x384xf32>
    %23 = vector.broadcast %22 : vector<1x384xf32> to vector<8x384xf32>
    %c0_19 = arith.constant 0 : index
    %c0_20 = arith.constant 0 : index
    %24 = vector.load %arg10[%c0_19, %c0_20] : memref<1x384xf32, #tpu.memory_space<vmem>>, vector<1x384xf32>
    %25 = vector.shape_cast %24 : vector<1x384xf32> to vector<1x384xf32>
    %26 = vector.broadcast %25 : vector<1x384xf32> to vector<8x384xf32>
    %c0_21 = arith.constant 0 : index
    %c0_22 = arith.constant 0 : index
    %27 = vector.load %arg11[%c0_21, %c0_22] : memref<1x384xf32, #tpu.memory_space<vmem>>, vector<1x384xf32>
    %28 = vector.shape_cast %27 : vector<1x384xf32> to vector<1x384xf32>
    %29 = vector.broadcast %28 : vector<1x384xf32> to vector<8x384xf32>
    %c0_23 = arith.constant 0 : index
    %c0_24 = arith.constant 0 : index
    %30 = vector.load %arg13[%c0_23, %c0_24] : memref<1x128xf32, #tpu.memory_space<vmem>>, vector<1x128xf32>
    %31 = vector.shape_cast %30 : vector<1x128xf32> to vector<1x128xf32>
    %32 = vector.broadcast %31 : vector<1x128xf32> to vector<8x128xf32>
    %c0_25 = arith.constant 0 : index
    %c0_26 = arith.constant 0 : index
    %33 = vector.load %arg15[%c0_25, %c0_26] : memref<1x128xf32, #tpu.memory_space<vmem>>, vector<1x128xf32>
    %34 = vector.shape_cast %33 : vector<1x128xf32> to vector<1x128xf32>
    %35 = vector.broadcast %34 : vector<1x128xf32> to vector<8x128xf32>
    %cst_27 = arith.constant 0.000000e+00 : f32
    %36 = vector.broadcast %cst_27 : f32 to vector<8x128xf32>
    %cst_28 = arith.constant 0.000000e+00 : f32
    %37 = vector.broadcast %cst_28 : f32 to vector<8x128xf32>
    %c0_29 = arith.constant 0 : index
    %c0_30 = arith.constant 0 : index
    %38 = vector.load %arg19[%c0_29, %c0_30] : memref<48x384xf32, #tpu.memory_space<vmem>>, vector<8x384xf32>
    %39 = arith.truncf %36 : vector<8x128xf32> to vector<8x128xbf16>
    %c0_31 = arith.constant 0 : index
    %c0_32 = arith.constant 0 : index
    %40 = vector.load %arg5[%c0_31, %c0_32] : memref<128x384xbf16, #tpu.memory_space<vmem>>, vector<128x384xbf16>
    %cst_33 = arith.constant dense<0.000000e+00> : vector<8x384xf32>
    %41 = tpu.matmul %39, %40, %cst_33 {dimension_numbers = #tpu.dot_dimension_numbers<[1], [0], [0], [1], [0, 0, 1, 1], [], []>} : vector<8x128xbf16>, vector<128x384xbf16>, vector<8x384xf32> -> vector<8x384xf32>
    %42 = arith.addf %41, %23 : vector<8x384xf32>
    %43 = vector.extract_strided_slice %38 {offsets = [0, 0], sizes = [8, 128], strides = [1, 1]} : vector<8x384xf32> to vector<8x128xf32>
    %44 = vector.extract_strided_slice %42 {offsets = [0, 0], sizes = [8, 128], strides = [1, 1]} : vector<8x384xf32> to vector<8x128xf32>
    %45 = arith.addf %43, %44 : vector<8x128xf32>
    %cst_34 = arith.constant 0.000000e+00 : f32
    %46 = vector.broadcast %cst_34 : f32 to vector<8x128xf32>
    %47 = arith.subf %46, %45 : vector<8x128xf32>
    %48 = math.exp %47 : vector<8x128xf32>
    %cst_35 = arith.constant 1.000000e+00 : f32
    %49 = vector.broadcast %cst_35 : f32 to vector<8x128xf32>
    %50 = arith.addf %49, %48 : vector<8x128xf32>
    %cst_36 = arith.constant 1.000000e+00 : f32
    %51 = vector.broadcast %cst_36 : f32 to vector<8x128xf32>
    %52 = arith.divf %51, %50 : vector<8x128xf32>
    %53 = vector.extract_strided_slice %38 {offsets = [0, 128], sizes = [8, 128], strides = [1, 1]} : vector<8x384xf32> to vector<8x128xf32>
    %54 = vector.extract_strided_slice %42 {offsets = [0, 128], sizes = [8, 128], strides = [1, 1]} : vector<8x384xf32> to vector<8x128xf32>
    %55 = arith.addf %53, %54 : vector<8x128xf32>
    %cst_37 = arith.constant 0.000000e+00 : f32
    %56 = vector.broadcast %cst_37 : f32 to vector<8x128xf32>
    %57 = arith.subf %56, %55 : vector<8x128xf32>
    %58 = math.exp %57 : vector<8x128xf32>
    %cst_38 = arith.constant 1.000000e+00 : f32
    %59 = vector.broadcast %cst_38 : f32 to vector<8x128xf32>
    %60 = arith.addf %59, %58 : vector<8x128xf32>
    %cst_39 = arith.constant 1.000000e+00 : f32
    %61 = vector.broadcast %cst_39 : f32 to vector<8x128xf32>
    %62 = arith.divf %61, %60 : vector<8x128xf32>
    %63 = vector.extract_strided_slice %38 {offsets = [0, 256], sizes = [8, 128], strides = [1, 1]} : vector<8x384xf32> to vector<8x128xf32>
    %64 = vector.extract_strided_slice %42 {offsets = [0, 256], sizes = [8, 128], strides = [1, 1]} : vector<8x384xf32> to vector<8x128xf32>
    %65 = arith.mulf %52, %64 : vector<8x128xf32>
    %66 = arith.addf %63, %65 : vector<8x128xf32>
    %67 = math.tanh %66 : vector<8x128xf32>
    %cst_40 = arith.constant 1.000000e+00 : f32
    %68 = vector.broadcast %cst_40 : f32 to vector<8x128xf32>
    %69 = arith.subf %68, %62 : vector<8x128xf32>
    %70 = arith.mulf %69, %67 : vector<8x128xf32>
    %71 = arith.mulf %62, %36 : vector<8x128xf32>
    %72 = arith.addf %70, %71 : vector<8x128xf32>
    %c8 = arith.constant 8 : index
    %c0_41 = arith.constant 0 : index
    %73 = vector.load %arg19[%c8, %c0_41] : memref<48x384xf32, #tpu.memory_space<vmem>>, vector<8x384xf32>
    %74 = arith.truncf %72 : vector<8x128xf32> to vector<8x128xbf16>
    %c0_42 = arith.constant 0 : index
    %c0_43 = arith.constant 0 : index
    %75 = vector.load %arg5[%c0_42, %c0_43] : memref<128x384xbf16, #tpu.memory_space<vmem>>, vector<128x384xbf16>
    %cst_44 = arith.constant dense<0.000000e+00> : vector<8x384xf32>
    %76 = tpu.matmul %74, %75, %cst_44 {dimension_numbers = #tpu.dot_dimension_numbers<[1], [0], [0], [1], [0, 0, 1, 1], [], []>} : vector<8x128xbf16>, vector<128x384xbf16>, vector<8x384xf32> -> vector<8x384xf32>
    %77 = arith.addf %76, %23 : vector<8x384xf32>
    %78 = vector.extract_strided_slice %73 {offsets = [0, 0], sizes = [8, 128], strides = [1, 1]} : vector<8x384xf32> to vector<8x128xf32>
    %79 = vector.extract_strided_slice %77 {offsets = [0, 0], sizes = [8, 128], strides = [1, 1]} : vector<8x384xf32> to vector<8x128xf32>
    %80 = arith.addf %78, %79 : vector<8x128xf32>
    %cst_45 = arith.constant 0.000000e+00 : f32
    %81 = vector.broadcast %cst_45 : f32 to vector<8x128xf32>
    %82 = arith.subf %81, %80 : vector<8x128xf32>
    %83 = math.exp %82 : vector<8x128xf32>
    %cst_46 = arith.constant 1.000000e+00 : f32
    %84 = vector.broadcast %cst_46 : f32 to vector<8x128xf32>
    %85 = arith.addf %84, %83 : vector<8x128xf32>
    %cst_47 = arith.constant 1.000000e+00 : f32
    %86 = vector.broadcast %cst_47 : f32 to vector<8x128xf32>
    %87 = arith.divf %86, %85 : vector<8x128xf32>
    %88 = vector.extract_strided_slice %73 {offsets = [0, 128], sizes = [8, 128], strides = [1, 1]} : vector<8x384xf32> to vector<8x128xf32>
    %89 = vector.extract_strided_slice %77 {offsets = [0, 128], sizes = [8, 128], strides = [1, 1]} : vector<8x384xf32> to vector<8x128xf32>
    %90 = arith.addf %88, %89 : vector<8x128xf32>
    %cst_48 = arith.constant 0.000000e+00 : f32
    %91 = vector.broadcast %cst_48 : f32 to vector<8x128xf32>
    %92 = arith.subf %91, %90 : vector<8x128xf32>
    %93 = math.exp %92 : vector<8x128xf32>
    %cst_49 = arith.constant 1.000000e+00 : f32
    %94 = vector.broadcast %cst_49 : f32 to vector<8x128xf32>
    %95 = arith.addf %94, %93 : vector<8x128xf32>
    %cst_50 = arith.constant 1.000000e+00 : f32
    %96 = vector.broadcast %cst_50 : f32 to vector<8x128xf32>
    %97 = arith.divf %96, %95 : vector<8x128xf32>
    %98 = vector.extract_strided_slice %73 {offsets = [0, 256], sizes = [8, 128], strides = [1, 1]} : vector<8x384xf32> to vector<8x128xf32>
    %99 = vector.extract_strided_slice %77 {offsets = [0, 256], sizes = [8, 128], strides = [1, 1]} : vector<8x384xf32> to vector<8x128xf32>
    %100 = arith.mulf %87, %99 : vector<8x128xf32>
    %101 = arith.addf %98, %100 : vector<8x128xf32>
    %102 = math.tanh %101 : vector<8x128xf32>
    %cst_51 = arith.constant 1.000000e+00 : f32
    %103 = vector.broadcast %cst_51 : f32 to vector<8x128xf32>
    %104 = arith.subf %103, %97 : vector<8x128xf32>
    %105 = arith.mulf %104, %102 : vector<8x128xf32>
    %106 = arith.mulf %97, %72 : vector<8x128xf32>
    %107 = arith.addf %105, %106 : vector<8x128xf32>
    %108 = arith.truncf %72 : vector<8x128xf32> to vector<8x128xbf16>
    %c0_52 = arith.constant 0 : index
    %c0_53 = arith.constant 0 : index
    %109 = vector.load %arg8[%c0_52, %c0_53] : memref<128x384xbf16, #tpu.memory_space<vmem>>, vector<128x384xbf16>
    %cst_54 = arith.constant dense<0.000000e+00> : vector<8x384xf32>
    %110 = tpu.matmul %108, %109, %cst_54 {dimension_numbers = #tpu.dot_dimension_numbers<[1], [0], [0], [1], [0, 0, 1, 1], [], []>} : vector<8x128xbf16>, vector<128x384xbf16>, vector<8x384xf32> -> vector<8x384xf32>
    %111 = arith.addf %110, %26 : vector<8x384xf32>
    %112 = arith.truncf %37 : vector<8x128xf32> to vector<8x128xbf16>
    %c0_55 = arith.constant 0 : index
    %c0_56 = arith.constant 0 : index
    %113 = vector.load %arg9[%c0_55, %c0_56] : memref<128x384xbf16, #tpu.memory_space<vmem>>, vector<128x384xbf16>
    %cst_57 = arith.constant dense<0.000000e+00> : vector<8x384xf32>
    %114 = tpu.matmul %112, %113, %cst_57 {dimension_numbers = #tpu.dot_dimension_numbers<[1], [0], [0], [1], [0, 0, 1, 1], [], []>} : vector<8x128xbf16>, vector<128x384xbf16>, vector<8x384xf32> -> vector<8x384xf32>
    %115 = arith.addf %114, %29 : vector<8x384xf32>
    %116 = vector.extract_strided_slice %111 {offsets = [0, 0], sizes = [8, 128], strides = [1, 1]} : vector<8x384xf32> to vector<8x128xf32>
    %117 = vector.extract_strided_slice %115 {offsets = [0, 0], sizes = [8, 128], strides = [1, 1]} : vector<8x384xf32> to vector<8x128xf32>
    %118 = arith.addf %116, %117 : vector<8x128xf32>
    %cst_58 = arith.constant 0.000000e+00 : f32
    %119 = vector.broadcast %cst_58 : f32 to vector<8x128xf32>
    %120 = arith.subf %119, %118 : vector<8x128xf32>
    %121 = math.exp %120 : vector<8x128xf32>
    %cst_59 = arith.constant 1.000000e+00 : f32
    %122 = vector.broadcast %cst_59 : f32 to vector<8x128xf32>
    %123 = arith.addf %122, %121 : vector<8x128xf32>
    %cst_60 = arith.constant 1.000000e+00 : f32
    %124 = vector.broadcast %cst_60 : f32 to vector<8x128xf32>
    %125 = arith.divf %124, %123 : vector<8x128xf32>
    %126 = vector.extract_strided_slice %111 {offsets = [0, 128], sizes = [8, 128], strides = [1, 1]} : vector<8x384xf32> to vector<8x128xf32>
    %127 = vector.extract_strided_slice %115 {offsets = [0, 128], sizes = [8, 128], strides = [1, 1]} : vector<8x384xf32> to vector<8x128xf32>
    %128 = arith.addf %126, %127 : vector<8x128xf32>
    %cst_61 = arith.constant 0.000000e+00 : f32
    %129 = vector.broadcast %cst_61 : f32 to vector<8x128xf32>
    %130 = arith.subf %129, %128 : vector<8x128xf32>
    %131 = math.exp %130 : vector<8x128xf32>
    %cst_62 = arith.constant 1.000000e+00 : f32
    %132 = vector.broadcast %cst_62 : f32 to vector<8x128xf32>
    %133 = arith.addf %132, %131 : vector<8x128xf32>
    %cst_63 = arith.constant 1.000000e+00 : f32
    %134 = vector.broadcast %cst_63 : f32 to vector<8x128xf32>
    %135 = arith.divf %134, %133 : vector<8x128xf32>
    %136 = vector.extract_strided_slice %111 {offsets = [0, 256], sizes = [8, 128], strides = [1, 1]} : vector<8x384xf32> to vector<8x128xf32>
    %137 = vector.extract_strided_slice %115 {offsets = [0, 256], sizes = [8, 128], strides = [1, 1]} : vector<8x384xf32> to vector<8x128xf32>
    %138 = arith.mulf %125, %137 : vector<8x128xf32>
    %139 = arith.addf %136, %138 : vector<8x128xf32>
    %140 = math.tanh %139 : vector<8x128xf32>
    %cst_64 = arith.constant 1.000000e+00 : f32
    %141 = vector.broadcast %cst_64 : f32 to vector<8x128xf32>
    %142 = arith.subf %141, %135 : vector<8x128xf32>
    %143 = arith.mulf %142, %140 : vector<8x128xf32>
    %144 = arith.mulf %135, %37 : vector<8x128xf32>
    %145 = arith.addf %143, %144 : vector<8x128xf32>
    %c16 = arith.constant 16 : index
    %c0_65 = arith.constant 0 : index
    %146 = vector.load %arg19[%c16, %c0_65] : memref<48x384xf32, #tpu.memory_space<vmem>>, vector<8x384xf32>
    %147 = arith.truncf %107 : vector<8x128xf32> to vector<8x128xbf16>
    %c0_66 = arith.constant 0 : index
    %c0_67 = arith.constant 0 : index
    %148 = vector.load %arg5[%c0_66, %c0_67] : memref<128x384xbf16, #tpu.memory_space<vmem>>, vector<128x384xbf16>
    %cst_68 = arith.constant dense<0.000000e+00> : vector<8x384xf32>
    %149 = tpu.matmul %147, %148, %cst_68 {dimension_numbers = #tpu.dot_dimension_numbers<[1], [0], [0], [1], [0, 0, 1, 1], [], []>} : vector<8x128xbf16>, vector<128x384xbf16>, vector<8x384xf32> -> vector<8x384xf32>
    %150 = arith.addf %149, %23 : vector<8x384xf32>
    %151 = vector.extract_strided_slice %146 {offsets = [0, 0], sizes = [8, 128], strides = [1, 1]} : vector<8x384xf32> to vector<8x128xf32>
    %152 = vector.extract_strided_slice %150 {offsets = [0, 0], sizes = [8, 128], strides = [1, 1]} : vector<8x384xf32> to vector<8x128xf32>
    %153 = arith.addf %151, %152 : vector<8x128xf32>
    %cst_69 = arith.constant 0.000000e+00 : f32
    %154 = vector.broadcast %cst_69 : f32 to vector<8x128xf32>
    %155 = arith.subf %154, %153 : vector<8x128xf32>
    %156 = math.exp %155 : vector<8x128xf32>
    %cst_70 = arith.constant 1.000000e+00 : f32
    %157 = vector.broadcast %cst_70 : f32 to vector<8x128xf32>
    %158 = arith.addf %157, %156 : vector<8x128xf32>
    %cst_71 = arith.constant 1.000000e+00 : f32
    %159 = vector.broadcast %cst_71 : f32 to vector<8x128xf32>
    %160 = arith.divf %159, %158 : vector<8x128xf32>
    %161 = vector.extract_strided_slice %146 {offsets = [0, 128], sizes = [8, 128], strides = [1, 1]} : vector<8x384xf32> to vector<8x128xf32>
    %162 = vector.extract_strided_slice %150 {offsets = [0, 128], sizes = [8, 128], strides = [1, 1]} : vector<8x384xf32> to vector<8x128xf32>
    %163 = arith.addf %161, %162 : vector<8x128xf32>
    %cst_72 = arith.constant 0.000000e+00 : f32
    %164 = vector.broadcast %cst_72 : f32 to vector<8x128xf32>
    %165 = arith.subf %164, %163 : vector<8x128xf32>
    %166 = math.exp %165 : vector<8x128xf32>
    %cst_73 = arith.constant 1.000000e+00 : f32
    %167 = vector.broadcast %cst_73 : f32 to vector<8x128xf32>
    %168 = arith.addf %167, %166 : vector<8x128xf32>
    %cst_74 = arith.constant 1.000000e+00 : f32
    %169 = vector.broadcast %cst_74 : f32 to vector<8x128xf32>
    %170 = arith.divf %169, %168 : vector<8x128xf32>
    %171 = vector.extract_strided_slice %146 {offsets = [0, 256], sizes = [8, 128], strides = [1, 1]} : vector<8x384xf32> to vector<8x128xf32>
    %172 = vector.extract_strided_slice %150 {offsets = [0, 256], sizes = [8, 128], strides = [1, 1]} : vector<8x384xf32> to vector<8x128xf32>
    %173 = arith.mulf %160, %172 : vector<8x128xf32>
    %174 = arith.addf %171, %173 : vector<8x128xf32>
    %175 = math.tanh %174 : vector<8x128xf32>
    %cst_75 = arith.constant 1.000000e+00 : f32
    %176 = vector.broadcast %cst_75 : f32 to vector<8x128xf32>
    %177 = arith.subf %176, %170 : vector<8x128xf32>
    %178 = arith.mulf %177, %175 : vector<8x128xf32>
    %179 = arith.mulf %170, %107 : vector<8x128xf32>
    %180 = arith.addf %178, %179 : vector<8x128xf32>
    %181 = arith.truncf %107 : vector<8x128xf32> to vector<8x128xbf16>
    %c0_76 = arith.constant 0 : index
    %c0_77 = arith.constant 0 : index
    %182 = vector.load %arg8[%c0_76, %c0_77] : memref<128x384xbf16, #tpu.memory_space<vmem>>, vector<128x384xbf16>
    %cst_78 = arith.constant dense<0.000000e+00> : vector<8x384xf32>
    %183 = tpu.matmul %181, %182, %cst_78 {dimension_numbers = #tpu.dot_dimension_numbers<[1], [0], [0], [1], [0, 0, 1, 1], [], []>} : vector<8x128xbf16>, vector<128x384xbf16>, vector<8x384xf32> -> vector<8x384xf32>
    %184 = arith.addf %183, %26 : vector<8x384xf32>
    %185 = arith.truncf %145 : vector<8x128xf32> to vector<8x128xbf16>
    %c0_79 = arith.constant 0 : index
    %c0_80 = arith.constant 0 : index
    %186 = vector.load %arg9[%c0_79, %c0_80] : memref<128x384xbf16, #tpu.memory_space<vmem>>, vector<128x384xbf16>
    %cst_81 = arith.constant dense<0.000000e+00> : vector<8x384xf32>
    %187 = tpu.matmul %185, %186, %cst_81 {dimension_numbers = #tpu.dot_dimension_numbers<[1], [0], [0], [1], [0, 0, 1, 1], [], []>} : vector<8x128xbf16>, vector<128x384xbf16>, vector<8x384xf32> -> vector<8x384xf32>
    %188 = arith.addf %187, %29 : vector<8x384xf32>
    %189 = vector.extract_strided_slice %184 {offsets = [0, 0], sizes = [8, 128], strides = [1, 1]} : vector<8x384xf32> to vector<8x128xf32>
    %190 = vector.extract_strided_slice %188 {offsets = [0, 0], sizes = [8, 128], strides = [1, 1]} : vector<8x384xf32> to vector<8x128xf32>
    %191 = arith.addf %189, %190 : vector<8x128xf32>
    %cst_82 = arith.constant 0.000000e+00 : f32
    %192 = vector.broadcast %cst_82 : f32 to vector<8x128xf32>
    %193 = arith.subf %192, %191 : vector<8x128xf32>
    %194 = math.exp %193 : vector<8x128xf32>
    %cst_83 = arith.constant 1.000000e+00 : f32
    %195 = vector.broadcast %cst_83 : f32 to vector<8x128xf32>
    %196 = arith.addf %195, %194 : vector<8x128xf32>
    %cst_84 = arith.constant 1.000000e+00 : f32
    %197 = vector.broadcast %cst_84 : f32 to vector<8x128xf32>
    %198 = arith.divf %197, %196 : vector<8x128xf32>
    %199 = vector.extract_strided_slice %184 {offsets = [0, 128], sizes = [8, 128], strides = [1, 1]} : vector<8x384xf32> to vector<8x128xf32>
    %200 = vector.extract_strided_slice %188 {offsets = [0, 128], sizes = [8, 128], strides = [1, 1]} : vector<8x384xf32> to vector<8x128xf32>
    %201 = arith.addf %199, %200 : vector<8x128xf32>
    %cst_85 = arith.constant 0.000000e+00 : f32
    %202 = vector.broadcast %cst_85 : f32 to vector<8x128xf32>
    %203 = arith.subf %202, %201 : vector<8x128xf32>
    %204 = math.exp %203 : vector<8x128xf32>
    %cst_86 = arith.constant 1.000000e+00 : f32
    %205 = vector.broadcast %cst_86 : f32 to vector<8x128xf32>
    %206 = arith.addf %205, %204 : vector<8x128xf32>
    %cst_87 = arith.constant 1.000000e+00 : f32
    %207 = vector.broadcast %cst_87 : f32 to vector<8x128xf32>
    %208 = arith.divf %207, %206 : vector<8x128xf32>
    %209 = vector.extract_strided_slice %184 {offsets = [0, 256], sizes = [8, 128], strides = [1, 1]} : vector<8x384xf32> to vector<8x128xf32>
    %210 = vector.extract_strided_slice %188 {offsets = [0, 256], sizes = [8, 128], strides = [1, 1]} : vector<8x384xf32> to vector<8x128xf32>
    %211 = arith.mulf %198, %210 : vector<8x128xf32>
    %212 = arith.addf %209, %211 : vector<8x128xf32>
    %213 = math.tanh %212 : vector<8x128xf32>
    %cst_88 = arith.constant 1.000000e+00 : f32
    %214 = vector.broadcast %cst_88 : f32 to vector<8x128xf32>
    %215 = arith.subf %214, %208 : vector<8x128xf32>
    %216 = arith.mulf %215, %213 : vector<8x128xf32>
    %217 = arith.mulf %208, %145 : vector<8x128xf32>
    %218 = arith.addf %216, %217 : vector<8x128xf32>
    %c24 = arith.constant 24 : index
    %c0_89 = arith.constant 0 : index
    %219 = vector.load %arg19[%c24, %c0_89] : memref<48x384xf32, #tpu.memory_space<vmem>>, vector<8x384xf32>
    %220 = arith.truncf %180 : vector<8x128xf32> to vector<8x128xbf16>
    %c0_90 = arith.constant 0 : index
    %c0_91 = arith.constant 0 : index
    %221 = vector.load %arg5[%c0_90, %c0_91] : memref<128x384xbf16, #tpu.memory_space<vmem>>, vector<128x384xbf16>
    %cst_92 = arith.constant dense<0.000000e+00> : vector<8x384xf32>
    %222 = tpu.matmul %220, %221, %cst_92 {dimension_numbers = #tpu.dot_dimension_numbers<[1], [0], [0], [1], [0, 0, 1, 1], [], []>} : vector<8x128xbf16>, vector<128x384xbf16>, vector<8x384xf32> -> vector<8x384xf32>
    %223 = arith.addf %222, %23 : vector<8x384xf32>
    %224 = vector.extract_strided_slice %219 {offsets = [0, 0], sizes = [8, 128], strides = [1, 1]} : vector<8x384xf32> to vector<8x128xf32>
    %225 = vector.extract_strided_slice %223 {offsets = [0, 0], sizes = [8, 128], strides = [1, 1]} : vector<8x384xf32> to vector<8x128xf32>
    %226 = arith.addf %224, %225 : vector<8x128xf32>
    %cst_93 = arith.constant 0.000000e+00 : f32
    %227 = vector.broadcast %cst_93 : f32 to vector<8x128xf32>
    %228 = arith.subf %227, %226 : vector<8x128xf32>
    %229 = math.exp %228 : vector<8x128xf32>
    %cst_94 = arith.constant 1.000000e+00 : f32
    %230 = vector.broadcast %cst_94 : f32 to vector<8x128xf32>
    %231 = arith.addf %230, %229 : vector<8x128xf32>
    %cst_95 = arith.constant 1.000000e+00 : f32
    %232 = vector.broadcast %cst_95 : f32 to vector<8x128xf32>
    %233 = arith.divf %232, %231 : vector<8x128xf32>
    %234 = vector.extract_strided_slice %219 {offsets = [0, 128], sizes = [8, 128], strides = [1, 1]} : vector<8x384xf32> to vector<8x128xf32>
    %235 = vector.extract_strided_slice %223 {offsets = [0, 128], sizes = [8, 128], strides = [1, 1]} : vector<8x384xf32> to vector<8x128xf32>
    %236 = arith.addf %234, %235 : vector<8x128xf32>
    %cst_96 = arith.constant 0.000000e+00 : f32
    %237 = vector.broadcast %cst_96 : f32 to vector<8x128xf32>
    %238 = arith.subf %237, %236 : vector<8x128xf32>
    %239 = math.exp %238 : vector<8x128xf32>
    %cst_97 = arith.constant 1.000000e+00 : f32
    %240 = vector.broadcast %cst_97 : f32 to vector<8x128xf32>
    %241 = arith.addf %240, %239 : vector<8x128xf32>
    %cst_98 = arith.constant 1.000000e+00 : f32
    %242 = vector.broadcast %cst_98 : f32 to vector<8x128xf32>
    %243 = arith.divf %242, %241 : vector<8x128xf32>
    %244 = vector.extract_strided_slice %219 {offsets = [0, 256], sizes = [8, 128], strides = [1, 1]} : vector<8x384xf32> to vector<8x128xf32>
    %245 = vector.extract_strided_slice %223 {offsets = [0, 256], sizes = [8, 128], strides = [1, 1]} : vector<8x384xf32> to vector<8x128xf32>
    %246 = arith.mulf %233, %245 : vector<8x128xf32>
    %247 = arith.addf %244, %246 : vector<8x128xf32>
    %248 = math.tanh %247 : vector<8x128xf32>
    %cst_99 = arith.constant 1.000000e+00 : f32
    %249 = vector.broadcast %cst_99 : f32 to vector<8x128xf32>
    %250 = arith.subf %249, %243 : vector<8x128xf32>
    %251 = arith.mulf %250, %248 : vector<8x128xf32>
    %252 = arith.mulf %243, %180 : vector<8x128xf32>
    %253 = arith.addf %251, %252 : vector<8x128xf32>
    %254 = arith.truncf %180 : vector<8x128xf32> to vector<8x128xbf16>
    %c0_100 = arith.constant 0 : index
    %c0_101 = arith.constant 0 : index
    %255 = vector.load %arg8[%c0_100, %c0_101] : memref<128x384xbf16, #tpu.memory_space<vmem>>, vector<128x384xbf16>
    %cst_102 = arith.constant dense<0.000000e+00> : vector<8x384xf32>
    %256 = tpu.matmul %254, %255, %cst_102 {dimension_numbers = #tpu.dot_dimension_numbers<[1], [0], [0], [1], [0, 0, 1, 1], [], []>} : vector<8x128xbf16>, vector<128x384xbf16>, vector<8x384xf32> -> vector<8x384xf32>
    %257 = arith.addf %256, %26 : vector<8x384xf32>
    %258 = arith.truncf %218 : vector<8x128xf32> to vector<8x128xbf16>
    %c0_103 = arith.constant 0 : index
    %c0_104 = arith.constant 0 : index
    %259 = vector.load %arg9[%c0_103, %c0_104] : memref<128x384xbf16, #tpu.memory_space<vmem>>, vector<128x384xbf16>
    %cst_105 = arith.constant dense<0.000000e+00> : vector<8x384xf32>
    %260 = tpu.matmul %258, %259, %cst_105 {dimension_numbers = #tpu.dot_dimension_numbers<[1], [0], [0], [1], [0, 0, 1, 1], [], []>} : vector<8x128xbf16>, vector<128x384xbf16>, vector<8x384xf32> -> vector<8x384xf32>
    %261 = arith.addf %260, %29 : vector<8x384xf32>
    %262 = vector.extract_strided_slice %257 {offsets = [0, 0], sizes = [8, 128], strides = [1, 1]} : vector<8x384xf32> to vector<8x128xf32>
    %263 = vector.extract_strided_slice %261 {offsets = [0, 0], sizes = [8, 128], strides = [1, 1]} : vector<8x384xf32> to vector<8x128xf32>
    %264 = arith.addf %262, %263 : vector<8x128xf32>
    %cst_106 = arith.constant 0.000000e+00 : f32
    %265 = vector.broadcast %cst_106 : f32 to vector<8x128xf32>
    %266 = arith.subf %265, %264 : vector<8x128xf32>
    %267 = math.exp %266 : vector<8x128xf32>
    %cst_107 = arith.constant 1.000000e+00 : f32
    %268 = vector.broadcast %cst_107 : f32 to vector<8x128xf32>
    %269 = arith.addf %268, %267 : vector<8x128xf32>
    %cst_108 = arith.constant 1.000000e+00 : f32
    %270 = vector.broadcast %cst_108 : f32 to vector<8x128xf32>
    %271 = arith.divf %270, %269 : vector<8x128xf32>
    %272 = vector.extract_strided_slice %257 {offsets = [0, 128], sizes = [8, 128], strides = [1, 1]} : vector<8x384xf32> to vector<8x128xf32>
    %273 = vector.extract_strided_slice %261 {offsets = [0, 128], sizes = [8, 128], strides = [1, 1]} : vector<8x384xf32> to vector<8x128xf32>
    %274 = arith.addf %272, %273 : vector<8x128xf32>
    %cst_109 = arith.constant 0.000000e+00 : f32
    %275 = vector.broadcast %cst_109 : f32 to vector<8x128xf32>
    %276 = arith.subf %275, %274 : vector<8x128xf32>
    %277 = math.exp %276 : vector<8x128xf32>
    %cst_110 = arith.constant 1.000000e+00 : f32
    %278 = vector.broadcast %cst_110 : f32 to vector<8x128xf32>
    %279 = arith.addf %278, %277 : vector<8x128xf32>
    %cst_111 = arith.constant 1.000000e+00 : f32
    %280 = vector.broadcast %cst_111 : f32 to vector<8x128xf32>
    %281 = arith.divf %280, %279 : vector<8x128xf32>
    %282 = vector.extract_strided_slice %257 {offsets = [0, 256], sizes = [8, 128], strides = [1, 1]} : vector<8x384xf32> to vector<8x128xf32>
    %283 = vector.extract_strided_slice %261 {offsets = [0, 256], sizes = [8, 128], strides = [1, 1]} : vector<8x384xf32> to vector<8x128xf32>
    %284 = arith.mulf %271, %283 : vector<8x128xf32>
    %285 = arith.addf %282, %284 : vector<8x128xf32>
    %286 = math.tanh %285 : vector<8x128xf32>
    %cst_112 = arith.constant 1.000000e+00 : f32
    %287 = vector.broadcast %cst_112 : f32 to vector<8x128xf32>
    %288 = arith.subf %287, %281 : vector<8x128xf32>
    %289 = arith.mulf %288, %286 : vector<8x128xf32>
    %290 = arith.mulf %281, %218 : vector<8x128xf32>
    %291 = arith.addf %289, %290 : vector<8x128xf32>
    %c32 = arith.constant 32 : index
    %c0_113 = arith.constant 0 : index
    %292 = vector.load %arg19[%c32, %c0_113] : memref<48x384xf32, #tpu.memory_space<vmem>>, vector<8x384xf32>
    %293 = arith.truncf %253 : vector<8x128xf32> to vector<8x128xbf16>
    %c0_114 = arith.constant 0 : index
    %c0_115 = arith.constant 0 : index
    %294 = vector.load %arg5[%c0_114, %c0_115] : memref<128x384xbf16, #tpu.memory_space<vmem>>, vector<128x384xbf16>
    %cst_116 = arith.constant dense<0.000000e+00> : vector<8x384xf32>
    %295 = tpu.matmul %293, %294, %cst_116 {dimension_numbers = #tpu.dot_dimension_numbers<[1], [0], [0], [1], [0, 0, 1, 1], [], []>} : vector<8x128xbf16>, vector<128x384xbf16>, vector<8x384xf32> -> vector<8x384xf32>
    %296 = arith.addf %295, %23 : vector<8x384xf32>
    %297 = vector.extract_strided_slice %292 {offsets = [0, 0], sizes = [8, 128], strides = [1, 1]} : vector<8x384xf32> to vector<8x128xf32>
    %298 = vector.extract_strided_slice %296 {offsets = [0, 0], sizes = [8, 128], strides = [1, 1]} : vector<8x384xf32> to vector<8x128xf32>
    %299 = arith.addf %297, %298 : vector<8x128xf32>
    %cst_117 = arith.constant 0.000000e+00 : f32
    %300 = vector.broadcast %cst_117 : f32 to vector<8x128xf32>
    %301 = arith.subf %300, %299 : vector<8x128xf32>
    %302 = math.exp %301 : vector<8x128xf32>
    %cst_118 = arith.constant 1.000000e+00 : f32
    %303 = vector.broadcast %cst_118 : f32 to vector<8x128xf32>
    %304 = arith.addf %303, %302 : vector<8x128xf32>
    %cst_119 = arith.constant 1.000000e+00 : f32
    %305 = vector.broadcast %cst_119 : f32 to vector<8x128xf32>
    %306 = arith.divf %305, %304 : vector<8x128xf32>
    %307 = vector.extract_strided_slice %292 {offsets = [0, 128], sizes = [8, 128], strides = [1, 1]} : vector<8x384xf32> to vector<8x128xf32>
    %308 = vector.extract_strided_slice %296 {offsets = [0, 128], sizes = [8, 128], strides = [1, 1]} : vector<8x384xf32> to vector<8x128xf32>
    %309 = arith.addf %307, %308 : vector<8x128xf32>
    %cst_120 = arith.constant 0.000000e+00 : f32
    %310 = vector.broadcast %cst_120 : f32 to vector<8x128xf32>
    %311 = arith.subf %310, %309 : vector<8x128xf32>
    %312 = math.exp %311 : vector<8x128xf32>
    %cst_121 = arith.constant 1.000000e+00 : f32
    %313 = vector.broadcast %cst_121 : f32 to vector<8x128xf32>
    %314 = arith.addf %313, %312 : vector<8x128xf32>
    %cst_122 = arith.constant 1.000000e+00 : f32
    %315 = vector.broadcast %cst_122 : f32 to vector<8x128xf32>
    %316 = arith.divf %315, %314 : vector<8x128xf32>
    %317 = vector.extract_strided_slice %292 {offsets = [0, 256], sizes = [8, 128], strides = [1, 1]} : vector<8x384xf32> to vector<8x128xf32>
    %318 = vector.extract_strided_slice %296 {offsets = [0, 256], sizes = [8, 128], strides = [1, 1]} : vector<8x384xf32> to vector<8x128xf32>
    %319 = arith.mulf %306, %318 : vector<8x128xf32>
    %320 = arith.addf %317, %319 : vector<8x128xf32>
    %321 = math.tanh %320 : vector<8x128xf32>
    %cst_123 = arith.constant 1.000000e+00 : f32
    %322 = vector.broadcast %cst_123 : f32 to vector<8x128xf32>
    %323 = arith.subf %322, %316 : vector<8x128xf32>
    %324 = arith.mulf %323, %321 : vector<8x128xf32>
    %325 = arith.mulf %316, %253 : vector<8x128xf32>
    %326 = arith.addf %324, %325 : vector<8x128xf32>
    %327 = arith.truncf %253 : vector<8x128xf32> to vector<8x128xbf16>
    %c0_124 = arith.constant 0 : index
    %c0_125 = arith.constant 0 : index
    %328 = vector.load %arg8[%c0_124, %c0_125] : memref<128x384xbf16, #tpu.memory_space<vmem>>, vector<128x384xbf16>
    %cst_126 = arith.constant dense<0.000000e+00> : vector<8x384xf32>
    %329 = tpu.matmul %327, %328, %cst_126 {dimension_numbers = #tpu.dot_dimension_numbers<[1], [0], [0], [1], [0, 0, 1, 1], [], []>} : vector<8x128xbf16>, vector<128x384xbf16>, vector<8x384xf32> -> vector<8x384xf32>
    %330 = arith.addf %329, %26 : vector<8x384xf32>
    %331 = arith.truncf %291 : vector<8x128xf32> to vector<8x128xbf16>
    %c0_127 = arith.constant 0 : index
    %c0_128 = arith.constant 0 : index
    %332 = vector.load %arg9[%c0_127, %c0_128] : memref<128x384xbf16, #tpu.memory_space<vmem>>, vector<128x384xbf16>
    %cst_129 = arith.constant dense<0.000000e+00> : vector<8x384xf32>
    %333 = tpu.matmul %331, %332, %cst_129 {dimension_numbers = #tpu.dot_dimension_numbers<[1], [0], [0], [1], [0, 0, 1, 1], [], []>} : vector<8x128xbf16>, vector<128x384xbf16>, vector<8x384xf32> -> vector<8x384xf32>
    %334 = arith.addf %333, %29 : vector<8x384xf32>
    %335 = vector.extract_strided_slice %330 {offsets = [0, 0], sizes = [8, 128], strides = [1, 1]} : vector<8x384xf32> to vector<8x128xf32>
    %336 = vector.extract_strided_slice %334 {offsets = [0, 0], sizes = [8, 128], strides = [1, 1]} : vector<8x384xf32> to vector<8x128xf32>
    %337 = arith.addf %335, %336 : vector<8x128xf32>
    %cst_130 = arith.constant 0.000000e+00 : f32
    %338 = vector.broadcast %cst_130 : f32 to vector<8x128xf32>
    %339 = arith.subf %338, %337 : vector<8x128xf32>
    %340 = math.exp %339 : vector<8x128xf32>
    %cst_131 = arith.constant 1.000000e+00 : f32
    %341 = vector.broadcast %cst_131 : f32 to vector<8x128xf32>
    %342 = arith.addf %341, %340 : vector<8x128xf32>
    %cst_132 = arith.constant 1.000000e+00 : f32
    %343 = vector.broadcast %cst_132 : f32 to vector<8x128xf32>
    %344 = arith.divf %343, %342 : vector<8x128xf32>
    %345 = vector.extract_strided_slice %330 {offsets = [0, 128], sizes = [8, 128], strides = [1, 1]} : vector<8x384xf32> to vector<8x128xf32>
    %346 = vector.extract_strided_slice %334 {offsets = [0, 128], sizes = [8, 128], strides = [1, 1]} : vector<8x384xf32> to vector<8x128xf32>
    %347 = arith.addf %345, %346 : vector<8x128xf32>
    %cst_133 = arith.constant 0.000000e+00 : f32
    %348 = vector.broadcast %cst_133 : f32 to vector<8x128xf32>
    %349 = arith.subf %348, %347 : vector<8x128xf32>
    %350 = math.exp %349 : vector<8x128xf32>
    %cst_134 = arith.constant 1.000000e+00 : f32
    %351 = vector.broadcast %cst_134 : f32 to vector<8x128xf32>
    %352 = arith.addf %351, %350 : vector<8x128xf32>
    %cst_135 = arith.constant 1.000000e+00 : f32
    %353 = vector.broadcast %cst_135 : f32 to vector<8x128xf32>
    %354 = arith.divf %353, %352 : vector<8x128xf32>
    %355 = vector.extract_strided_slice %330 {offsets = [0, 256], sizes = [8, 128], strides = [1, 1]} : vector<8x384xf32> to vector<8x128xf32>
    %356 = vector.extract_strided_slice %334 {offsets = [0, 256], sizes = [8, 128], strides = [1, 1]} : vector<8x384xf32> to vector<8x128xf32>
    %357 = arith.mulf %344, %356 : vector<8x128xf32>
    %358 = arith.addf %355, %357 : vector<8x128xf32>
    %359 = math.tanh %358 : vector<8x128xf32>
    %cst_136 = arith.constant 1.000000e+00 : f32
    %360 = vector.broadcast %cst_136 : f32 to vector<8x128xf32>
    %361 = arith.subf %360, %354 : vector<8x128xf32>
    %362 = arith.mulf %361, %359 : vector<8x128xf32>
    %363 = arith.mulf %354, %291 : vector<8x128xf32>
    %364 = arith.addf %362, %363 : vector<8x128xf32>
    %c40 = arith.constant 40 : index
    %c0_137 = arith.constant 0 : index
    %365 = vector.load %arg19[%c40, %c0_137] : memref<48x384xf32, #tpu.memory_space<vmem>>, vector<8x384xf32>
    %366 = arith.truncf %326 : vector<8x128xf32> to vector<8x128xbf16>
    %c0_138 = arith.constant 0 : index
    %c0_139 = arith.constant 0 : index
    %367 = vector.load %arg5[%c0_138, %c0_139] : memref<128x384xbf16, #tpu.memory_space<vmem>>, vector<128x384xbf16>
    %cst_140 = arith.constant dense<0.000000e+00> : vector<8x384xf32>
    %368 = tpu.matmul %366, %367, %cst_140 {dimension_numbers = #tpu.dot_dimension_numbers<[1], [0], [0], [1], [0, 0, 1, 1], [], []>} : vector<8x128xbf16>, vector<128x384xbf16>, vector<8x384xf32> -> vector<8x384xf32>
    %369 = arith.addf %368, %23 : vector<8x384xf32>
    %370 = vector.extract_strided_slice %365 {offsets = [0, 0], sizes = [8, 128], strides = [1, 1]} : vector<8x384xf32> to vector<8x128xf32>
    %371 = vector.extract_strided_slice %369 {offsets = [0, 0], sizes = [8, 128], strides = [1, 1]} : vector<8x384xf32> to vector<8x128xf32>
    %372 = arith.addf %370, %371 : vector<8x128xf32>
    %cst_141 = arith.constant 0.000000e+00 : f32
    %373 = vector.broadcast %cst_141 : f32 to vector<8x128xf32>
    %374 = arith.subf %373, %372 : vector<8x128xf32>
    %375 = math.exp %374 : vector<8x128xf32>
    %cst_142 = arith.constant 1.000000e+00 : f32
    %376 = vector.broadcast %cst_142 : f32 to vector<8x128xf32>
    %377 = arith.addf %376, %375 : vector<8x128xf32>
    %cst_143 = arith.constant 1.000000e+00 : f32
    %378 = vector.broadcast %cst_143 : f32 to vector<8x128xf32>
    %379 = arith.divf %378, %377 : vector<8x128xf32>
    %380 = vector.extract_strided_slice %365 {offsets = [0, 128], sizes = [8, 128], strides = [1, 1]} : vector<8x384xf32> to vector<8x128xf32>
    %381 = vector.extract_strided_slice %369 {offsets = [0, 128], sizes = [8, 128], strides = [1, 1]} : vector<8x384xf32> to vector<8x128xf32>
    %382 = arith.addf %380, %381 : vector<8x128xf32>
    %cst_144 = arith.constant 0.000000e+00 : f32
    %383 = vector.broadcast %cst_144 : f32 to vector<8x128xf32>
    %384 = arith.subf %383, %382 : vector<8x128xf32>
    %385 = math.exp %384 : vector<8x128xf32>
    %cst_145 = arith.constant 1.000000e+00 : f32
    %386 = vector.broadcast %cst_145 : f32 to vector<8x128xf32>
    %387 = arith.addf %386, %385 : vector<8x128xf32>
    %cst_146 = arith.constant 1.000000e+00 : f32
    %388 = vector.broadcast %cst_146 : f32 to vector<8x128xf32>
    %389 = arith.divf %388, %387 : vector<8x128xf32>
    %390 = vector.extract_strided_slice %365 {offsets = [0, 256], sizes = [8, 128], strides = [1, 1]} : vector<8x384xf32> to vector<8x128xf32>
    %391 = vector.extract_strided_slice %369 {offsets = [0, 256], sizes = [8, 128], strides = [1, 1]} : vector<8x384xf32> to vector<8x128xf32>
    %392 = arith.mulf %379, %391 : vector<8x128xf32>
    %393 = arith.addf %390, %392 : vector<8x128xf32>
    %394 = math.tanh %393 : vector<8x128xf32>
    %cst_147 = arith.constant 1.000000e+00 : f32
    %395 = vector.broadcast %cst_147 : f32 to vector<8x128xf32>
    %396 = arith.subf %395, %389 : vector<8x128xf32>
    %397 = arith.mulf %396, %394 : vector<8x128xf32>
    %398 = arith.mulf %389, %326 : vector<8x128xf32>
    %399 = arith.addf %397, %398 : vector<8x128xf32>
    %400 = arith.truncf %326 : vector<8x128xf32> to vector<8x128xbf16>
    %c0_148 = arith.constant 0 : index
    %c0_149 = arith.constant 0 : index
    %401 = vector.load %arg8[%c0_148, %c0_149] : memref<128x384xbf16, #tpu.memory_space<vmem>>, vector<128x384xbf16>
    %cst_150 = arith.constant dense<0.000000e+00> : vector<8x384xf32>
    %402 = tpu.matmul %400, %401, %cst_150 {dimension_numbers = #tpu.dot_dimension_numbers<[1], [0], [0], [1], [0, 0, 1, 1], [], []>} : vector<8x128xbf16>, vector<128x384xbf16>, vector<8x384xf32> -> vector<8x384xf32>
    %403 = arith.addf %402, %26 : vector<8x384xf32>
    %404 = arith.truncf %364 : vector<8x128xf32> to vector<8x128xbf16>
    %c0_151 = arith.constant 0 : index
    %c0_152 = arith.constant 0 : index
    %405 = vector.load %arg9[%c0_151, %c0_152] : memref<128x384xbf16, #tpu.memory_space<vmem>>, vector<128x384xbf16>
    %cst_153 = arith.constant dense<0.000000e+00> : vector<8x384xf32>
    %406 = tpu.matmul %404, %405, %cst_153 {dimension_numbers = #tpu.dot_dimension_numbers<[1], [0], [0], [1], [0, 0, 1, 1], [], []>} : vector<8x128xbf16>, vector<128x384xbf16>, vector<8x384xf32> -> vector<8x384xf32>
    %407 = arith.addf %406, %29 : vector<8x384xf32>
    %408 = vector.extract_strided_slice %403 {offsets = [0, 0], sizes = [8, 128], strides = [1, 1]} : vector<8x384xf32> to vector<8x128xf32>
    %409 = vector.extract_strided_slice %407 {offsets = [0, 0], sizes = [8, 128], strides = [1, 1]} : vector<8x384xf32> to vector<8x128xf32>
    %410 = arith.addf %408, %409 : vector<8x128xf32>
    %cst_154 = arith.constant 0.000000e+00 : f32
    %411 = vector.broadcast %cst_154 : f32 to vector<8x128xf32>
    %412 = arith.subf %411, %410 : vector<8x128xf32>
    %413 = math.exp %412 : vector<8x128xf32>
    %cst_155 = arith.constant 1.000000e+00 : f32
    %414 = vector.broadcast %cst_155 : f32 to vector<8x128xf32>
    %415 = arith.addf %414, %413 : vector<8x128xf32>
    %cst_156 = arith.constant 1.000000e+00 : f32
    %416 = vector.broadcast %cst_156 : f32 to vector<8x128xf32>
    %417 = arith.divf %416, %415 : vector<8x128xf32>
    %418 = vector.extract_strided_slice %403 {offsets = [0, 128], sizes = [8, 128], strides = [1, 1]} : vector<8x384xf32> to vector<8x128xf32>
    %419 = vector.extract_strided_slice %407 {offsets = [0, 128], sizes = [8, 128], strides = [1, 1]} : vector<8x384xf32> to vector<8x128xf32>
    %420 = arith.addf %418, %419 : vector<8x128xf32>
    %cst_157 = arith.constant 0.000000e+00 : f32
    %421 = vector.broadcast %cst_157 : f32 to vector<8x128xf32>
    %422 = arith.subf %421, %420 : vector<8x128xf32>
    %423 = math.exp %422 : vector<8x128xf32>
    %cst_158 = arith.constant 1.000000e+00 : f32
    %424 = vector.broadcast %cst_158 : f32 to vector<8x128xf32>
    %425 = arith.addf %424, %423 : vector<8x128xf32>
    %cst_159 = arith.constant 1.000000e+00 : f32
    %426 = vector.broadcast %cst_159 : f32 to vector<8x128xf32>
    %427 = arith.divf %426, %425 : vector<8x128xf32>
    %428 = vector.extract_strided_slice %403 {offsets = [0, 256], sizes = [8, 128], strides = [1, 1]} : vector<8x384xf32> to vector<8x128xf32>
    %429 = vector.extract_strided_slice %407 {offsets = [0, 256], sizes = [8, 128], strides = [1, 1]} : vector<8x384xf32> to vector<8x128xf32>
    %430 = arith.mulf %417, %429 : vector<8x128xf32>
    %431 = arith.addf %428, %430 : vector<8x128xf32>
    %432 = math.tanh %431 : vector<8x128xf32>
    %cst_160 = arith.constant 1.000000e+00 : f32
    %433 = vector.broadcast %cst_160 : f32 to vector<8x128xf32>
    %434 = arith.subf %433, %427 : vector<8x128xf32>
    %435 = arith.mulf %434, %432 : vector<8x128xf32>
    %436 = arith.mulf %427, %364 : vector<8x128xf32>
    %437 = arith.addf %435, %436 : vector<8x128xf32>
    %438 = arith.truncf %399 : vector<8x128xf32> to vector<8x128xbf16>
    %c0_161 = arith.constant 0 : index
    %c0_162 = arith.constant 0 : index
    %439 = vector.load %arg8[%c0_161, %c0_162] : memref<128x384xbf16, #tpu.memory_space<vmem>>, vector<128x384xbf16>
    %cst_163 = arith.constant dense<0.000000e+00> : vector<8x384xf32>
    %440 = tpu.matmul %438, %439, %cst_163 {dimension_numbers = #tpu.dot_dimension_numbers<[1], [0], [0], [1], [0, 0, 1, 1], [], []>} : vector<8x128xbf16>, vector<128x384xbf16>, vector<8x384xf32> -> vector<8x384xf32>
    %441 = arith.addf %440, %26 : vector<8x384xf32>
    %442 = arith.truncf %437 : vector<8x128xf32> to vector<8x128xbf16>
    %c0_164 = arith.constant 0 : index
    %c0_165 = arith.constant 0 : index
    %443 = vector.load %arg9[%c0_164, %c0_165] : memref<128x384xbf16, #tpu.memory_space<vmem>>, vector<128x384xbf16>
    %cst_166 = arith.constant dense<0.000000e+00> : vector<8x384xf32>
    %444 = tpu.matmul %442, %443, %cst_166 {dimension_numbers = #tpu.dot_dimension_numbers<[1], [0], [0], [1], [0, 0, 1, 1], [], []>} : vector<8x128xbf16>, vector<128x384xbf16>, vector<8x384xf32> -> vector<8x384xf32>
    %445 = arith.addf %444, %29 : vector<8x384xf32>
    %446 = vector.extract_strided_slice %441 {offsets = [0, 0], sizes = [8, 128], strides = [1, 1]} : vector<8x384xf32> to vector<8x128xf32>
    %447 = vector.extract_strided_slice %445 {offsets = [0, 0], sizes = [8, 128], strides = [1, 1]} : vector<8x384xf32> to vector<8x128xf32>
    %448 = arith.addf %446, %447 : vector<8x128xf32>
    %cst_167 = arith.constant 0.000000e+00 : f32
    %449 = vector.broadcast %cst_167 : f32 to vector<8x128xf32>
    %450 = arith.subf %449, %448 : vector<8x128xf32>
    %451 = math.exp %450 : vector<8x128xf32>
    %cst_168 = arith.constant 1.000000e+00 : f32
    %452 = vector.broadcast %cst_168 : f32 to vector<8x128xf32>
    %453 = arith.addf %452, %451 : vector<8x128xf32>
    %cst_169 = arith.constant 1.000000e+00 : f32
    %454 = vector.broadcast %cst_169 : f32 to vector<8x128xf32>
    %455 = arith.divf %454, %453 : vector<8x128xf32>
    %456 = vector.extract_strided_slice %441 {offsets = [0, 128], sizes = [8, 128], strides = [1, 1]} : vector<8x384xf32> to vector<8x128xf32>
    %457 = vector.extract_strided_slice %445 {offsets = [0, 128], sizes = [8, 128], strides = [1, 1]} : vector<8x384xf32> to vector<8x128xf32>
    %458 = arith.addf %456, %457 : vector<8x128xf32>
    %cst_170 = arith.constant 0.000000e+00 : f32
    %459 = vector.broadcast %cst_170 : f32 to vector<8x128xf32>
    %460 = arith.subf %459, %458 : vector<8x128xf32>
    %461 = math.exp %460 : vector<8x128xf32>
    %cst_171 = arith.constant 1.000000e+00 : f32
    %462 = vector.broadcast %cst_171 : f32 to vector<8x128xf32>
    %463 = arith.addf %462, %461 : vector<8x128xf32>
    %cst_172 = arith.constant 1.000000e+00 : f32
    %464 = vector.broadcast %cst_172 : f32 to vector<8x128xf32>
    %465 = arith.divf %464, %463 : vector<8x128xf32>
    %466 = vector.extract_strided_slice %441 {offsets = [0, 256], sizes = [8, 128], strides = [1, 1]} : vector<8x384xf32> to vector<8x128xf32>
    %467 = vector.extract_strided_slice %445 {offsets = [0, 256], sizes = [8, 128], strides = [1, 1]} : vector<8x384xf32> to vector<8x128xf32>
    %468 = arith.mulf %455, %467 : vector<8x128xf32>
    %469 = arith.addf %466, %468 : vector<8x128xf32>
    %470 = math.tanh %469 : vector<8x128xf32>
    %cst_173 = arith.constant 1.000000e+00 : f32
    %471 = vector.broadcast %cst_173 : f32 to vector<8x128xf32>
    %472 = arith.subf %471, %465 : vector<8x128xf32>
    %473 = arith.mulf %472, %470 : vector<8x128xf32>
    %474 = arith.mulf %465, %437 : vector<8x128xf32>
    %475 = arith.addf %473, %474 : vector<8x128xf32>
    %476 = arith.truncf %475 : vector<8x128xf32> to vector<8x128xbf16>
    %c0_174 = arith.constant 0 : index
    %c0_175 = arith.constant 0 : index
    %477 = vector.load %arg12[%c0_174, %c0_175] : memref<128x128xbf16, #tpu.memory_space<vmem>>, vector<128x128xbf16>
    %cst_176 = arith.constant dense<0.000000e+00> : vector<8x128xf32>
    %478 = tpu.matmul %476, %477, %cst_176 {dimension_numbers = #tpu.dot_dimension_numbers<[1], [0], [0], [1], [0, 0, 1, 1], [], []>} : vector<8x128xbf16>, vector<128x128xbf16>, vector<8x128xf32> -> vector<8x128xf32>
    %479 = arith.addf %478, %32 : vector<8x128xf32>
    %cst_177 = arith.constant 0.000000e+00 : f32
    %480 = vector.broadcast %cst_177 : f32 to vector<8x128xf32>
    %481 = arith.maximumf %479, %480 : vector<8x128xf32>
    %482 = arith.truncf %481 : vector<8x128xf32> to vector<8x128xbf16>
    %c0_178 = arith.constant 0 : index
    %c0_179 = arith.constant 0 : index
    %483 = vector.load %arg14[%c0_178, %c0_179] : memref<128x128xbf16, #tpu.memory_space<vmem>>, vector<128x128xbf16>
    %cst_180 = arith.constant dense<0.000000e+00> : vector<8x128xf32>
    %484 = tpu.matmul %482, %483, %cst_180 {dimension_numbers = #tpu.dot_dimension_numbers<[1], [0], [0], [1], [0, 0, 1, 1], [], []>} : vector<8x128xbf16>, vector<128x128xbf16>, vector<8x128xf32> -> vector<8x128xf32>
    %485 = arith.addf %484, %35 : vector<8x128xf32>
    %c0_181 = arith.constant 0 : index
    %c0_182 = arith.constant 0 : index
    %486 = vector.load %arg20[%c0_181, %c0_182] : memref<16x128xf32, #tpu.memory_space<vmem>>, vector<8x128xf32>
    tpu.vector_store %arg20[%c0_181, %c0_182], %485 {strides = array<i32>} : memref<16x128xf32, #tpu.memory_space<vmem>>, vector<8x128xf32>,
    %487 = arith.truncf %485 : vector<8x128xf32> to vector<8x128xbf16>
    %c0_183 = arith.constant 0 : index
    %c0_184 = arith.constant 0 : index
    %488 = vector.load %arg4[%c0_183, %c0_184] : memref<128x384xbf16, #tpu.memory_space<vmem>>, vector<128x384xbf16>
    %cst_185 = arith.constant dense<0.000000e+00> : vector<8x384xf32>
    %489 = tpu.matmul %487, %488, %cst_185 {dimension_numbers = #tpu.dot_dimension_numbers<[1], [0], [0], [1], [0, 0, 1, 1], [], []>} : vector<8x128xbf16>, vector<128x384xbf16>, vector<8x384xf32> -> vector<8x384xf32>
    %490 = arith.addf %489, %20 : vector<8x384xf32>
    %491 = arith.truncf %399 : vector<8x128xf32> to vector<8x128xbf16>
    %c0_186 = arith.constant 0 : index
    %c0_187 = arith.constant 0 : index
    %492 = vector.load %arg5[%c0_186, %c0_187] : memref<128x384xbf16, #tpu.memory_space<vmem>>, vector<128x384xbf16>
    %cst_188 = arith.constant dense<0.000000e+00> : vector<8x384xf32>
    %493 = tpu.matmul %491, %492, %cst_188 {dimension_numbers = #tpu.dot_dimension_numbers<[1], [0], [0], [1], [0, 0, 1, 1], [], []>} : vector<8x128xbf16>, vector<128x384xbf16>, vector<8x384xf32> -> vector<8x384xf32>
    %494 = arith.addf %493, %23 : vector<8x384xf32>
    %495 = vector.extract_strided_slice %490 {offsets = [0, 0], sizes = [8, 128], strides = [1, 1]} : vector<8x384xf32> to vector<8x128xf32>
    %496 = vector.extract_strided_slice %494 {offsets = [0, 0], sizes = [8, 128], strides = [1, 1]} : vector<8x384xf32> to vector<8x128xf32>
    %497 = arith.addf %495, %496 : vector<8x128xf32>
    %cst_189 = arith.constant 0.000000e+00 : f32
    %498 = vector.broadcast %cst_189 : f32 to vector<8x128xf32>
    %499 = arith.subf %498, %497 : vector<8x128xf32>
    %500 = math.exp %499 : vector<8x128xf32>
    %cst_190 = arith.constant 1.000000e+00 : f32
    %501 = vector.broadcast %cst_190 : f32 to vector<8x128xf32>
    %502 = arith.addf %501, %500 : vector<8x128xf32>
    %cst_191 = arith.constant 1.000000e+00 : f32
    %503 = vector.broadcast %cst_191 : f32 to vector<8x128xf32>
    %504 = arith.divf %503, %502 : vector<8x128xf32>
    %505 = vector.extract_strided_slice %490 {offsets = [0, 128], sizes = [8, 128], strides = [1, 1]} : vector<8x384xf32> to vector<8x128xf32>
    %506 = vector.extract_strided_slice %494 {offsets = [0, 128], sizes = [8, 128], strides = [1, 1]} : vector<8x384xf32> to vector<8x128xf32>
    %507 = arith.addf %505, %506 : vector<8x128xf32>
    %cst_192 = arith.constant 0.000000e+00 : f32
    %508 = vector.broadcast %cst_192 : f32 to vector<8x128xf32>
    %509 = arith.subf %508, %507 : vector<8x128xf32>
    %510 = math.exp %509 : vector<8x128xf32>
    %cst_193 = arith.constant 1.000000e+00 : f32
    %511 = vector.broadcast %cst_193 : f32 to vector<8x128xf32>
    %512 = arith.addf %511, %510 : vector<8x128xf32>
    %cst_194 = arith.constant 1.000000e+00 : f32
    %513 = vector.broadcast %cst_194 : f32 to vector<8x128xf32>
    %514 = arith.divf %513, %512 : vector<8x128xf32>
    %515 = vector.extract_strided_slice %490 {offsets = [0, 256], sizes = [8, 128], strides = [1, 1]} : vector<8x384xf32> to vector<8x128xf32>
    %516 = vector.extract_strided_slice %494 {offsets = [0, 256], sizes = [8, 128], strides = [1, 1]} : vector<8x384xf32> to vector<8x128xf32>
    %517 = arith.mulf %504, %516 : vector<8x128xf32>
    %518 = arith.addf %515, %517 : vector<8x128xf32>
    %519 = math.tanh %518 : vector<8x128xf32>
    %cst_195 = arith.constant 1.000000e+00 : f32
    %520 = vector.broadcast %cst_195 : f32 to vector<8x128xf32>
    %521 = arith.subf %520, %514 : vector<8x128xf32>
    %522 = arith.mulf %521, %519 : vector<8x128xf32>
    %523 = arith.mulf %514, %399 : vector<8x128xf32>
    %524 = arith.addf %522, %523 : vector<8x128xf32>
    %525 = arith.truncf %524 : vector<8x128xf32> to vector<8x128xbf16>
    %c0_196 = arith.constant 0 : index
    %c0_197 = arith.constant 0 : index
    %526 = vector.load %arg8[%c0_196, %c0_197] : memref<128x384xbf16, #tpu.memory_space<vmem>>, vector<128x384xbf16>
    %cst_198 = arith.constant dense<0.000000e+00> : vector<8x384xf32>
    %527 = tpu.matmul %525, %526, %cst_198 {dimension_numbers = #tpu.dot_dimension_numbers<[1], [0], [0], [1], [0, 0, 1, 1], [], []>} : vector<8x128xbf16>, vector<128x384xbf16>, vector<8x384xf32> -> vector<8x384xf32>
    %528 = arith.addf %527, %26 : vector<8x384xf32>
    %529 = arith.truncf %475 : vector<8x128xf32> to vector<8x128xbf16>
    %c0_199 = arith.constant 0 : index
    %c0_200 = arith.constant 0 : index
    %530 = vector.load %arg9[%c0_199, %c0_200] : memref<128x384xbf16, #tpu.memory_space<vmem>>, vector<128x384xbf16>
    %cst_201 = arith.constant dense<0.000000e+00> : vector<8x384xf32>
    %531 = tpu.matmul %529, %530, %cst_201 {dimension_numbers = #tpu.dot_dimension_numbers<[1], [0], [0], [1], [0, 0, 1, 1], [], []>} : vector<8x128xbf16>, vector<128x384xbf16>, vector<8x384xf32> -> vector<8x384xf32>
    %532 = arith.addf %531, %29 : vector<8x384xf32>
    %533 = vector.extract_strided_slice %528 {offsets = [0, 0], sizes = [8, 128], strides = [1, 1]} : vector<8x384xf32> to vector<8x128xf32>
    %534 = vector.extract_strided_slice %532 {offsets = [0, 0], sizes = [8, 128], strides = [1, 1]} : vector<8x384xf32> to vector<8x128xf32>
    %535 = arith.addf %533, %534 : vector<8x128xf32>
    %cst_202 = arith.constant 0.000000e+00 : f32
    %536 = vector.broadcast %cst_202 : f32 to vector<8x128xf32>
    %537 = arith.subf %536, %535 : vector<8x128xf32>
    %538 = math.exp %537 : vector<8x128xf32>
    %cst_203 = arith.constant 1.000000e+00 : f32
    %539 = vector.broadcast %cst_203 : f32 to vector<8x128xf32>
    %540 = arith.addf %539, %538 : vector<8x128xf32>
    %cst_204 = arith.constant 1.000000e+00 : f32
    %541 = vector.broadcast %cst_204 : f32 to vector<8x128xf32>
    %542 = arith.divf %541, %540 : vector<8x128xf32>
    %543 = vector.extract_strided_slice %528 {offsets = [0, 128], sizes = [8, 128], strides = [1, 1]} : vector<8x384xf32> to vector<8x128xf32>
    %544 = vector.extract_strided_slice %532 {offsets = [0, 128], sizes = [8, 128], strides = [1, 1]} : vector<8x384xf32> to vector<8x128xf32>
    %545 = arith.addf %543, %544 : vector<8x128xf32>
    %cst_205 = arith.constant 0.000000e+00 : f32
    %546 = vector.broadcast %cst_205 : f32 to vector<8x128xf32>
    %547 = arith.subf %546, %545 : vector<8x128xf32>
    %548 = math.exp %547 : vector<8x128xf32>
    %cst_206 = arith.constant 1.000000e+00 : f32
    %549 = vector.broadcast %cst_206 : f32 to vector<8x128xf32>
    %550 = arith.addf %549, %548 : vector<8x128xf32>
    %cst_207 = arith.constant 1.000000e+00 : f32
    %551 = vector.broadcast %cst_207 : f32 to vector<8x128xf32>
    %552 = arith.divf %551, %550 : vector<8x128xf32>
    %553 = vector.extract_strided_slice %528 {offsets = [0, 256], sizes = [8, 128], strides = [1, 1]} : vector<8x384xf32> to vector<8x128xf32>
    %554 = vector.extract_strided_slice %532 {offsets = [0, 256], sizes = [8, 128], strides = [1, 1]} : vector<8x384xf32> to vector<8x128xf32>
    %555 = arith.mulf %542, %554 : vector<8x128xf32>
    %556 = arith.addf %553, %555 : vector<8x128xf32>
    %557 = math.tanh %556 : vector<8x128xf32>
    %cst_208 = arith.constant 1.000000e+00 : f32
    %558 = vector.broadcast %cst_208 : f32 to vector<8x128xf32>
    %559 = arith.subf %558, %552 : vector<8x128xf32>
    %560 = arith.mulf %559, %557 : vector<8x128xf32>
    %561 = arith.mulf %552, %475 : vector<8x128xf32>
    %562 = arith.addf %560, %561 : vector<8x128xf32>
    %563 = arith.truncf %562 : vector<8x128xf32> to vector<8x128xbf16>
    %c0_209 = arith.constant 0 : index
    %c0_210 = arith.constant 0 : index
    %564 = vector.load %arg12[%c0_209, %c0_210] : memref<128x128xbf16, #tpu.memory_space<vmem>>, vector<128x128xbf16>
    %cst_211 = arith.constant dense<0.000000e+00> : vector<8x128xf32>
    %565 = tpu.matmul %563, %564, %cst_211 {dimension_numbers = #tpu.dot_dimension_numbers<[1], [0], [0], [1], [0, 0, 1, 1], [], []>} : vector<8x128xbf16>, vector<128x128xbf16>, vector<8x128xf32> -> vector<8x128xf32>
    %566 = arith.addf %565, %32 : vector<8x128xf32>
    %cst_212 = arith.constant 0.000000e+00 : f32
    %567 = vector.broadcast %cst_212 : f32 to vector<8x128xf32>
    %568 = arith.maximumf %566, %567 : vector<8x128xf32>
    %569 = arith.truncf %568 : vector<8x128xf32> to vector<8x128xbf16>
    %c0_213 = arith.constant 0 : index
    %c0_214 = arith.constant 0 : index
    %570 = vector.load %arg14[%c0_213, %c0_214] : memref<128x128xbf16, #tpu.memory_space<vmem>>, vector<128x128xbf16>
    %cst_215 = arith.constant dense<0.000000e+00> : vector<8x128xf32>
    %571 = tpu.matmul %569, %570, %cst_215 {dimension_numbers = #tpu.dot_dimension_numbers<[1], [0], [0], [1], [0, 0, 1, 1], [], []>} : vector<8x128xbf16>, vector<128x128xbf16>, vector<8x128xf32> -> vector<8x128xf32>
    %572 = arith.addf %571, %35 : vector<8x128xf32>
    %c8_216 = arith.constant 8 : index
    %c0_217 = arith.constant 0 : index
    %573 = vector.load %arg20[%c8_216, %c0_217] : memref<16x128xf32, #tpu.memory_space<vmem>>, vector<8x128xf32>
    tpu.vector_store %arg20[%c8_216, %c0_217], %572 {strides = array<i32>} : memref<16x128xf32, #tpu.memory_space<vmem>>, vector<8x128xf32>,
    %c0_218 = arith.constant 0 : index
    %c0_219 = arith.constant 0 : index
    %574 = vector.load %arg16[%c0_218, %c0_219] : memref<16x16xf32, #tpu.memory_space<vmem>>, vector<16x16xf32>
    %c0_220 = arith.constant 0 : index
    %c0_221 = arith.constant 0 : index
    %575 = vector.load %arg20[%c0_220, %c0_221] : memref<16x128xf32, #tpu.memory_space<vmem>>, vector<16x128xf32>
    %cst_222 = arith.constant dense<0.000000e+00> : vector<16x128xf32>
    %576 = tpu.matmul %574, %575, %cst_222 {dimension_numbers = #tpu.dot_dimension_numbers<[1], [0], [0], [1], [0, 0, 1, 1], [], []>} : vector<16x16xf32>, vector<16x128xf32>, vector<16x128xf32> -> vector<16x128xf32>
    %577 = arith.mulf %576, %576 : vector<16x128xf32>
    %cst_223 = arith.constant dense<0.000000e+00> : vector<16xf32>
    %578 = vector.multi_reduction <add>, %577, %cst_223 [1] : vector<16x128xf32> to vector<16xf32>
    %579 = vector.shape_cast %578 : vector<16xf32> to vector<16x1xf32>
    %cst_224 = arith.constant 1.000000e-24 : f32
    %580 = vector.broadcast %cst_224 : f32 to vector<16x1xf32>
    %581 = arith.maximumf %579, %580 : vector<16x1xf32>
    %582 = math.rsqrt %581 : vector<16x1xf32>
    %583 = vector.broadcast %582 : vector<16x1xf32> to vector<16x128xf32>
    %584 = arith.mulf %576, %583 : vector<16x128xf32>
    %c0_225 = arith.constant 0 : index
    %c0_226 = arith.constant 0 : index
    %585 = vector.load %arg18[%c0_225, %c0_226] : memref<64x128xf32, #tpu.memory_space<vmem>>, vector<64x128xf32>
    %586 = arith.mulf %585, %585 : vector<64x128xf32>
    %cst_227 = arith.constant dense<0.000000e+00> : vector<64xf32>
    %587 = vector.multi_reduction <add>, %586, %cst_227 [1] : vector<64x128xf32> to vector<64xf32>
    %588 = vector.shape_cast %587 : vector<64xf32> to vector<64x1xf32>
    %cst_228 = arith.constant 1.000000e-24 : f32
    %589 = vector.broadcast %cst_228 : f32 to vector<64x1xf32>
    %590 = arith.maximumf %588, %589 : vector<64x1xf32>
    %591 = math.rsqrt %590 : vector<64x1xf32>
    %592 = vector.broadcast %591 : vector<64x1xf32> to vector<64x128xf32>
    %593 = arith.mulf %585, %592 : vector<64x128xf32>
    %594 = arith.truncf %584 : vector<16x128xf32> to vector<16x128xbf16>
    %595 = arith.truncf %593 : vector<64x128xf32> to vector<64x128xbf16>
    %cst_229 = arith.constant dense<0.000000e+00> : vector<16x64xf32>
    %596 = tpu.matmul %594, %595, %cst_229 {dimension_numbers = #tpu.dot_dimension_numbers<[1], [1], [0], [0], [0, 0, 1, 0], [], []>} : vector<16x128xbf16>, vector<64x128xbf16>, vector<16x64xf32> -> vector<16x64xf32>
    %c0_230 = arith.constant 0 : index
    %597 = memref.load %arg0[%c0_230] : memref<1xf32, #tpu.memory_space<smem>>
    %598 = vector.broadcast %597 : f32 to vector<16x64xf32>
    %599 = arith.mulf %596, %598 : vector<16x64xf32>
    %c0_231 = arith.constant 0 : index
    %c0_232 = arith.constant 0 : index
    %600 = vector.load %arg17[%c0_231, %c0_232] : memref<16x64xf32, #tpu.memory_space<vmem>>, vector<16x64xf32>
    tpu.vector_store %arg17[%c0_231, %c0_232], %599 {strides = array<i32>} : memref<16x64xf32, #tpu.memory_space<vmem>>, vector<16x64xf32>,
    return
  }
}

</mosaic_0001>

<bundles_post_ra>
// kernel: tpu_custom_call.1
= control target key start
LH: loop header
LB: loop body
LE: loop exit
PB: predicated region body
PF: predicated region fallthrough
CT: control target
= control target key end

     0   :  { %s7884_s0 = inlined_call_operand.<no memory space> [shape: f32[1], index: 0, kind: input, shape index: {}]   ;;  %s7885_s1 = inlined_call_operand.vmem [shape: f32[64,32], index: 1, kind: input, shape index: {}]   ;;  %s7886_s2 = inlined_call_operand.vmem [shape: bf16[32,128], index: 2, kind: input, shape index: {}]   ;;  %s7887_s3 = inlined_call_operand.vmem [shape: f32[1,128], index: 3, kind: input, shape index: {}]   ;;  %s7888_s4 = inlined_call_operand.hbm [shape: bf16[128,384], index: 4, kind: input, shape index: {}]   ;;  %s7889_s5 = inlined_call_operand.hbm [shape: bf16[128,384], index: 5, kind: input, shape index: {}]   ;;  %s7890_s6 = inlined_call_operand.vmem [shape: f32[1,384], index: 6, kind: input, shape index: {}]   ;;  %s7891_s7 = inlined_call_operand.vmem [shape: f32[1,384], index: 7, kind: input, shape index: {}]   ;;  %s7892_s8 = inlined_call_operand.hbm [shape: bf16[128,384], index: 8, kind: input, shape index: {}]   ;;  %s7893_s9 = inlined_call_operand.hbm [shape: bf16[128,384], index: 9, kind: input, shape index: {}]   ;;  %s7894_s10 = inlined_call_operand.vmem [shape: f32[1,384], index: 10, kind: input, shape index: {}]   ;;  %s7895_s11 = inlined_call_operand.vmem [shape: f32[1,384], index: 11, kind: input, shape index: {}]   ;;  %s7896_s12 = inlined_call_operand.vmem [shape: bf16[128,128], index: 12, kind: input, shape index: {}]   ;;  %s7897_s13 = inlined_call_operand.vmem [shape: f32[1,128], index: 13, kind: input, shape index: {}]   ;;  %s7898_s14 = inlined_call_operand.hbm [shape: bf16[128,128], index: 14, kind: input, shape index: {}]   ;;  %s7899_s15 = inlined_call_operand.vmem [shape: f32[1,128], index: 15, kind: input, shape index: {}]   ;;  %s7900_s16 = inlined_call_operand.vmem [shape: f32[16,16], index: 16, kind: input, shape index: {}]   ;;  %s7901_s17 = inlined_call_operand.hbm [shape: f32[16,64], index: 17, kind: output, shape index: {}]  }
   0x1   :  { %8056 = sst [smem:[#allocation78_spill]] %s7884_s0 }
   0x2   :  { %8057 = sst [smem:[#allocation79_spill]] %s7885_s1 }
   0x3   :  { %23 = vsyncpa [#allocation7], 0 }
   0x4   :  { %24 = vsyncpa [#allocation10], 0 }
   0x5   :  { %25 = vsyncpa [#allocation13], 0 }
   0x6   :  { %26 = vsyncpa [#allocation8], 0  ;;  %s6270_s24 = smov [#allocation9]   ;;  %s6271_s26 = smov [#allocation12]  }
   0x7   :  { %s52_s25 = sshll.u32 %s6270_s24, 4  ;;  %s80_s27 = sshll.u32 %s6271_s26, 4  ;;  %s53_s25 = int_to_ptr.vmem [resolvable:$true] %s52_s25  ;;  %s81_s27 = int_to_ptr.vmem [resolvable:$true] %s80_s27 }
   0x8   :  { %s6150_s28 = scalar_lea.vmem %s53_s25, 3072  ;;  %p6155_p1 = scmp.lt.s32.totalorder %s53_s25, %s53_s25 }
   0x9   :  { %p6151_p0 = scmp.ne.s32.totalorder %s53_s25, %s6150_s28  ;;  %p6156_p2 = scmp.lt.s32.totalorder %s6150_s28, %s6150_s28 }
   0xb   :  { %p6157_p3 = por %p6156_p2, %p6155_p1 }
   0xd   :  { %p6158_p4 = pnand %p6157_p3, %p6151_p0 }
   0xf   :  { %6161 = shalt.err (!%p6158_p4)
}
  0x10   :  { %s6272_s29 = smov 192   ;;  %s6273_s0 = smov 12  }
  0x11   :  { %58 = dma.hbm_to_vmem [thread:$0]  %s7889_s5, 3072, %s53_s25, [#allocation10], %s6272_s29, %s6272_s29, %s6273_s0  }
  0x12   :  { %s6170_s19 = scalar_lea.vmem %s81_s27, 3072  ;;  %p6175_p6 = scmp.lt.s32.totalorder %s81_s27, %s81_s27 }
  0x13   :  { %p6171_p5 = scmp.ne.s32.totalorder %s81_s27, %s6170_s19  ;;  %p6176_p7 = scmp.lt.s32.totalorder %s6170_s19, %s6170_s19 }
  0x15   :  { %p6177_p8 = por %p6176_p7, %p6175_p6 }
  0x17   :  { %p6178_p9 = pnand %p6177_p8, %p6171_p5 }
  0x19   :  { %6181 = shalt.err (!%p6178_p9)
}
  0x1a   :  { %86 = dma.hbm_to_vmem [thread:$0]  %s7893_s9, 3072, %s81_s27, [#allocation13], %s6272_s29, %s6272_s29, %s6273_s0  }
  0x1b   :  { %s6274_s21 = smov [#allocation6]   ;;  %s6275_s23 = smov [#allocation11]  }
  0x1c   :  { %s40_s22 = sshll.u32 %s6274_s21, 4  ;;  %s68_s24 = sshll.u32 %s6275_s23, 4  ;;  %s41_s22 = int_to_ptr.vmem [resolvable:$true] %s40_s22  ;;  %s69_s24 = int_to_ptr.vmem [resolvable:$true] %s68_s24 }
  0x1d   :  { %s6190_s5 = scalar_lea.vmem %s41_s22, 3072  ;;  %p6195_p11 = scmp.lt.s32.totalorder %s41_s22, %s41_s22 }
  0x1e   :  { %p6191_p10 = scmp.ne.s32.totalorder %s41_s22, %s6190_s5  ;;  %p6196_p12 = scmp.lt.s32.totalorder %s6190_s5, %s6190_s5 }
  0x20   :  { %p6197_p13 = por %p6196_p12, %p6195_p11 }
  0x22   :  { %p6198_p0 = pnand %p6197_p13, %p6191_p10 }
  0x24   :  { %6201 = shalt.err (!%p6198_p0)
}
  0x25   :  { %46 = dma.hbm_to_vmem [thread:$0]  %s7888_s4, 3072, %s41_s22, [#allocation7], %s6272_s29, %s6272_s29, %s6273_s0  }
  0x26   :  { %s6210_s9 = scalar_lea.vmem %s69_s24, 3072  ;;  %p6215_p2 = scmp.lt.s32.totalorder %s69_s24, %s69_s24 }
  0x27   :  { %p6211_p1 = scmp.ne.s32.totalorder %s69_s24, %s6210_s9  ;;  %p6216_p3 = scmp.lt.s32.totalorder %s6210_s9, %s6210_s9 }
  0x29   :  { %p6217_p4 = por %p6216_p3, %p6215_p2 }
  0x2b   :  { %p6218_p5 = pnand %p6217_p4, %p6211_p1 }
  0x2d   :  { %6221 = shalt.err (!%p6218_p5)
}
  0x2e   :  { %74 = dma.hbm_to_vmem [thread:$0]  %s7892_s8, 3072, %s69_s24, [#allocation10], %s6272_s29, %s6272_s29, %s6273_s0  }
  0x2f   :  { %s6276_s30 = smov [#allocation14]  }
  0x30   :  { %s100_s18 = sshll.u32 %s6276_s30, 4  ;;  %s101_s18 = int_to_ptr.vmem [resolvable:$true] %s100_s18 }
  0x31   :  { %s6230_s19 = scalar_lea.vmem %s101_s18, 1024  ;;  %p6235_p7 = scmp.lt.s32.totalorder %s101_s18, %s101_s18 }
  0x32   :  { %p6231_p6 = scmp.ne.s32.totalorder %s101_s18, %s6230_s19  ;;  %p6236_p8 = scmp.lt.s32.totalorder %s6230_s19, %s6230_s19 }
  0x34   :  { %p6237_p9 = por %p6236_p8, %p6235_p7 }
  0x36   :  { %p6238_p10 = pnand %p6237_p9, %p6231_p6 }
  0x38   :  { %6241 = shalt.err (!%p6238_p10)
}
  0x39   :  { %s6277_s4 = smov 64   ;;  %s6278_s1 = smov 4  }
  0x3a   :  { %106 = dma.hbm_to_vmem [thread:$0]  %s7898_s14, 1024, %s101_s18, [#allocation13], %s6277_s4, %s6277_s4, %s6278_s1  }
  0x3b   :  { %6262 = dma.done.wait [#allocation7], 3072  }
  0x3c   :  { %6263 = vsyncadd [#allocation7], 4294964224 }
  0x3d   :  { %6264 = dma.done.wait [#allocation10], 6144  }
  0x3e   :  { %6265 = vsyncadd [#allocation10], 4294961152 }
  0x3f   :  { %6266 = dma.done.wait [#allocation13], 4096  }
  0x40   :  { %6267 = vsyncadd [#allocation13], 4294963200  ;;  %v7905_v0 = vmov 0.0   ;;  %v5620_v1 = vld [vmem:[%s7886_s2 + $0x8] sm:$0xff]   ;;  %v5621_v2 = vld [vmem:[%s7886_s2] sm:$0xff]   ;;  %s8058_s24 = sld [smem:[#allocation79_spill]] }
  0x41   :  { %5038 = vmatprep.subr.bf16.mxu0 %v7905_v0  ;;  %5026 = vmatprep.subr.bf16.mxu1 %v5620_v1  ;;  %vm162_vm0 = vcmask 261120   ;;  %v5624_v10 = vld [vmem:[#allocation6 + $0xac] ss:$12 sps:$4 sm:$0xff]   ;;  %v5625_v12 = vld [vmem:[#allocation6 + $0xb0] ss:$12 sps:$4 sm:$0xff]   ;;  %v7903_v40 = vmov 0  }
  0x42   :  { %5027 = vmatpush3.bf16.msra.mxu1 %v5620_v1  ;;  %v5622_v14 = vld [vmem:[#allocation6 + $0xa8] ss:$12 sps:$4 sm:$0xff]   ;;  %5039 = vmatpush3.bf16.msra.mxu0 %v5625_v12  ;;  %v5629_v16 = vld [vmem:[#allocation6 + $0x98] ss:$12 sps:$4 sm:$0xff]   ;;  %v5626_v19 = vld [vmem:[#allocation6 + $0x90] ss:$12 sps:$4 sm:$0xff]  }
  0x43   :  { %5028 = vmatprep.subr.bf16.mxu1 %v5621_v2  ;;  %v5628_v15 = vld [vmem:[#allocation6 + $0x94] ss:$12 sps:$4 sm:$0xff]   ;;  %5040 = vmatprep.subr.bf16.mxu0 %v7905_v0  ;;  %v5632_v20 = vld [vmem:[#allocation6 + $0x7c] ss:$12 sps:$4 sm:$0xff]   ;;  %v5630_v23 = vld [vmem:[#allocation6 + $0x78] ss:$12 sps:$4 sm:$0xff]  }
  0x44   :  { %v5633_v21 = vld [vmem:[#allocation6 + $0x80] ss:$12 sps:$4 sm:$0xff]   ;;  %v5636_v24 = vld [vmem:[#allocation6 + $0x64] ss:$12 sps:$4 sm:$0xff]   ;;  %v5637_v25 = vld [vmem:[#allocation6 + $0x68] ss:$12 sps:$4 sm:$0xff]  }
  0x45   :  { %v5634_v26 = vld [vmem:[#allocation6 + $0x60] ss:$12 sps:$4 sm:$0xff]   ;;  %v5641_v28 = vld [vmem:[#allocation6 + $0x50] ss:$12 sps:$4 sm:$0xff]   ;;  %v5638_v29 = vld [vmem:[#allocation6 + $0x48] ss:$12 sps:$4 sm:$0xff]  }
  0x46   :  { %v127_v3 = vld [vmem:[%s8058_s24] sm:$0xff]  ;;  %v128_v4 = vld [vmem:[%s8058_s24 + $0x8] sm:$0xff]  ;;  %v129_v6 = vld [vmem:[%s8058_s24 + $0x10] sm:$0xff]  ;;  %5029 = vmatpush3.bf16.msra.mxu1 %v5621_v2  ;;  %5041 = vmatpush3.bf16.msra.mxu0 %v5629_v16  ;;  %vm6281_vm1 = vmmov 0   ;;  %vm4309_vm2 = vcmask 130048   ;;  %s8269_s21 = sld [smem:[#allocation78_spill]] }
  0x47   :  { %v135_v5 = vpack.c.bf16 %v128_v4, %v127_v3  ;;  %v130_v7 = vld [vmem:[%s8058_s24 + $0x18] sm:$0xff]  ;;  %v131_v8 = vld [vmem:[%s8058_s24 + $0x20] sm:$0xff]  ;;  %v132_v9 = vld [vmem:[%s8058_s24 + $0x28] sm:$0xff]  ;;  %434 = vmatprep.subr.bf16.mxu1 %v5624_v10  ;;  %5042 = vmatprep.subr.bf16.mxu0 %v7905_v0  ;;  %vm4509_vm3 = vcmask 523264   ;;  %s6282_s8 = smov [#allocation15]  }
  0x48   :  { %v136_v11 = vpack.c.bf16 %v130_v7, %v129_v6  ;;  %v137_v13 = vpack.c.bf16 %v132_v9, %v131_v8  ;;  %v133_v17 = vld [vmem:[%s8058_s24 + $0x30] sm:$0xff]  ;;  %v134_v18 = vld [vmem:[%s8058_s24 + $0x38] sm:$0xff]  ;;  %v5649_v35 = vld [vmem:[#allocation6 + $0x20] ss:$12 sps:$4 sm:$0xff]   ;;  %5054 = vmatprep.mubr.msk.bf16.mxu0 %vm6281_vm1, %v7905_v0  ;;  %s4517_s29 = sshll.u32 %s6282_s8, 4  ;;  %s4518_s29 = int_to_ptr.vmem [resolvable:$true] %s4517_s29 }
  0x49   :  { %5030 = vmatprep.mubr.msk.bf16.mxu1 %vm162_vm0, %v135_v5  ;;  %v138_v22 = vpack.c.bf16 %v134_v18, %v133_v17  ;;  %v5640_v27 = vld [vmem:[#allocation6 + $0x4c] ss:$12 sps:$4 sm:$0xff]   ;;  %v5644_v30 = vld [vmem:[#allocation6 + $0x34] ss:$12 sps:$4 sm:$0xff]   ;;  %v5642_v31 = vld [vmem:[#allocation6 + $0x30] ss:$12 sps:$4 sm:$0xff]   ;;  %p6247_p12 = scmp.lt.s32.totalorder %s4518_s29, %s4518_s29 }
  0x4a   :  { %5031 = vmatmul.mubr.msk.bf16.vlgmr.msra.gmra.mxu1 %vm162_vm0, %v136_v11  ;;  %5043 = vmatpush3.bf16.msra.mxu0 %v5633_v21  ;;  %v5645_v32 = vld [vmem:[#allocation6 + $0x38] ss:$12 sps:$4 sm:$0xff]   ;;  %v5648_v33 = vld [vmem:[#allocation6 + $0x1c] ss:$12 sps:$4 sm:$0xff]   ;;  %v5650_v37 = vld [vmem:[#allocation6] ss:$12 sps:$4 sm:$0xff]  }
  0x4b   :  { %5034 = vmatprep.mubr.msk.bf16.mxu1 %vm162_vm0, %v137_v13  ;;  %435 = vmatpush1.bf16.msra.mxu1 %v5622_v14  ;;  %v5646_v34 = vld [vmem:[#allocation6 + $0x18] ss:$12 sps:$4 sm:$0xff]   ;;  %v5653_v38 = vld [vmem:[#allocation6 + $0x8] ss:$12 sps:$4 sm:$0xff]   ;;  %v4531_v43 = vld [vmem:[%s7887_s3] ss:$0 sm:$0xff] }
  0x4c   :  { %436 = vmatprep.subr.bf16.mxu1 %v5628_v15  ;;  %5044 = vmatprep.subr.bf16.mxu0 %v7905_v0  ;;  %v5652_v36 = vld [vmem:[#allocation6 + $0x4] ss:$12 sps:$4 sm:$0xff]   ;;  %v6444_v39 = vld [vmem:[#allocation9 + $0xac] ss:$12 sps:$4 sm:$0xff]   ;;  %v6462_v53 = vld [vmem:[#allocation9 + $0xa8] ss:$12 sps:$4 sm:$0xff]  }
  0x4d   :  { %v6470_v58 = vld [vmem:[#allocation9 + $0x94] ss:$12 sps:$4 sm:$0xff]   ;;  %v6478_v63 = vld [vmem:[#allocation9 + $0xb0] ss:$12 sps:$4 sm:$0xff]   ;;  %v6499_v9 = vld [vmem:[#allocation9 + $0x78] ss:$12 sps:$4 sm:$0xff]  }
  0x4e   :  { %5045 = vmatpush3.bf16.msra.mxu0 %v5637_v25  ;;  %v6481_v2 = vld [vmem:[#allocation9 + $0x90] ss:$12 sps:$4 sm:$0xff]   ;;  %v6511_v16 = vld [vmem:[#allocation9 + $0x98] ss:$12 sps:$4 sm:$0xff]   ;;  %v6514_v17 = vld [vmem:[#allocation9 + $0x60] ss:$12 sps:$4 sm:$0xff]  }
  0x4f   :  { %437 = vmatpush1.bf16.msra.mxu1 %v5626_v19  ;;  %5046 = vmatprep.subr.bf16.mxu0 %v7905_v0  ;;  %v6489_v6 = vld [vmem:[#allocation9 + $0x7c] ss:$12 sps:$4 sm:$0xff]   ;;  %v6505_v12 = vld [vmem:[#allocation9 + $0x64] ss:$12 sps:$4 sm:$0xff]   ;;  %v6519_v19 = vld [vmem:[#allocation9 + $0x4c] ss:$12 sps:$4 sm:$0xff]  }
  0x50   :  { %438 = vmatprep.subr.bf16.mxu1 %v5632_v20  ;;  %v6537_v25 = vld [vmem:[#allocation9 + $0x68] ss:$12 sps:$4 sm:$0xff]   ;;  %s6242_s3 = scalar_lea.vmem %s4518_s29, 256 }
  0x51   :  { %p6243_p11 = scmp.ne.s32.totalorder %s4518_s29, %s6242_s3  ;;  %p6248_p13 = scmp.lt.s32.totalorder %s6242_s3, %s6242_s3 }
  0x52   :  { %5035 = vmatmul.mubr.msk.bf16.gmra.mxu1 %vm162_vm0, %v138_v22  ;;  %5047 = vmatpush3.bf16.msra.mxu0 %v5641_v28  ;;  %v6527_v22 = vld [vmem:[#allocation9 + $0x80] ss:$12 sps:$4 sm:$0xff]   ;;  %v6550_v28 = vld [vmem:[#allocation9 + $0x50] ss:$12 sps:$4 sm:$0xff]  }
  0x53   :  { %439 = vmatpush1.bf16.msra.mxu1 %v5630_v23  ;;  %5048 = vmatprep.subr.bf16.mxu0 %v7905_v0  ;;  %v6530_v23 = vld [vmem:[#allocation9 + $0x48] ss:$12 sps:$4 sm:$0xff]   ;;  %p6249_p0 = por %p6248_p13, %p6247_p12 }
  0x54   :  { %440 = vmatprep.subr.bf16.mxu1 %v5636_v24  ;;  %466 = vmatprep.mubr.bf16.mxu1 %v7903_v40  ;;  %v6534_v24 = vld [vmem:[#allocation9 + $0x34] ss:$12 sps:$4 sm:$0xff]  }
  0x55   :  { %p6250_p1 = pnand %p6249_p0, %p6243_p11 }
  0x56   :  { %5049 = vmatpush3.bf16.msra.mxu0 %v5645_v32  ;;  %v6563_v32 = vld [vmem:[#allocation9] ss:$12 sps:$4 sm:$0xff]  }
  0x57   :  { %441 = vmatpush1.bf16.msra.mxu1 %v5634_v26  ;;  %5050 = vmatprep.subr.bf16.mxu0 %v7905_v0  ;;  %v6540_v26 = vld [vmem:[#allocation9 + $0x30] ss:$12 sps:$4 sm:$0xff]   ;;  %8070 = vst [vmem:[#allocation31_spill] sm:$0xff] %v6563_v32 }
  0x58   :  { %442 = vmatprep.subr.bf16.mxu1 %v5640_v27  ;;  %v6543_v27 = vld [vmem:[#allocation9 + $0x1c] ss:$12 sps:$4 sm:$0xff]  }
  0x59   :  { %8067 = vst [vmem:[#allocation28_spill] sm:$0xff] %v6543_v27 }
  0x5a   :  { %5051 = vmatpush3.bf16.msra.mxu0 %v5649_v35  ;;  %v6615_v35 = vld [vmem:[#allocation11 + $0xac] ss:$12 sps:$4 sm:$0xff]  }
  0x5b   :  { %443 = vmatpush1.bf16.msra.mxu1 %v5638_v29  ;;  %5052 = vmatprep.subr.bf16.mxu0 %v7905_v0  ;;  %v6553_v29 = vld [vmem:[#allocation9 + $0x18] ss:$12 sps:$4 sm:$0xff]   ;;  %8073 = vst [vmem:[#allocation34_spill] sm:$0xff] %v6615_v35 }
  0x5c   :  { %444 = vmatprep.subr.bf16.mxu1 %v5644_v30  ;;  %8068 = vst [vmem:[#allocation29_spill] sm:$0xff] %v6553_v29  ;;  %v6557_v30 = vld [vmem:[#allocation9 + $0x4] ss:$12 sps:$4 sm:$0xff]  }
  0x5d   :  { %8069 = vst [vmem:[#allocation30_spill] sm:$0xff] %v6557_v30 }
  0x5e   :  { %5053 = vmatpush3.bf16.msra.mxu0 %v5653_v38 }
  0x5f   :  { %445 = vmatpush1.bf16.msra.mxu1 %v5642_v31  ;;  %5066 = vmatprep.subr.bf16.mxu0 %v7905_v0  ;;  %v6560_v31 = vld [vmem:[#allocation9 + $0x38] ss:$12 sps:$4 sm:$0xff]  }
  0x60   :  { %446 = vmatprep.subr.bf16.mxu1 %v5648_v33  ;;  %v6568_v33 = vld [vmem:[#allocation9 + $0x20] ss:$12 sps:$4 sm:$0xff]  }
  0x61   :  { %8071 = vst [vmem:[#allocation32_spill] sm:$0xff] %v6568_v33 }
  0x63   :  { %447 = vmatpush1.bf16.msra.mxu1 %v5646_v34  ;;  %v6575_v34 = vld [vmem:[#allocation9 + $0x8] ss:$12 sps:$4 sm:$0xff]  }
  0x64   :  { %448 = vmatprep.subr.bf16.mxu1 %v5652_v36  ;;  %8072 = vst [vmem:[#allocation33_spill] sm:$0xff] %v6575_v34  ;;  %v291_v36 = vlaneseq }
  0x67   :  { %449 = vmatpush1.bf16.msra.mxu1 %v5650_v37  ;;  %v292_v37 = vshrl.u32 %v291_v36, 7 }
  0x68   :  { %817 = vmatprep.subr.bf16.mxu1 %v6444_v39 }
  0x69   :  { %v6618_v38 = vsub.s32 0, %v292_v37 }
  0x6b   :  { %8074 = vst [vmem:[#allocation35_spill] sm:$0xff] %v6618_v38 }
 0x10a   :  { %v5032_v41 = vpop.f32.mrf.mxu1 }
 0x10b   :  { %v6472_v60 = vadd.f32 %v5032_v41, %v4531_v43  ;;  %v289_v41 = vld [vmem:[%s7890_s6] sm:$0x7] }
 0x10c   :  { %v209_v42 = vpop.f32.mrf.mxu1 }
 0x10d   :  { %v6454_v45 = vadd.f32 %v4531_v43, %v209_v42  ;;  %8064 = vst [vmem:[#allocation25_spill] sm:$0xff] %v6472_v60  ;;  %v250_v7 = vmax.f32 %v6472_v60, 0.0  ;;  %v4413_v10 = vmul.f32 %v6472_v60, %v6472_v60 }
 0x10e   :  { %v5033_v44 = vpop.f32.mrf.mxu1 }
 0x10f   :  { %8059 = vst [vmem:[#allocation20_spill] sm:$0xff] %v6454_v45  ;;  %v248_v49 = vmax.f32 %v6454_v45, 0.0  ;;  %v6464_v54 = vadd.f32 %v5033_v44, %v4531_v43  ;;  %v4411_v18 = vmul.f32 %v6454_v45, %v6454_v45 }
 0x110   :  { %v212_v46 = vpop.f32.mrf.mxu1 }
 0x111   :  { %v6456_v47 = vadd.f32 %v4531_v43, %v212_v46  ;;  %8062 = vst [vmem:[#allocation23_spill] sm:$0xff] %v6464_v54  ;;  %v251_v3 = vmax.f32 %v6464_v54, 0.0  ;;  %v4414_v14 = vmul.f32 %v6464_v54, %v6464_v54  ;;  %v6627_v46 = vsub.s32 1, %v292_v37 }
 0x112   :  { %v5036_v48 = vpop.f32.mrf.mxu1 }
 0x113   :  { %8060 = vst [vmem:[#allocation21_spill] sm:$0xff] %v6456_v47  ;;  %v249_v50 = vmax.f32 %v6456_v47, 0.0  ;;  %v6460_v51 = vadd.f32 %v5036_v48, %v4531_v43  ;;  %v255_v11 = vpack.c.bf16 %v251_v3, %v250_v7  ;;  %v4412_v20 = vmul.f32 %v6456_v47, %v6456_v47  ;;  %8076 = vst [vmem:[#allocation37_spill] sm:$0xff] %v6627_v46 }
 0x114   :  { %v225_v52 = vpop.f32.mrf.mxu1 }
 0x115   :  { %8061 = vst [vmem:[#allocation22_spill] sm:$0xff] %v6460_v51  ;;  %v254_v55 = vpack.c.bf16 %v249_v50, %v248_v49  ;;  %v6466_v56 = vadd.f32 %v4531_v43, %v225_v52  ;;  %v4417_v57 = vmul.f32 %v6460_v51, %v6460_v51  ;;  %v294_v49 = vrot.slane %v289_v41, %v6618_v38 }
 0x116   :  { %v5037_v59 = vpop.f32.mrf.mxu1 }
 0x117   :  { %8063 = vst [vmem:[#allocation24_spill] sm:$0xff] %v6466_v56  ;;  %v6474_v61 = vadd.f32 %v5037_v59, %v4531_v43  ;;  %4431 = vadd.xlane.f32.xlu0 %v4417_v57  ;;  %467 = vmatmul.mubr.bf16.vlgmr.msra.gmra.mxu1 %v254_v55  ;;  %v4415_v62 = vmul.f32 %v6466_v56, %v6466_v56  ;;  %v252_v15 = vmax.f32 %v6466_v56, 0.0 }
 0x118   :  { %5055 = vmatmul.mubr.bf16.vlgmr.msra.gmra.mxu0 %v254_v55  ;;  %818 = vmatpush1.bf16.msra.mxu1 %v6462_v53  ;;  %v228_v1 = vpop.f32.mrf.mxu1  ;;  %v298_v57 = vrot.slane %v289_v41, %v6627_v46 }
 0x119   :  { %8065 = vst [vmem:[#allocation26_spill] sm:$0xff] %v6474_v61  ;;  %v6484_v4 = vadd.f32 %v4531_v43, %v228_v1  ;;  %4427 = vadd.xlane.f32.xlu1 %v4415_v62  ;;  %819 = vmatprep.subr.bf16.mxu1 %v6470_v58  ;;  %v4418_v5 = vmul.f32 %v6474_v61, %v6474_v61  ;;  %v6623_v43 = vsub.s32 2, %v292_v37 }
 0x11a   :  { %476 = vmatprep.mubr.bf16.mxu1 %v7903_v40  ;;  %5058 = vmatprep.mubr.msk.bf16.mxu0 %vm6281_vm1, %v7905_v0 }
 0x11b   :  { %8066 = vst [vmem:[#allocation27_spill] sm:$0xff] %v6484_v4  ;;  %4433 = vadd.xlane.f32.xlu0 %v4418_v5  ;;  %v4416_v8 = vmul.f32 %v6484_v4, %v6484_v4  ;;  %5067 = vmatpush3.bf16.msra.mxu0 %v6478_v63  ;;  %v253_v13 = vmax.f32 %v6484_v4, 0.0  ;;  %8075 = vst [vmem:[#allocation36_spill] sm:$0xff] %v6623_v43  ;;  %v6631_v52 = vrot.slane %v289_v41, %v6623_v43 }
 0x11c   :  { %820 = vmatpush1.bf16.msra.mxu1 %v6481_v2  ;;  %5068 = vmatprep.subr.bf16.mxu0 %v7905_v0 }
 0x11d   :  { %4429 = vadd.xlane.f32.xlu1 %v4416_v8  ;;  %821 = vmatprep.subr.bf16.mxu1 %v6489_v6  ;;  %v256_v21 = vpack.c.bf16 %v253_v13, %v252_v15 }
 0x11f   :  { %4423 = vadd.xlane.f32.xlu0 %v4413_v10  ;;  %477 = vmatmul.mubr.bf16.gmra.mxu1 %v255_v11 }
 0x120   :  { %5059 = vmatmul.mubr.bf16.gmra.mxu0 %v255_v11  ;;  %822 = vmatpush1.bf16.msra.mxu1 %v6499_v9 }
 0x121   :  { %4425 = vadd.xlane.f32.xlu1 %v4414_v14  ;;  %823 = vmatprep.subr.bf16.mxu1 %v6505_v12 }
 0x122   :  { %486 = vmatprep.mubr.bf16.mxu1 %v7903_v40  ;;  %5062 = vmatprep.mubr.msk.bf16.mxu0 %vm6281_vm1, %v7905_v0 }
 0x123   :  { %4419 = vadd.xlane.f32.xlu0 %v4411_v18  ;;  %5069 = vmatpush3.bf16.msra.mxu0 %v6511_v16 }
 0x124   :  { %824 = vmatpush1.bf16.msra.mxu1 %v6514_v17  ;;  %5070 = vmatprep.subr.bf16.mxu0 %v7905_v0 }
 0x125   :  { %4421 = vadd.xlane.f32.xlu1 %v4412_v20  ;;  %825 = vmatprep.subr.bf16.mxu1 %v6519_v19 }
 0x127   :  { %487 = vmatmul.mubr.bf16.gmra.mxu1 %v256_v21  ;;  %5071 = vmatpush3.bf16.msra.mxu0 %v6527_v22 }
 0x128   :  { %5063 = vmatmul.mubr.bf16.gmra.mxu0 %v256_v21  ;;  %826 = vmatpush1.bf16.msra.mxu1 %v6530_v23 }
 0x129   :  { %827 = vmatprep.subr.bf16.mxu1 %v6534_v24  ;;  %849 = vmatprep.mubr.bf16.mxu1 %v7903_v40 }
 0x12a   :  { %5072 = vmatprep.subr.bf16.mxu0 %v7905_v0  ;;  %5082 = vmatprep.mubr.msk.bf16.mxu0 %vm6281_vm1, %v7905_v0 }
 0x12b   :  { %5073 = vmatpush3.bf16.msra.mxu0 %v6537_v25 }
 0x12c   :  { %828 = vmatpush1.bf16.msra.mxu1 %v6540_v26  ;;  %5074 = vmatprep.subr.bf16.mxu0 %v7905_v0 }
 0x12d   :  { %829 = vmatprep.subr.bf16.mxu1 %v6543_v27 }
 0x12f   :  { %5075 = vmatpush3.bf16.msra.mxu0 %v6550_v28 }
 0x130   :  { %830 = vmatpush1.bf16.msra.mxu1 %v6553_v29  ;;  %5076 = vmatprep.subr.bf16.mxu0 %v7905_v0 }
 0x131   :  { %831 = vmatprep.subr.bf16.mxu1 %v6557_v30 }
 0x133   :  { %5077 = vmatpush3.bf16.msra.mxu0 %v6560_v31 }
 0x134   :  { %832 = vmatpush1.bf16.msra.mxu1 %v6563_v32  ;;  %5078 = vmatprep.subr.bf16.mxu0 %v7905_v0 }
 0x135   :  { %923 = vmatprep.subr.bf16.mxu1 %v6444_v39 }
 0x137   :  { %850 = vmatmul.mubr.bf16.vlgmr.msra.gmra.mxu1 %v7903_v40  ;;  %5079 = vmatpush3.bf16.msra.mxu0 %v6568_v33 }
 0x138   :  { %5080 = vmatprep.subr.bf16.mxu0 %v7905_v0  ;;  %924 = vmatpush1.bf16.msra.mxu1 %v6462_v53 }
 0x139   :  { %925 = vmatprep.subr.bf16.mxu1 %v6470_v58  ;;  %955 = vmatprep.mubr.bf16.mxu1 %v7903_v40 }
 0x13b   :  { %5081 = vmatpush3.bf16.msra.mxu0 %v6575_v34 }
 0x13c   :  { %5086 = vmatprep.subr.bf16.mxu0 %v7905_v0  ;;  %926 = vmatpush1.bf16.msra.mxu1 %v6481_v2 }
 0x13d   :  { %927 = vmatprep.subr.bf16.mxu1 %v6489_v6 }
 0x13e   :  { %5083 = vmatmul.mubr.bf16.vlgmr.msra.gmra.mxu0 %v7903_v40 }
 0x13f   :  { %5087 = vmatpush3.bf16.msra.mxu0 %v6478_v63  ;;  %5102 = vmatprep.mubr.msk.bf16.mxu0 %vm6281_vm1, %v7905_v0 }
 0x140   :  { %5088 = vmatprep.subr.bf16.mxu0 %v7905_v0  ;;  %928 = vmatpush1.bf16.msra.mxu1 %v6499_v9 }
 0x141   :  { %929 = vmatprep.subr.bf16.mxu1 %v6505_v12 }
 0x143   :  { %5089 = vmatpush3.bf16.msra.mxu0 %v6511_v16 }
 0x144   :  { %5090 = vmatprep.subr.bf16.mxu0 %v7905_v0  ;;  %930 = vmatpush1.bf16.msra.mxu1 %v6514_v17 }
 0x145   :  { %931 = vmatprep.subr.bf16.mxu1 %v6519_v19 }
 0x147   :  { %5091 = vmatpush3.bf16.msra.mxu0 %v6527_v22 }
 0x148   :  { %5092 = vmatprep.subr.bf16.mxu0 %v7905_v0  ;;  %932 = vmatpush1.bf16.msra.mxu1 %v6530_v23 }
 0x149   :  { %933 = vmatprep.subr.bf16.mxu1 %v6534_v24 }
 0x14b   :  { %5093 = vmatpush3.bf16.msra.mxu0 %v6537_v25 }
 0x14c   :  { %5094 = vmatprep.subr.bf16.mxu0 %v7905_v0  ;;  %934 = vmatpush1.bf16.msra.mxu1 %v6540_v26 }
 0x14d   :  { %935 = vmatprep.subr.bf16.mxu1 %v6543_v27 }
 0x14f   :  { %5095 = vmatpush3.bf16.msra.mxu0 %v6550_v28 }
 0x150   :  { %5096 = vmatprep.subr.bf16.mxu0 %v7905_v0  ;;  %936 = vmatpush1.bf16.msra.mxu1 %v6553_v29 }
 0x151   :  { %937 = vmatprep.subr.bf16.mxu1 %v6557_v30 }
 0x153   :  { %5097 = vmatpush3.bf16.msra.mxu0 %v6560_v31 }
 0x154   :  { %5098 = vmatprep.subr.bf16.mxu0 %v7905_v0  ;;  %938 = vmatpush1.bf16.msra.mxu1 %v6563_v32 }
 0x155   :  { %1185 = vmatprep.subr.bf16.mxu1 %v6615_v35 }
 0x157   :  { %5099 = vmatpush3.bf16.msra.mxu0 %v6568_v33 }
 0x158   :  { %5100 = vmatprep.subr.bf16.mxu0 %v7905_v0 }
 0x15b   :  { %5101 = vmatpush3.bf16.msra.mxu0 %v6575_v34 }
 0x15c   :  { %5106 = vmatprep.subr.bf16.mxu0 %v7905_v0 }
 0x1d7   :  { %v468_v42 = vpop.f32.mrf.mxu1 }
 0x1d8   :  { %v6625_v44 = vpop.f32.mrf.mxu0 }
 0x1d9   :  { %v470_v48 = vpop.f32.mrf.mxu1 }
 0x1da   :  { %v5056_v50 = vpop.f32.mrf.mxu0 }
 0x1db   :  { %v472_v55 = vpop.f32.mrf.mxu1 }
 0x1dc   :  { %v6634_v59 = vadd.f32 %v472_v55, %v294_v49  ;;  %v534_v62 = vpop.f32.mrf.mxu0 }
 0x1dd   :  { %v6637_v1 = vadd.f32 %v534_v62, %v6631_v52  ;;  %v474_v3 = vpop.f32.mrf.mxu1 }
 0x1de   :  { %v6639_v5 = vadd.f32 %v474_v3, %v298_v57  ;;  %v5057_v7 = vpop.f32.mrf.mxu0 }
 0x1df   :  { %v478_v8 = vpop.f32.mrf.mxu1 }
 0x1e0   :  { %v6641_v10 = vadd.f32 %v478_v8, %v294_v49  ;;  %v539_v11 = vpop.f32.mrf.mxu0 }
 0x1e1   :  { %v6644_v13 = vadd.f32 %v539_v11, %v6631_v52  ;;  %v480_v14 = vpop.f32.mrf.mxu1 }
 0x1e2   :  { %8077 = vst [vmem:[#allocation38_spill] sm:$0xff] %v6641_v10  ;;  %v6646_v15 = vadd.f32 %v480_v14, %v298_v57  ;;  %v5060_v18 = vpop.f32.mrf.mxu0  ;;  %v6774_v10 = vld [vmem:[#allocation12 + $0x94] ss:$12 sps:$4 sm:$0xff]  }
 0x1e3   :  { %8078 = vst [vmem:[#allocation39_spill] sm:$0xff] %v6644_v13  ;;  %v482_v20 = vpop.f32.mrf.mxu1  ;;  %v6767_v13 = vld [vmem:[#allocation12 + $0xac] ss:$12 sps:$4 sm:$0xff]   ;;  %8098 = vst [vmem:[#allocation57_spill] sm:$0xff] %v6774_v10 }
 0x1e4   :  { %8079 = vst [vmem:[#allocation40_spill] sm:$0xff] %v6646_v15  ;;  %v6648_v21 = vadd.f32 %v482_v20, %v294_v49  ;;  %v542_v36 = vpop.f32.mrf.mxu0  ;;  %8096 = vst [vmem:[#allocation55_spill] sm:$0xff] %v6767_v13  ;;  %v6771_v15 = vld [vmem:[#allocation12 + $0xa8] ss:$12 sps:$4 sm:$0xff]  }
 0x1e5   :  { %v6651_v37 = vadd.f32 %v542_v36, %v6631_v52  ;;  %v484_v41 = vpop.f32.mrf.mxu1  ;;  %8097 = vst [vmem:[#allocation56_spill] sm:$0xff] %v6771_v15 }
 0x1e6   :  { %8080 = vst [vmem:[#allocation41_spill] sm:$0xff] %v6648_v21  ;;  %v6653_v50 = vadd.f32 %v484_v41, %v298_v57  ;;  %v5061_v55 = vpop.f32.mrf.mxu0  ;;  %v6763_v21 = vld [vmem:[#allocation11 + $0x8] ss:$12 sps:$4 sm:$0xff]  }
 0x1e7   :  { %8081 = vst [vmem:[#allocation42_spill] sm:$0xff] %v6651_v37  ;;  %v488_v62 = vpop.f32.mrf.mxu1  ;;  %v6757_v37 = vld [vmem:[#allocation11 + $0x4] ss:$12 sps:$4 sm:$0xff]   ;;  %8095 = vst [vmem:[#allocation54_spill] sm:$0xff] %v6763_v21 }
 0x1e8   :  { %8082 = vst [vmem:[#allocation43_spill] sm:$0xff] %v6653_v50  ;;  %v6655_v3 = vadd.f32 %v488_v62, %v294_v49  ;;  %v547_v7 = vpop.f32.mrf.mxu0  ;;  %8093 = vst [vmem:[#allocation52_spill] sm:$0xff] %v6757_v37  ;;  %v6761_v50 = vld [vmem:[#allocation11] ss:$12 sps:$4 sm:$0xff]  }
 0x1e9   :  { %v6658_v8 = vadd.f32 %v547_v7, %v6631_v52  ;;  %v490_v11 = vpop.f32.mrf.mxu1  ;;  %v589_v7 = vld [vmem:[%s7891_s7] sm:$0x7]  ;;  %8094 = vst [vmem:[#allocation53_spill] sm:$0xff] %v6761_v50 }
 0x1ea   :  { %8083 = vst [vmem:[#allocation44_spill] sm:$0xff] %v6655_v3  ;;  %v6660_v14 = vadd.f32 %v490_v11, %v298_v57  ;;  %v5064_v18 = vpop.f32.mrf.mxu0  ;;  %v6673_v45 = vrot.slane %v589_v7, %v6618_v38  ;;  %v6676_v11 = vrot.slane %v589_v7, %v6627_v46 }
 0x1eb   :  { %8084 = vst [vmem:[#allocation45_spill] sm:$0xff] %v6658_v8  ;;  %v492_v20 = vpop.f32.mrf.mxu1 }
 0x1ec   :  { %8085 = vst [vmem:[#allocation46_spill] sm:$0xff] %v6660_v14  ;;  %v6662_v40 = vadd.f32 %v492_v20, %v294_v49  ;;  %v550_v36 = vpop.f32.mrf.mxu0  ;;  %8089 = vst [vmem:[#allocation50_spill] sm:$0xff] %v6673_v45  ;;  %v469_v20 = vadd.f32 %v468_v42, %v294_v49 }
 0x1ed   :  { %v6665_v0 = vadd.f32 %v550_v36, %v6631_v52  ;;  %v494_v41 = vpop.f32.mrf.mxu1  ;;  %8090 = vst [vmem:[#allocation51_spill] sm:$0xff] %v6676_v11 }
 0x1ee   :  { %8086 = vst [vmem:[#allocation47_spill] sm:$0xff] %v6662_v40  ;;  %v6667_v55 = vadd.f32 %v494_v41, %v298_v57  ;;  %v5065_v62 = vpop.f32.mrf.mxu0 }
 0x1ef   :  { %8087 = vst [vmem:[#allocation48_spill] sm:$0xff] %v6665_v0  ;;  %v471_v62 = vadd.f32 %v470_v48, %v298_v57 }
 0x1f0   :  { %8088 = vst [vmem:[#allocation49_spill] sm:$0xff] %v6667_v55 }
 0x1f7   :  { %v851_v18 = vpop.f32.mrf.mxu1 }
 0x1f8   :  { %v852_v47 = vadd.f32 %v851_v18, %v6673_v45  ;;  %v6690_v18 = vld [vmem:[#allocation11 + $0xb0] ss:$12 sps:$4 sm:$0xff]  }
 0x1f9   :  { %v853_v36 = vpop.f32.mrf.mxu1 }
 0x1fa   :  { %v898_v60 = vadd.f32 %v852_v47, %v469_v20  ;;  %v854_v41 = vadd.f32 %v853_v36, %v6676_v11  ;;  %v6681_v47 = vrot.slane %v589_v7, %v6623_v43  ;;  %v6688_v7 = vld [vmem:[#allocation11 + $0xa8] ss:$12 sps:$4 sm:$0xff]   ;;  %v8091_v36 = vmov 0.0   ;;  %v6777_v43 = vld [vmem:[#allocation12 + $0xb0] ss:$12 sps:$4 sm:$0xff]  }
 0x1fb   :  { %v855_v54 = vpop.f32.mrf.mxu1  ;;  %v6694_v20 = vld [vmem:[#allocation11 + $0x94] ss:$12 sps:$4 sm:$0xff]   ;;  %8099 = vst [vmem:[#allocation58_spill] sm:$0xff] %v6777_v43 }
 0x1fc   :  { %v899_v56 = vsub.f32 0.0, %v898_v60  ;;  %v905_v61 = vadd.f32 %v854_v41, %v471_v62  ;;  %v6704_v41 = vld [vmem:[#allocation11 + $0x7c] ss:$12 sps:$4 sm:$0xff]   ;;  %v8092_v62 = vmov 0  }
 0x1fd   :  { %v856_v4 = vpop.f32.mrf.mxu1 }
 0x1fe   :  { %v900_v51 = vmul.f32 1.442695, %v899_v56  ;;  %v892_v0 = vpop.f32.mrf.mxu0  ;;  %v906_v40 = vsub.f32 0.0, %v905_v61 }
 0x1ff   :  { %v893_v60 = vadd.f32 %v892_v0, %v6681_v47 }
 0x200   :  { %5910 = vpow2.f32 %v900_v51  ;;  %v5084_v55 = vpop.f32.mrf.mxu0  ;;  %v907_v3 = vmul.f32 1.442695, %v906_v40  ;;  %v532_v51 = vadd.f32 %v6625_v44, %v6631_v52  ;;  %v6698_v44 = vld [vmem:[#allocation11 + $0x90] ss:$12 sps:$4 sm:$0xff]   ;;  %v6700_v52 = vld [vmem:[#allocation11 + $0x98] ss:$12 sps:$4 sm:$0xff]  }
 0x202   :  { %v895_v8 = vpop.f32.mrf.mxu0  ;;  %5912 = vpow2.f32 %v907_v3 }
 0x204   :  { %v5085_v14 = vpop.f32.mrf.mxu0 }
 0x20d   :  { %v5911_v42 = vpop.eup %5910 }
 0x20e   :  { %v902_v49 = vadd.f32 1.0, %v5911_v42  ;;  %v6711_v42 = vld [vmem:[#allocation11 + $0x78] ss:$12 sps:$4 sm:$0xff]  }
 0x20f   :  { %v5913_v54 = vpop.eup %5912 }
 0x210   :  { %5914 = vrcp.f32 %v902_v49  ;;  %v909_v48 = vadd.f32 1.0, %v5913_v54  ;;  %v6713_v49 = vld [vmem:[#allocation11 + $0x80] ss:$12 sps:$4 sm:$0xff]   ;;  %v6717_v54 = vld [vmem:[#allocation11 + $0x64] ss:$12 sps:$4 sm:$0xff]  }
 0x212   :  { %5916 = vrcp.f32 %v909_v48  ;;  %v6721_v48 = vld [vmem:[#allocation11 + $0x60] ss:$12 sps:$4 sm:$0xff]  }
 0x21d   :  { %v5915_v56 = vpop.eup %5914 }
 0x21e   :  { %v912_v61 = vmul.f32 %v5915_v56, %v893_v60  ;;  %v6723_v60 = vld [vmem:[#allocation11 + $0x68] ss:$12 sps:$4 sm:$0xff]   ;;  %v6727_v56 = vld [vmem:[#allocation11 + $0x4c] ss:$12 sps:$4 sm:$0xff]  }
 0x21f   :  { %v5917_v40 = vpop.eup %5916 }
 0x220   :  { %v913_v4 = vadd.f32 %v912_v61, %v532_v51  ;;  %v915_v57 = vsub.f32 1.0, %v5917_v40  ;;  %v917_v14 = vmul.f32 0.0, %v5917_v40  ;;  %v6731_v51 = vld [vmem:[#allocation11 + $0x48] ss:$12 sps:$4 sm:$0xff]   ;;  %v6733_v61 = vld [vmem:[#allocation11 + $0x50] ss:$12 sps:$4 sm:$0xff]  }
 0x221   :  { %v6741_v40 = vld [vmem:[#allocation11 + $0x30] ss:$12 sps:$4 sm:$0xff]  }
 0x222   :  { %5918 = vtanh.f32 %v913_v4  ;;  %v6737_v4 = vld [vmem:[#allocation11 + $0x34] ss:$12 sps:$4 sm:$0xff]  }
 0x22f   :  { %v5919_v3 = vpop.eup %5918 }
 0x230   :  { %v916_v8 = vmul.f32 %v5919_v3, %v915_v57  ;;  %v6743_v57 = vld [vmem:[#allocation11 + $0x38] ss:$12 sps:$4 sm:$0xff]   ;;  %v6747_v3 = vld [vmem:[#allocation11 + $0x1c] ss:$12 sps:$4 sm:$0xff]  }
 0x232   :  { %v6686_v55 = vadd.f32 %v917_v14, %v916_v8  ;;  %v6751_v8 = vld [vmem:[#allocation11 + $0x18] ss:$12 sps:$4 sm:$0xff]   ;;  %v6753_v14 = vld [vmem:[#allocation11 + $0x20] ss:$12 sps:$4 sm:$0xff]  }
 0x234   :  { %v922_v0 = vpack.c.bf16 %v6686_v55, %v6686_v55 }
 0x236   :  { %956 = vmatmul.mubr.bf16.vlgmr.msra.gmra.mxu1 %v922_v0  ;;  %5103 = vmatmul.mubr.bf16.vlgmr.msra.gmra.mxu0 %v922_v0 }
 0x237   :  { %1186 = vmatpush1.bf16.msra.mxu1 %v6688_v7  ;;  %5107 = vmatpush3.bf16.msra.mxu0 %v6690_v18 }
 0x238   :  { %1187 = vmatprep.subr.bf16.mxu1 %v6694_v20  ;;  %5108 = vmatprep.subr.bf16.mxu0 %v8091_v36 }
 0x239   :  { %1217 = vmatprep.mubr.bf16.mxu1 %v8092_v62  ;;  %5122 = vmatprep.mubr.msk.bf16.mxu0 %vm6281_vm1, %v8091_v36 }
 0x23b   :  { %1188 = vmatpush1.bf16.msra.mxu1 %v6698_v44  ;;  %5109 = vmatpush3.bf16.msra.mxu0 %v6700_v52 }
 0x23c   :  { %1189 = vmatprep.subr.bf16.mxu1 %v6704_v41  ;;  %5110 = vmatprep.subr.bf16.mxu0 %v8091_v36 }
 0x23f   :  { %1190 = vmatpush1.bf16.msra.mxu1 %v6711_v42  ;;  %5111 = vmatpush3.bf16.msra.mxu0 %v6713_v49 }
 0x240   :  { %1191 = vmatprep.subr.bf16.mxu1 %v6717_v54  ;;  %5112 = vmatprep.subr.bf16.mxu0 %v8091_v36 }
 0x243   :  { %1192 = vmatpush1.bf16.msra.mxu1 %v6721_v48  ;;  %5113 = vmatpush3.bf16.msra.mxu0 %v6723_v60 }
 0x244   :  { %1193 = vmatprep.subr.bf16.mxu1 %v6727_v56  ;;  %5114 = vmatprep.subr.bf16.mxu0 %v8091_v36 }
 0x247   :  { %1194 = vmatpush1.bf16.msra.mxu1 %v6731_v51  ;;  %5115 = vmatpush3.bf16.msra.mxu0 %v6733_v61 }
 0x248   :  { %1195 = vmatprep.subr.bf16.mxu1 %v6737_v4  ;;  %5116 = vmatprep.subr.bf16.mxu0 %v8091_v36 }
 0x24b   :  { %1196 = vmatpush1.bf16.msra.mxu1 %v6741_v40  ;;  %5117 = vmatpush3.bf16.msra.mxu0 %v6743_v57 }
 0x24c   :  { %1197 = vmatprep.subr.bf16.mxu1 %v6747_v3  ;;  %5118 = vmatprep.subr.bf16.mxu0 %v8091_v36 }
 0x24f   :  { %1198 = vmatpush1.bf16.msra.mxu1 %v6751_v8  ;;  %5119 = vmatpush3.bf16.msra.mxu0 %v6753_v14 }
 0x250   :  { %1199 = vmatprep.subr.bf16.mxu1 %v6757_v37  ;;  %5120 = vmatprep.subr.bf16.mxu0 %v8091_v36  ;;  %v6780_v37 = vld [vmem:[#allocation12 + $0x90] ss:$12 sps:$4 sm:$0xff]  }
 0x251   :  { %8100 = vst [vmem:[#allocation59_spill] sm:$0xff] %v6780_v37 }
 0x253   :  { %1200 = vmatpush1.bf16.msra.mxu1 %v6761_v50  ;;  %5121 = vmatpush3.bf16.msra.mxu0 %v6763_v21  ;;  %v6784_v21 = vld [vmem:[#allocation12 + $0x7c] ss:$12 sps:$4 sm:$0xff]   ;;  %v6806_v50 = vld [vmem:[#allocation12 + $0x4c] ss:$12 sps:$4 sm:$0xff]  }
 0x254   :  { %1426 = vmatprep.subr.bf16.mxu1 %v6767_v13  ;;  %5126 = vmatprep.subr.bf16.mxu0 %v8091_v36  ;;  %8101 = vst [vmem:[#allocation60_spill] sm:$0xff] %v6784_v21  ;;  %v6787_v13 = vld [vmem:[#allocation12 + $0x98] ss:$12 sps:$4 sm:$0xff]   ;;  %8107 = vst [vmem:[#allocation66_spill] sm:$0xff] %v6806_v50 }
 0x255   :  { %8102 = vst [vmem:[#allocation61_spill] sm:$0xff] %v6787_v13 }
 0x256   :  { %1218 = vmatmul.mubr.bf16.vlgmr.msra.gmra.mxu1 %v922_v0  ;;  %5123 = vmatmul.mubr.bf16.vlgmr.msra.gmra.mxu0 %v922_v0  ;;  %v6793_v0 = vld [vmem:[#allocation12 + $0x78] ss:$12 sps:$4 sm:$0xff]  }
 0x257   :  { %1427 = vmatpush1.bf16.msra.mxu1 %v6771_v15  ;;  %1458 = vmatprep.mubr.bf16.mxu1 %v8092_v62  ;;  %8103 = vst [vmem:[#allocation62_spill] sm:$0xff] %v6793_v0  ;;  %v6796_v15 = vld [vmem:[#allocation12 + $0x64] ss:$12 sps:$4 sm:$0xff]  }
 0x258   :  { %1428 = vmatprep.subr.bf16.mxu1 %v6774_v10  ;;  %5127 = vmatpush3.bf16.msra.mxu0 %v6777_v43  ;;  %8104 = vst [vmem:[#allocation63_spill] sm:$0xff] %v6796_v15  ;;  %v6799_v10 = vld [vmem:[#allocation12 + $0x80] ss:$12 sps:$4 sm:$0xff]  }
 0x259   :  { %5128 = vmatprep.subr.bf16.mxu0 %v8091_v36  ;;  %5142 = vmatprep.mubr.msk.bf16.mxu0 %vm6281_vm1, %v8091_v36  ;;  %8105 = vst [vmem:[#allocation64_spill] sm:$0xff] %v6799_v10  ;;  %v6803_v43 = vld [vmem:[#allocation12 + $0x60] ss:$12 sps:$4 sm:$0xff]  }
 0x25a   :  { %8106 = vst [vmem:[#allocation65_spill] sm:$0xff] %v6803_v43 }
 0x25b   :  { %1429 = vmatpush1.bf16.msra.mxu1 %v6780_v37  ;;  %v6809_v37 = vld [vmem:[#allocation12 + $0x68] ss:$12 sps:$4 sm:$0xff]  }
 0x25c   :  { %1430 = vmatprep.subr.bf16.mxu1 %v6784_v21  ;;  %5129 = vmatpush3.bf16.msra.mxu0 %v6787_v13  ;;  %8108 = vst [vmem:[#allocation67_spill] sm:$0xff] %v6809_v37  ;;  %v6813_v21 = vld [vmem:[#allocation12 + $0x48] ss:$12 sps:$4 sm:$0xff]  }
 0x25d   :  { %5130 = vmatprep.subr.bf16.mxu0 %v8091_v36  ;;  %8109 = vst [vmem:[#allocation68_spill] sm:$0xff] %v6813_v21  ;;  %v6816_v13 = vld [vmem:[#allocation12 + $0x34] ss:$12 sps:$4 sm:$0xff]  }
 0x25e   :  { %8110 = vst [vmem:[#allocation69_spill] sm:$0xff] %v6816_v13 }
 0x25f   :  { %1431 = vmatpush1.bf16.msra.mxu1 %v6793_v0  ;;  %v6819_v0 = vld [vmem:[#allocation12 + $0x50] ss:$12 sps:$4 sm:$0xff]  }
 0x260   :  { %1432 = vmatprep.subr.bf16.mxu1 %v6796_v15  ;;  %5131 = vmatpush3.bf16.msra.mxu0 %v6799_v10  ;;  %8111 = vst [vmem:[#allocation70_spill] sm:$0xff] %v6819_v0  ;;  %v6823_v15 = vld [vmem:[#allocation12 + $0x30] ss:$12 sps:$4 sm:$0xff]  }
 0x261   :  { %5132 = vmatprep.subr.bf16.mxu0 %v8091_v36  ;;  %8112 = vst [vmem:[#allocation71_spill] sm:$0xff] %v6823_v15  ;;  %v6826_v10 = vld [vmem:[#allocation12 + $0x1c] ss:$12 sps:$4 sm:$0xff]  }
 0x262   :  { %8113 = vst [vmem:[#allocation72_spill] sm:$0xff] %v6826_v10 }
 0x263   :  { %1433 = vmatpush1.bf16.msra.mxu1 %v6803_v43  ;;  %v6829_v43 = vld [vmem:[#allocation12 + $0x38] ss:$12 sps:$4 sm:$0xff]  }
 0x264   :  { %1434 = vmatprep.subr.bf16.mxu1 %v6806_v50  ;;  %5133 = vmatpush3.bf16.msra.mxu0 %v6809_v37  ;;  %8114 = vst [vmem:[#allocation73_spill] sm:$0xff] %v6829_v43  ;;  %v6833_v50 = vld [vmem:[#allocation12 + $0x18] ss:$12 sps:$4 sm:$0xff]  }
 0x265   :  { %5134 = vmatprep.subr.bf16.mxu0 %v8091_v36  ;;  %v6836_v37 = vld [vmem:[#allocation12 + $0x4] ss:$12 sps:$4 sm:$0xff]  }
 0x266   :  { %8115 = vst [vmem:[#allocation74_spill] sm:$0xff] %v6836_v37 }
 0x267   :  { %1435 = vmatpush1.bf16.msra.mxu1 %v6813_v21  ;;  %v6839_v21 = vld [vmem:[#allocation12 + $0x20] ss:$12 sps:$4 sm:$0xff]  }
 0x268   :  { %1436 = vmatprep.subr.bf16.mxu1 %v6816_v13  ;;  %5135 = vmatpush3.bf16.msra.mxu0 %v6819_v0  ;;  %8116 = vst [vmem:[#allocation75_spill] sm:$0xff] %v6839_v21  ;;  %v6843_v13 = vld [vmem:[#allocation12] ss:$12 sps:$4 sm:$0xff]  }
 0x269   :  { %5136 = vmatprep.subr.bf16.mxu0 %v8091_v36  ;;  %8117 = vst [vmem:[#allocation76_spill] sm:$0xff] %v6843_v13 }
 0x26b   :  { %1437 = vmatpush1.bf16.msra.mxu1 %v6823_v15  ;;  %v6847_v15 = vld [vmem:[#allocation12 + $0x8] ss:$12 sps:$4 sm:$0xff]  }
 0x26c   :  { %1438 = vmatprep.subr.bf16.mxu1 %v6826_v10  ;;  %5137 = vmatpush3.bf16.msra.mxu0 %v6829_v43  ;;  %8118 = vst [vmem:[#allocation77_spill] sm:$0xff] %v6847_v15 }
 0x26d   :  { %5138 = vmatprep.subr.bf16.mxu0 %v8091_v36 }
 0x26f   :  { %1439 = vmatpush1.bf16.msra.mxu1 %v6833_v50 }
 0x270   :  { %1440 = vmatprep.subr.bf16.mxu1 %v6836_v37  ;;  %5139 = vmatpush3.bf16.msra.mxu0 %v6839_v21 }
 0x271   :  { %5140 = vmatprep.subr.bf16.mxu0 %v8091_v36 }
 0x273   :  { %1441 = vmatpush1.bf16.msra.mxu1 %v6843_v13 }
 0x274   :  { %5141 = vmatpush3.bf16.msra.mxu0 %v6847_v15  ;;  %1532 = vmatprep.subr.bf16.mxu1 %v6444_v39 }
 0x275   :  { %5146 = vmatprep.subr.bf16.mxu0 %v8091_v36 }
 0x276   :  { %1459 = vmatmul.mubr.bf16.vlgmr.msra.gmra.mxu1 %v8092_v62 }
 0x277   :  { %5143 = vmatmul.mubr.bf16.vlgmr.msra.gmra.mxu0 %v8092_v62  ;;  %1533 = vmatpush1.bf16.msra.mxu1 %v6462_v53 }
 0x278   :  { %5147 = vmatpush3.bf16.msra.mxu0 %v6478_v63  ;;  %1534 = vmatprep.subr.bf16.mxu1 %v6470_v58 }
 0x279   :  { %5148 = vmatprep.subr.bf16.mxu0 %v8091_v36  ;;  %1564 = vmatprep.mubr.bf16.mxu1 %v8092_v62 }
 0x27a   :  { %5162 = vmatprep.mubr.msk.bf16.mxu0 %vm6281_vm1, %v8091_v36 }
 0x27b   :  { %1535 = vmatpush1.bf16.msra.mxu1 %v6481_v2 }
 0x27c   :  { %5149 = vmatpush3.bf16.msra.mxu0 %v6511_v16  ;;  %1536 = vmatprep.subr.bf16.mxu1 %v6489_v6 }
 0x27d   :  { %5150 = vmatprep.subr.bf16.mxu0 %v8091_v36 }
 0x27f   :  { %1537 = vmatpush1.bf16.msra.mxu1 %v6499_v9 }
 0x280   :  { %5151 = vmatpush3.bf16.msra.mxu0 %v6527_v22  ;;  %1538 = vmatprep.subr.bf16.mxu1 %v6505_v12 }
 0x281   :  { %5152 = vmatprep.subr.bf16.mxu0 %v8091_v36 }
 0x283   :  { %1539 = vmatpush1.bf16.msra.mxu1 %v6514_v17 }
 0x284   :  { %5153 = vmatpush3.bf16.msra.mxu0 %v6537_v25  ;;  %1540 = vmatprep.subr.bf16.mxu1 %v6519_v19 }
 0x285   :  { %5154 = vmatprep.subr.bf16.mxu0 %v8091_v36 }
 0x287   :  { %1541 = vmatpush1.bf16.msra.mxu1 %v6530_v23 }
 0x288   :  { %5155 = vmatpush3.bf16.msra.mxu0 %v6550_v28  ;;  %1542 = vmatprep.subr.bf16.mxu1 %v6534_v24 }
 0x289   :  { %5156 = vmatprep.subr.bf16.mxu0 %v8091_v36 }
 0x28b   :  { %1543 = vmatpush1.bf16.msra.mxu1 %v6540_v26 }
 0x28c   :  { %5157 = vmatpush3.bf16.msra.mxu0 %v6560_v31  ;;  %1544 = vmatprep.subr.bf16.mxu1 %v6543_v27 }
 0x28d   :  { %5158 = vmatprep.subr.bf16.mxu0 %v8091_v36 }
 0x28f   :  { %1545 = vmatpush1.bf16.msra.mxu1 %v6553_v29 }
 0x290   :  { %5159 = vmatpush3.bf16.msra.mxu0 %v6568_v33  ;;  %1546 = vmatprep.subr.bf16.mxu1 %v6557_v30 }
 0x291   :  { %5160 = vmatprep.subr.bf16.mxu0 %v8091_v36 }
 0x293   :  { %1547 = vmatpush1.bf16.msra.mxu1 %v6563_v32 }
 0x294   :  { %5161 = vmatpush3.bf16.msra.mxu0 %v6575_v34  ;;  %1634 = vmatprep.subr.bf16.mxu1 %v6615_v35 }
 0x295   :  { %5166 = vmatprep.subr.bf16.mxu0 %v8091_v36 }
 0x2f6   :  { %v957_v39 = vpop.f32.mrf.mxu1  ;;  %v998_v53 = vpop.f32.mrf.mxu0 }
 0x2f7   :  { %v958_v58 = vadd.f32 %v957_v39, %v6673_v45 }
 0x2f8   :  { %v959_v63 = vpop.f32.mrf.mxu1  ;;  %v5104_v2 = vpop.f32.mrf.mxu0 }
 0x2f9   :  { %v1004_v6 = vadd.f32 %v958_v58, %v6634_v59  ;;  %v960_v9 = vadd.f32 %v959_v63, %v6676_v11 }
 0x2fa   :  { %v961_v12 = vpop.f32.mrf.mxu1  ;;  %v1001_v17 = vpop.f32.mrf.mxu0 }
 0x2fb   :  { %v1005_v19 = vsub.f32 0.0, %v1004_v6  ;;  %v1011_v35 = vadd.f32 %v960_v9, %v6639_v5 }
 0x2fc   :  { %v962_v32 = vpop.f32.mrf.mxu1  ;;  %v5105_v30 = vpop.f32.mrf.mxu0 }
 0x2fd   :  { %v1006_v34 = vmul.f32 1.442695, %v1005_v19  ;;  %v1012_v33 = vsub.f32 0.0, %v1011_v35  ;;  %v999_v30 = vadd.f32 %v998_v53, %v6681_v47  ;;  %v6908_v53 = vld [vmem:[%s7895_s11] sm:$0x7] }
 0x2ff   :  { %5920 = vpow2.f32 %v1006_v34  ;;  %v1013_v29 = vmul.f32 1.442695, %v1012_v33 }
 0x301   :  { %5922 = vpow2.f32 %v1013_v29 }
 0x30c   :  { %v5921_v27 = vpop.eup %5920 }
 0x30d   :  { %v1008_v39 = vadd.f32 1.0, %v5921_v27 }
 0x30e   :  { %v5923_v2 = vpop.eup %5922 }
 0x30f   :  { %5924 = vrcp.f32 %v1008_v39  ;;  %v1015_v12 = vadd.f32 1.0, %v5923_v2  ;;  %v6903_v2 = vld [vmem:[%s7894_s10] sm:$0x7] }
 0x311   :  { %5926 = vrcp.f32 %v1015_v12  ;;  %v6918_v12 = vrot.slane %v6908_v53, %v6618_v38 }
 0x316   :  { %v1219_v45 = vpop.f32.mrf.mxu1  ;;  %v6895_v59 = vpop.f32.mrf.mxu0 }
 0x318   :  { %v1221_v58 = vpop.f32.mrf.mxu1  ;;  %v5124_v63 = vpop.f32.mrf.mxu0 }
 0x31a   :  { %v1223_v6 = vpop.f32.mrf.mxu1  ;;  %v1263_v32 = vpop.f32.mrf.mxu0 }
 0x31b   :  { %v6928_v6 = vrot.slane %v6908_v53, %v6627_v46 }
 0x31c   :  { %v5925_v17 = vpop.eup %5924  ;;  %v1224_v5 = vpop.f32.mrf.mxu1 }
 0x31d   :  { %v5125_v34 = vpop.f32.mrf.mxu0  ;;  %v1018_v35 = vmul.f32 %v5925_v17, %v999_v30  ;;  %v6935_v17 = vrot.slane %v6903_v2, %v6627_v46 }
 0x31e   :  { %v5927_v27 = vpop.eup %5926 }
 0x31f   :  { %v1019_v29 = vadd.f32 %v1018_v35, %v6637_v1  ;;  %v1021_v33 = vsub.f32 1.0, %v5927_v27  ;;  %v1023_v39 = vmul.f32 %v5927_v27, %v6686_v55  ;;  %v6914_v1 = vrot.slane %v6903_v2, %v6618_v38 }
 0x321   :  { %5928 = vtanh.f32 %v1019_v29  ;;  %v1220_v30 = vadd.f32 %v1219_v45, %v6914_v1 }
 0x32e   :  { %v5929_v9 = vpop.eup %5928 }
 0x32f   :  { %v1022_v19 = vmul.f32 %v5929_v9, %v1021_v33  ;;  %v1222_v9 = vadd.f32 %v1221_v58, %v6935_v17 }
 0x331   :  { %v6910_v63 = vadd.f32 %v1023_v39, %v1022_v19 }
 0x333   :  { %v6922_v55 = vpack.c.bf16 %v6910_v63, %v6910_v63 }
 0x335   :  { %1565 = vmatmul.mubr.bf16.vlgmr.msra.gmra.mxu1 %v6922_v55  ;;  %5163 = vmatmul.mubr.bf16.vlgmr.msra.gmra.mxu0 %v6922_v55 }
 0x336   :  { %v1460_v32 = vpop.f32.mrf.mxu1  ;;  %1635 = vmatpush1.bf16.msra.mxu1 %v6688_v7  ;;  %5167 = vmatpush3.bf16.msra.mxu0 %v6690_v18 }
 0x337   :  { %v1461_v5 = vadd.f32 %v1460_v32, %v6918_v12  ;;  %1636 = vmatprep.subr.bf16.mxu1 %v6694_v20  ;;  %5168 = vmatprep.subr.bf16.mxu0 %v8091_v36  ;;  %v1501_v34 = vpop.f32.mrf.mxu0 }
 0x338   :  { %v1462_v35 = vpop.f32.mrf.mxu1  ;;  %1666 = vmatprep.mubr.bf16.mxu1 %v8092_v62  ;;  %5182 = vmatprep.mubr.msk.bf16.mxu0 %vm6281_vm1, %v8091_v36 }
 0x339   :  { %v1507_v29 = vadd.f32 %v1461_v5, %v1220_v30  ;;  %v1463_v45 = vadd.f32 %v1462_v35, %v6928_v6  ;;  %v5144_v27 = vpop.f32.mrf.mxu0  ;;  %v8119_v35 = vld [vmem:[#allocation52_spill] sm:$0xff] }
 0x33a   :  { %v1464_v33 = vpop.f32.mrf.mxu1  ;;  %1637 = vmatpush1.bf16.msra.mxu1 %v6698_v44  ;;  %5169 = vmatpush3.bf16.msra.mxu0 %v6700_v52  ;;  %v8122_v27 = vld [vmem:[#allocation55_spill] sm:$0xff] }
 0x33b   :  { %v1508_v19 = vsub.f32 0.0, %v1507_v29  ;;  %1638 = vmatprep.subr.bf16.mxu1 %v6704_v41  ;;  %5170 = vmatprep.subr.bf16.mxu0 %v8091_v36  ;;  %v1504_v39 = vpop.f32.mrf.mxu0  ;;  %v1514_v38 = vadd.f32 %v1463_v45, %v1222_v9  ;;  %v8120_v29 = vld [vmem:[#allocation53_spill] sm:$0xff]  ;;  %v8121_v45 = vld [vmem:[#allocation54_spill] sm:$0xff]  ;;  %v8123_v33 = vld [vmem:[#allocation36_spill] sm:$0xff] }
 0x33c   :  { %v1465_v32 = vpop.f32.mrf.mxu1  ;;  %v6975_v9 = vrot.slane %v6908_v53, %v8123_v33  ;;  %v8125_v39 = vld [vmem:[#allocation56_spill] sm:$0xff]  ;;  %v6988_v53 = vrot.slane %v6903_v2, %v8123_v33  ;;  %v8135_v33 = vld [vmem:[#allocation65_spill] sm:$0xff] }
 0x33d   :  { %v1509_v46 = vmul.f32 1.442695, %v1508_v19  ;;  %v5145_v30 = vpop.f32.mrf.mxu0  ;;  %v1515_v58 = vsub.f32 0.0, %v1514_v38  ;;  %v8126_v32 = vld [vmem:[#allocation58_spill] sm:$0xff]  ;;  %v8133_v2 = vld [vmem:[#allocation64_spill] sm:$0xff] }
 0x33e   :  { %1639 = vmatpush1.bf16.msra.mxu1 %v6711_v42  ;;  %5171 = vmatpush3.bf16.msra.mxu0 %v6713_v49  ;;  %8124 = vst [vmem:[#allocation52_spill] sm:$0xff] %v6975_v9  ;;  %v8127_v30 = vld [vmem:[#allocation57_spill] sm:$0xff]  ;;  %8128 = vst [vmem:[#allocation53_spill] sm:$0xff] %v6988_v53 }
 0x33f   :  { %5930 = vpow2.f32 %v1509_v46  ;;  %1640 = vmatprep.subr.bf16.mxu1 %v6717_v54  ;;  %5172 = vmatprep.subr.bf16.mxu0 %v8091_v36  ;;  %v1516_v5 = vmul.f32 1.442695, %v1515_v58 }
 0x341   :  { %5932 = vpow2.f32 %v1516_v5  ;;  %v8129_v5 = vld [vmem:[#allocation59_spill] sm:$0xff] }
 0x342   :  { %1641 = vmatpush1.bf16.msra.mxu1 %v6721_v48  ;;  %5173 = vmatpush3.bf16.msra.mxu0 %v6723_v60 }
 0x343   :  { %1642 = vmatprep.subr.bf16.mxu1 %v6727_v56  ;;  %5174 = vmatprep.subr.bf16.mxu0 %v8091_v36 }
 0x346   :  { %1643 = vmatpush1.bf16.msra.mxu1 %v6731_v51  ;;  %5175 = vmatpush3.bf16.msra.mxu0 %v6733_v61 }
 0x347   :  { %1644 = vmatprep.subr.bf16.mxu1 %v6737_v4  ;;  %5176 = vmatprep.subr.bf16.mxu0 %v8091_v36 }
 0x34a   :  { %1645 = vmatpush1.bf16.msra.mxu1 %v6741_v40  ;;  %5177 = vmatpush3.bf16.msra.mxu0 %v6743_v57 }
 0x34b   :  { %1646 = vmatprep.subr.bf16.mxu1 %v6747_v3  ;;  %5178 = vmatprep.subr.bf16.mxu0 %v8091_v36 }
 0x34c   :  { %v5931_v38 = vpop.eup %5930 }
 0x34d   :  { %v1511_v46 = vadd.f32 1.0, %v5931_v38  ;;  %v8130_v38 = vld [vmem:[#allocation61_spill] sm:$0xff] }
 0x34e   :  { %1647 = vmatpush1.bf16.msra.mxu1 %v6751_v8  ;;  %5179 = vmatpush3.bf16.msra.mxu0 %v6753_v14  ;;  %v5933_v19 = vpop.eup %5932 }
 0x34f   :  { %5934 = vrcp.f32 %v1511_v46  ;;  %1648 = vmatprep.subr.bf16.mxu1 %v8119_v35  ;;  %5180 = vmatprep.subr.bf16.mxu0 %v8091_v36  ;;  %v1518_v58 = vadd.f32 1.0, %v5933_v19  ;;  %v8131_v46 = vld [vmem:[#allocation60_spill] sm:$0xff] }
 0x351   :  { %5936 = vrcp.f32 %v1518_v58 }
 0x352   :  { %1649 = vmatpush1.bf16.msra.mxu1 %v8120_v29  ;;  %5181 = vmatpush3.bf16.msra.mxu0 %v8121_v45 }
 0x353   :  { %1716 = vmatprep.subr.bf16.mxu1 %v8122_v27  ;;  %5186 = vmatprep.subr.bf16.mxu0 %v8091_v36  ;;  %v8132_v27 = vld [vmem:[#allocation62_spill] sm:$0xff] }
 0x355   :  { %1667 = vmatmul.mubr.bf16.vlgmr.msra.gmra.mxu1 %v6922_v55  ;;  %5183 = vmatmul.mubr.bf16.vlgmr.msra.gmra.mxu0 %v6922_v55  ;;  %v1502_v55 = vadd.f32 %v1501_v34, %v6975_v9  ;;  %v8134_v34 = vld [vmem:[#allocation63_spill] sm:$0xff]  ;;  %v8137_v9 = vld [vmem:[#allocation66_spill] sm:$0xff] }
 0x356   :  { %1717 = vmatpush1.bf16.msra.mxu1 %v8125_v39  ;;  %5187 = vmatpush3.bf16.msra.mxu0 %v8126_v32  ;;  %v1261_v32 = vadd.f32 %v6895_v59, %v6988_v53  ;;  %v8138_v59 = vld [vmem:[#allocation68_spill] sm:$0xff] }
 0x357   :  { %1718 = vmatprep.subr.bf16.mxu1 %v8127_v30  ;;  %5188 = vmatprep.subr.bf16.mxu0 %v8091_v36 }
 0x358   :  { %1748 = vmatprep.mubr.bf16.mxu1 %v8092_v62  ;;  %5202 = vmatprep.mubr.msk.bf16.mxu0 %vm6281_vm1, %v8091_v36 }
 0x35a   :  { %1719 = vmatpush1.bf16.msra.mxu1 %v8129_v5  ;;  %5189 = vmatpush3.bf16.msra.mxu0 %v8130_v38 }
 0x35b   :  { %1720 = vmatprep.subr.bf16.mxu1 %v8131_v46  ;;  %5190 = vmatprep.subr.bf16.mxu0 %v8091_v36  ;;  %v8136_v46 = vld [vmem:[#allocation67_spill] sm:$0xff] }
 0x35c   :  { %v5935_v30 = vpop.eup %5934 }
 0x35d   :  { %v1521_v39 = vmul.f32 %v5935_v30, %v1502_v55  ;;  %v8139_v30 = vld [vmem:[#allocation69_spill] sm:$0xff] }
 0x35e   :  { %1721 = vmatpush1.bf16.msra.mxu1 %v8132_v27  ;;  %5191 = vmatpush3.bf16.msra.mxu0 %v8133_v2 }
 0x35f   :  { %v1522_v19 = vadd.f32 %v1521_v39, %v1261_v32  ;;  %1722 = vmatprep.subr.bf16.mxu1 %v8134_v34  ;;  %5192 = vmatprep.subr.bf16.mxu0 %v8091_v36  ;;  %v5937_v39 = vpop.eup %5936  ;;  %v8140_v32 = vld [vmem:[#allocation71_spill] sm:$0xff] }
 0x360   :  { %v1524_v58 = vsub.f32 1.0, %v5937_v39 }
 0x361   :  { %5938 = vtanh.f32 %v1522_v19 }
 0x362   :  { %1723 = vmatpush1.bf16.msra.mxu1 %v8135_v33  ;;  %5193 = vmatpush3.bf16.msra.mxu0 %v8136_v46 }
 0x363   :  { %1724 = vmatprep.subr.bf16.mxu1 %v8137_v9  ;;  %5194 = vmatprep.subr.bf16.mxu0 %v8091_v36 }
 0x366   :  { %1725 = vmatpush1.bf16.msra.mxu1 %v8138_v59  ;;  %5195 = vmatpush3.bf16.msra.mxu0 %v6819_v0 }
 0x367   :  { %1726 = vmatprep.subr.bf16.mxu1 %v8139_v30  ;;  %5196 = vmatprep.subr.bf16.mxu0 %v8091_v36  ;;  %v1526_v30 = vmul.f32 0.0, %v5937_v39  ;;  %v7033_v39 = vld [vmem:[#allocation9 + $0x94] ss:$12 sps:$4 sm:$0xff]  }
 0x368   :  { %8145 = vst [vmem:[#allocation64_spill] sm:$0xff] %v7033_v39 }
 0x36a   :  { %1727 = vmatpush1.bf16.msra.mxu1 %v8140_v32  ;;  %5197 = vmatpush3.bf16.msra.mxu0 %v6829_v43  ;;  %v7023_v43 = vld [vmem:[#allocation9 + $0xac] ss:$12 sps:$4 sm:$0xff]  }
 0x36b   :  { %1728 = vmatprep.subr.bf16.mxu1 %v6826_v10  ;;  %5198 = vmatprep.subr.bf16.mxu0 %v8091_v36  ;;  %8142 = vst [vmem:[#allocation59_spill] sm:$0xff] %v7023_v43 }
 0x36e   :  { %v5939_v55 = vpop.eup %5938  ;;  %1729 = vmatpush1.bf16.msra.mxu1 %v6833_v50  ;;  %5199 = vmatpush3.bf16.msra.mxu0 %v6839_v21 }
 0x36f   :  { %1730 = vmatprep.subr.bf16.mxu1 %v6836_v37  ;;  %5200 = vmatprep.subr.bf16.mxu0 %v8091_v36  ;;  %v1525_v19 = vmul.f32 %v5939_v55, %v1524_v58  ;;  %v7027_v37 = vld [vmem:[#allocation9 + $0xa8] ss:$12 sps:$4 sm:$0xff]   ;;  %v7048_v55 = vld [vmem:[#allocation9 + $0x78] ss:$12 sps:$4 sm:$0xff]  }
 0x370   :  { %8143 = vst [vmem:[#allocation61_spill] sm:$0xff] %v7027_v37  ;;  %v7044_v58 = vld [vmem:[#allocation9 + $0x7c] ss:$12 sps:$4 sm:$0xff]   ;;  %8148 = vst [vmem:[#allocation67_spill] sm:$0xff] %v7048_v55 }
 0x371   :  { %v7017_v0 = vadd.f32 %v1526_v30, %v1525_v19  ;;  %v7030_v30 = vld [vmem:[#allocation9 + $0xb0] ss:$12 sps:$4 sm:$0xff]   ;;  %8147 = vst [vmem:[#allocation65_spill] sm:$0xff] %v7044_v58 }
 0x372   :  { %1731 = vmatpush1.bf16.msra.mxu1 %v6843_v13  ;;  %5201 = vmatpush3.bf16.msra.mxu0 %v6847_v15  ;;  %8144 = vst [vmem:[#allocation62_spill] sm:$0xff] %v7030_v30  ;;  %v7052_v19 = vld [vmem:[#allocation9 + $0x64] ss:$12 sps:$4 sm:$0xff]  }
 0x373   :  { %8141 = vst [vmem:[#allocation54_spill] sm:$0xff] %v7017_v0  ;;  %v1715_v10 = vpack.c.bf16 %v7017_v0, %v7017_v0  ;;  %1822 = vmatprep.subr.bf16.mxu1 %v7023_v43  ;;  %5206 = vmatprep.subr.bf16.mxu0 %v8091_v36  ;;  %8149 = vst [vmem:[#allocation66_spill] sm:$0xff] %v7052_v19  ;;  %v8161_v15 = vld [vmem:[#allocation40_spill] sm:$0xff] }
 0x375   :  { %1749 = vmatmul.mubr.bf16.vlgmr.msra.gmra.mxu1 %v1715_v10  ;;  %5203 = vmatmul.mubr.bf16.vlgmr.msra.gmra.mxu0 %v1715_v10  ;;  %v7040_v10 = vld [vmem:[#allocation9 + $0x90] ss:$12 sps:$4 sm:$0xff]  }
 0x376   :  { %1823 = vmatpush1.bf16.msra.mxu1 %v7027_v37  ;;  %5207 = vmatpush3.bf16.msra.mxu0 %v7030_v30  ;;  %8146 = vst [vmem:[#allocation63_spill] sm:$0xff] %v7040_v10 }
 0x377   :  { %1824 = vmatprep.subr.bf16.mxu1 %v7033_v39  ;;  %5208 = vmatprep.subr.bf16.mxu0 %v8091_v36 }
 0x378   :  { %1854 = vmatprep.mubr.bf16.mxu1 %v8092_v62  ;;  %5222 = vmatprep.mubr.msk.bf16.mxu0 %vm6281_vm1, %v8091_v36 }
 0x37a   :  { %1825 = vmatpush1.bf16.msra.mxu1 %v7040_v10  ;;  %5209 = vmatpush3.bf16.msra.mxu0 %v6511_v16  ;;  %v7056_v10 = vld [vmem:[#allocation9 + $0x60] ss:$12 sps:$4 sm:$0xff]  }
 0x37b   :  { %1826 = vmatprep.subr.bf16.mxu1 %v7044_v58  ;;  %5210 = vmatprep.subr.bf16.mxu0 %v8091_v36  ;;  %8150 = vst [vmem:[#allocation68_spill] sm:$0xff] %v7056_v10  ;;  %v7060_v16 = vld [vmem:[#allocation9 + $0x4c] ss:$12 sps:$4 sm:$0xff]   ;;  %v8160_v58 = vld [vmem:[#allocation38_spill] sm:$0xff] }
 0x37c   :  { %8151 = vst [vmem:[#allocation71_spill] sm:$0xff] %v7060_v16 }
 0x37e   :  { %1827 = vmatpush1.bf16.msra.mxu1 %v7048_v55  ;;  %5211 = vmatpush3.bf16.msra.mxu0 %v6527_v22  ;;  %v8152_v22 = vld [vmem:[#allocation28_spill] sm:$0xff] }
 0x37f   :  { %1828 = vmatprep.subr.bf16.mxu1 %v7052_v19  ;;  %5212 = vmatprep.subr.bf16.mxu0 %v8091_v36 }
 0x382   :  { %1829 = vmatpush1.bf16.msra.mxu1 %v7056_v10  ;;  %5213 = vmatpush3.bf16.msra.mxu0 %v6537_v25  ;;  %v8153_v25 = vld [vmem:[#allocation29_spill] sm:$0xff]  ;;  %v8155_v10 = vld [vmem:[#allocation30_spill] sm:$0xff] }
 0x383   :  { %1830 = vmatprep.subr.bf16.mxu1 %v7060_v16  ;;  %5214 = vmatprep.subr.bf16.mxu0 %v8091_v36  ;;  %v8154_v16 = vld [vmem:[#allocation32_spill] sm:$0xff] }
 0x386   :  { %1831 = vmatpush1.bf16.msra.mxu1 %v6530_v23  ;;  %5215 = vmatpush3.bf16.msra.mxu0 %v6550_v28  ;;  %v8156_v23 = vld [vmem:[#allocation31_spill] sm:$0xff]  ;;  %v8158_v28 = vld [vmem:[#allocation34_spill] sm:$0xff] }
 0x387   :  { %1832 = vmatprep.subr.bf16.mxu1 %v6534_v24  ;;  %5216 = vmatprep.subr.bf16.mxu0 %v8091_v36  ;;  %v8157_v24 = vld [vmem:[#allocation33_spill] sm:$0xff] }
 0x38a   :  { %1833 = vmatpush1.bf16.msra.mxu1 %v6540_v26  ;;  %5217 = vmatpush3.bf16.msra.mxu0 %v6560_v31 }
 0x38b   :  { %1834 = vmatprep.subr.bf16.mxu1 %v8152_v22  ;;  %5218 = vmatprep.subr.bf16.mxu0 %v8091_v36  ;;  %v8159_v22 = vld [vmem:[#allocation50_spill] sm:$0xff] }
 0x38e   :  { %1835 = vmatpush1.bf16.msra.mxu1 %v8153_v25  ;;  %5219 = vmatpush3.bf16.msra.mxu0 %v8154_v16 }
 0x38f   :  { %1836 = vmatprep.subr.bf16.mxu1 %v8155_v10  ;;  %5220 = vmatprep.subr.bf16.mxu0 %v8091_v36 }
 0x392   :  { %1837 = vmatpush1.bf16.msra.mxu1 %v8156_v23  ;;  %5221 = vmatpush3.bf16.msra.mxu0 %v8157_v24 }
 0x393   :  { %1924 = vmatprep.subr.bf16.mxu1 %v8158_v28  ;;  %5226 = vmatprep.subr.bf16.mxu0 %v8091_v36 }
 0x3f5   :  { %v1566_v26 = vpop.f32.mrf.mxu1  ;;  %v1607_v31 = vpop.f32.mrf.mxu0 }
 0x3f6   :  { %v1567_v19 = vadd.f32 %v1566_v26, %v8159_v22 }
 0x3f7   :  { %v1568_v55 = vpop.f32.mrf.mxu1  ;;  %v5164_v25 = vpop.f32.mrf.mxu0 }
 0x3f8   :  { %v1613_v16 = vadd.f32 %v1567_v19, %v8160_v58  ;;  %v1569_v10 = vadd.f32 %v1568_v55, %v6676_v11 }
 0x3f9   :  { %v1570_v39 = vpop.f32.mrf.mxu1  ;;  %v1610_v30 = vpop.f32.mrf.mxu0 }
 0x3fa   :  { %v1614_v37 = vsub.f32 0.0, %v1613_v16  ;;  %v1620_v28 = vadd.f32 %v1569_v10, %v8161_v15 }
 0x3fb   :  { %v1571_v23 = vpop.f32.mrf.mxu1  ;;  %v5165_v43 = vpop.f32.mrf.mxu0 }
 0x3fc   :  { %v1615_v24 = vmul.f32 1.442695, %v1614_v37  ;;  %v1621_v13 = vsub.f32 0.0, %v1620_v28  ;;  %v1608_v43 = vadd.f32 %v1607_v31, %v6681_v47 }
 0x3fe   :  { %5940 = vpow2.f32 %v1615_v24  ;;  %v1622_v0 = vmul.f32 1.442695, %v1621_v13  ;;  %v8162_v13 = vld [vmem:[#allocation39_spill] sm:$0xff] }
 0x400   :  { %5942 = vpow2.f32 %v1622_v0 }
 0x40b   :  { %v5941_v21 = vpop.eup %5940 }
 0x40c   :  { %v1617_v26 = vadd.f32 1.0, %v5941_v21 }
 0x40d   :  { %v5943_v25 = vpop.eup %5942 }
 0x40e   :  { %5944 = vrcp.f32 %v1617_v26  ;;  %v1624_v30 = vadd.f32 1.0, %v5943_v25 }
 0x410   :  { %5946 = vrcp.f32 %v1624_v30 }
 0x415   :  { %v1668_v22 = vpop.f32.mrf.mxu1  ;;  %v7084_v58 = vpop.f32.mrf.mxu0 }
 0x416   :  { %v1669_v30 = vadd.f32 %v1668_v22, %v6914_v1 }
 0x417   :  { %v1670_v55 = vpop.f32.mrf.mxu1  ;;  %v5184_v39 = vpop.f32.mrf.mxu0 }
 0x419   :  { %v1672_v19 = vpop.f32.mrf.mxu1  ;;  %v1712_v16 = vpop.f32.mrf.mxu0 }
 0x41b   :  { %v5945_v37 = vpop.eup %5944  ;;  %v1673_v15 = vpop.f32.mrf.mxu1 }
 0x41c   :  { %v5185_v10 = vpop.f32.mrf.mxu0  ;;  %v1627_v23 = vmul.f32 %v5945_v37, %v1608_v43 }
 0x41d   :  { %v5947_v21 = vpop.eup %5946 }
 0x41e   :  { %v1628_v0 = vadd.f32 %v1627_v23, %v8162_v13  ;;  %v1630_v24 = vsub.f32 1.0, %v5947_v21  ;;  %v1632_v11 = vmul.f32 %v5947_v21, %v6910_v63  ;;  %v8178_v21 = vld [vmem:[#allocation59_spill] sm:$0xff] }
 0x420   :  { %5948 = vtanh.f32 %v1628_v0 }
 0x42d   :  { %v5949_v28 = vpop.eup %5948 }
 0x42e   :  { %v1631_v26 = vmul.f32 %v5949_v28, %v1630_v24  ;;  %v8180_v24 = vld [vmem:[#allocation62_spill] sm:$0xff]  ;;  %v8181_v28 = vld [vmem:[#allocation64_spill] sm:$0xff] }
 0x430   :  { %v7089_v39 = vadd.f32 %v1632_v11, %v1631_v26  ;;  %v8182_v26 = vld [vmem:[#allocation63_spill] sm:$0xff] }
 0x432   :  { %v1821_v25 = vpack.c.bf16 %v7089_v39, %v7089_v39 }
 0x434   :  { %1855 = vmatmul.mubr.bf16.vlgmr.msra.gmra.mxu1 %v1821_v25  ;;  %5223 = vmatmul.mubr.bf16.vlgmr.msra.gmra.mxu0 %v1821_v25 }
 0x435   :  { %v1750_v31 = vpop.f32.mrf.mxu1  ;;  %v7093_v19 = vpop.f32.mrf.mxu0  ;;  %1925 = vmatpush1.bf16.msra.mxu1 %v6688_v7  ;;  %5227 = vmatpush3.bf16.msra.mxu0 %v6690_v18 }
 0x436   :  { %v1751_v16 = vadd.f32 %v1750_v31, %v6918_v12  ;;  %1926 = vmatprep.subr.bf16.mxu1 %v6694_v20  ;;  %5228 = vmatprep.subr.bf16.mxu0 %v8091_v36  ;;  %v1671_v20 = vadd.f32 %v1670_v55, %v6935_v17  ;;  %v8177_v55 = vld [vmem:[#allocation77_spill] sm:$0xff] }
 0x437   :  { %v1752_v11 = vpop.f32.mrf.mxu1  ;;  %v5204_v63 = vpop.f32.mrf.mxu0  ;;  %1956 = vmatprep.mubr.bf16.mxu1 %v8092_v62  ;;  %5242 = vmatprep.mubr.msk.bf16.mxu0 %vm6281_vm1, %v8091_v36  ;;  %v8183_v31 = vld [vmem:[#allocation65_spill] sm:$0xff] }
 0x438   :  { %v1797_v43 = vadd.f32 %v1751_v16, %v1669_v30  ;;  %v1753_v7 = vadd.f32 %v1752_v11, %v6928_v6  ;;  %v7192_v30 = vld [vmem:[#allocation9 + $0x80] ss:$12 sps:$4 sm:$0xff]   ;;  %v8186_v11 = vld [vmem:[#allocation68_spill] sm:$0xff] }
 0x439   :  { %v1754_v37 = vpop.f32.mrf.mxu1  ;;  %v1794_v18 = vpop.f32.mrf.mxu0  ;;  %1927 = vmatpush1.bf16.msra.mxu1 %v6698_v44  ;;  %5229 = vmatpush3.bf16.msra.mxu0 %v6700_v52  ;;  %v8185_v16 = vld [vmem:[#allocation66_spill] sm:$0xff]  ;;  %v7198_v63 = vld [vmem:[#allocation9 + $0x68] ss:$12 sps:$4 sm:$0xff]  }
 0x43a   :  { %v1798_v22 = vsub.f32 0.0, %v1797_v43  ;;  %1928 = vmatprep.subr.bf16.mxu1 %v6704_v41  ;;  %5230 = vmatprep.subr.bf16.mxu0 %v8091_v36  ;;  %v1804_v13 = vadd.f32 %v1753_v7, %v1671_v20  ;;  %v8187_v43 = vld [vmem:[#allocation71_spill] sm:$0xff]  ;;  %v7206_v37 = vld [vmem:[#allocation9 + $0x50] ss:$12 sps:$4 sm:$0xff]   ;;  %v7209_v18 = vld [vmem:[#allocation9 + $0x34] ss:$12 sps:$4 sm:$0xff]  }
 0x43b   :  { %v1755_v15 = vpop.f32.mrf.mxu1  ;;  %v5205_v10 = vpop.f32.mrf.mxu0  ;;  %v7203_v7 = vld [vmem:[#allocation9 + $0x48] ss:$12 sps:$4 sm:$0xff]   ;;  %v7213_v20 = vld [vmem:[#allocation9 + $0x30] ss:$12 sps:$4 sm:$0xff]  }
 0x43c   :  { %v1799_v23 = vmul.f32 1.442695, %v1798_v22  ;;  %v1805_v44 = vsub.f32 0.0, %v1804_v13  ;;  %v7216_v22 = vld [vmem:[#allocation9 + $0x38] ss:$12 sps:$4 sm:$0xff]  }
 0x43d   :  { %1929 = vmatpush1.bf16.msra.mxu1 %v6711_v42  ;;  %5231 = vmatpush3.bf16.msra.mxu0 %v6713_v49  ;;  %v8163_v49 = vld [vmem:[#allocation55_spill] sm:$0xff]  ;;  %v7223_v10 = vld [vmem:[#allocation9 + $0x18] ss:$12 sps:$4 sm:$0xff]  }
 0x43e   :  { %5950 = vpow2.f32 %v1799_v23  ;;  %1930 = vmatprep.subr.bf16.mxu1 %v6717_v54  ;;  %5232 = vmatprep.subr.bf16.mxu0 %v8091_v36  ;;  %v1806_v52 = vmul.f32 1.442695, %v1805_v44  ;;  %v7219_v15 = vld [vmem:[#allocation9 + $0x1c] ss:$12 sps:$4 sm:$0xff]   ;;  %v7226_v23 = vld [vmem:[#allocation9 + $0x20] ss:$12 sps:$4 sm:$0xff]  }
 0x43f   :  { %v7229_v13 = vld [vmem:[#allocation9 + $0x4] ss:$12 sps:$4 sm:$0xff]   ;;  %v7233_v44 = vld [vmem:[#allocation9] ss:$12 sps:$4 sm:$0xff]  }
 0x440   :  { %5952 = vpow2.f32 %v1806_v52  ;;  %v7236_v52 = vld [vmem:[#allocation9 + $0x8] ss:$12 sps:$4 sm:$0xff]  }
 0x441   :  { %1931 = vmatpush1.bf16.msra.mxu1 %v6721_v48  ;;  %5233 = vmatpush3.bf16.msra.mxu0 %v6723_v60  ;;  %v8164_v48 = vld [vmem:[#allocation56_spill] sm:$0xff]  ;;  %v8165_v60 = vld [vmem:[#allocation58_spill] sm:$0xff] }
 0x442   :  { %1932 = vmatprep.subr.bf16.mxu1 %v6727_v56  ;;  %5234 = vmatprep.subr.bf16.mxu0 %v8091_v36  ;;  %v8166_v56 = vld [vmem:[#allocation57_spill] sm:$0xff] }
 0x445   :  { %1933 = vmatpush1.bf16.msra.mxu1 %v6731_v51  ;;  %5235 = vmatpush3.bf16.msra.mxu0 %v6733_v61  ;;  %v8167_v61 = vld [vmem:[#allocation52_spill] sm:$0xff] }
 0x446   :  { %1934 = vmatprep.subr.bf16.mxu1 %v6737_v4  ;;  %5236 = vmatprep.subr.bf16.mxu0 %v8091_v36  ;;  %v1792_v4 = vadd.f32 %v7093_v19, %v8167_v61  ;;  %v8184_v19 = vld [vmem:[#allocation67_spill] sm:$0xff] }
 0x449   :  { %1935 = vmatpush1.bf16.msra.mxu1 %v6741_v40  ;;  %5237 = vmatpush3.bf16.msra.mxu0 %v6743_v57  ;;  %v8168_v40 = vld [vmem:[#allocation60_spill] sm:$0xff] }
 0x44a   :  { %1936 = vmatprep.subr.bf16.mxu1 %v6747_v3  ;;  %5238 = vmatprep.subr.bf16.mxu0 %v8091_v36  ;;  %v1710_v3 = vadd.f32 %v7084_v58, %v6988_v53  ;;  %v8176_v58 = vld [vmem:[#allocation76_spill] sm:$0xff] }
 0x44b   :  { %v5951_v41 = vpop.eup %5950 }
 0x44c   :  { %v1801_v42 = vadd.f32 1.0, %v5951_v41  ;;  %v7239_v41 = vld [vmem:[#allocation11 + $0xac] ss:$12 sps:$4 sm:$0xff]  }
 0x44d   :  { %1937 = vmatpush1.bf16.msra.mxu1 %v6751_v8  ;;  %5239 = vmatpush3.bf16.msra.mxu0 %v6753_v14  ;;  %v5953_v54 = vpop.eup %5952 }
 0x44e   :  { %5954 = vrcp.f32 %v1801_v42  ;;  %1938 = vmatprep.subr.bf16.mxu1 %v8119_v35  ;;  %5240 = vmatprep.subr.bf16.mxu0 %v8091_v36  ;;  %v1808_v51 = vadd.f32 1.0, %v5953_v54  ;;  %v8169_v35 = vld [vmem:[#allocation70_spill] sm:$0xff] }
 0x44f   :  { %v8188_v54 = vld [vmem:[#allocation50_spill] sm:$0xff] }
 0x450   :  { %5956 = vrcp.f32 %v1808_v51  ;;  %v8189_v51 = vld [vmem:[#allocation41_spill] sm:$0xff] }
 0x451   :  { %1939 = vmatpush1.bf16.msra.mxu1 %v8120_v29  ;;  %5241 = vmatpush3.bf16.msra.mxu0 %v8121_v45  ;;  %v8170_v29 = vld [vmem:[#allocation69_spill] sm:$0xff] }
 0x452   :  { %2006 = vmatprep.subr.bf16.mxu1 %v8163_v49  ;;  %5246 = vmatprep.subr.bf16.mxu0 %v8091_v36 }
 0x454   :  { %1957 = vmatmul.mubr.bf16.vlgmr.msra.gmra.mxu1 %v1821_v25  ;;  %5243 = vmatmul.mubr.bf16.vlgmr.msra.gmra.mxu0 %v1821_v25  ;;  %v7186_v25 = vld [vmem:[#allocation9 + $0x98] ss:$12 sps:$4 sm:$0xff]  }
 0x455   :  { %2007 = vmatpush1.bf16.msra.mxu1 %v8164_v48  ;;  %5247 = vmatpush3.bf16.msra.mxu0 %v8165_v60 }
 0x456   :  { %2008 = vmatprep.subr.bf16.mxu1 %v8166_v56  ;;  %5248 = vmatprep.subr.bf16.mxu0 %v8091_v36 }
 0x457   :  { %2038 = vmatprep.mubr.bf16.mxu1 %v8092_v62  ;;  %5262 = vmatprep.mubr.msk.bf16.mxu0 %vm6281_vm1, %v8091_v36 }
 0x459   :  { %2009 = vmatpush1.bf16.msra.mxu1 %v8129_v5  ;;  %5249 = vmatpush3.bf16.msra.mxu0 %v8130_v38  ;;  %v8173_v38 = vld [vmem:[#allocation75_spill] sm:$0xff] }
 0x45a   :  { %2010 = vmatprep.subr.bf16.mxu1 %v8168_v40  ;;  %5250 = vmatprep.subr.bf16.mxu0 %v8091_v36  ;;  %v8190_v40 = vld [vmem:[#allocation51_spill] sm:$0xff] }
 0x45b   :  { %v5955_v57 = vpop.eup %5954 }
 0x45c   :  { %v1811_v8 = vmul.f32 %v5955_v57, %v1792_v4 }
 0x45d   :  { %2011 = vmatpush1.bf16.msra.mxu1 %v8132_v27  ;;  %5251 = vmatpush3.bf16.msra.mxu0 %v8133_v2  ;;  %v5957_v45 = vpop.eup %5956  ;;  %v8171_v27 = vld [vmem:[#allocation73_spill] sm:$0xff] }
 0x45e   :  { %v1812_v14 = vadd.f32 %v1811_v8, %v1710_v3  ;;  %2012 = vmatprep.subr.bf16.mxu1 %v8134_v34  ;;  %5252 = vmatprep.subr.bf16.mxu0 %v8091_v36  ;;  %v8175_v34 = vld [vmem:[#allocation54_spill] sm:$0xff] }
 0x460   :  { %5958 = vtanh.f32 %v1812_v14 }
 0x461   :  { %2013 = vmatpush1.bf16.msra.mxu1 %v8135_v33  ;;  %5253 = vmatpush3.bf16.msra.mxu0 %v8136_v46  ;;  %v8172_v33 = vld [vmem:[#allocation72_spill] sm:$0xff]  ;;  %v8174_v46 = vld [vmem:[#allocation74_spill] sm:$0xff] }
 0x462   :  { %2014 = vmatprep.subr.bf16.mxu1 %v8137_v9  ;;  %5254 = vmatprep.subr.bf16.mxu0 %v8091_v36  ;;  %v1814_v9 = vsub.f32 1.0, %v5957_v45 }
 0x465   :  { %2015 = vmatpush1.bf16.msra.mxu1 %v8138_v59  ;;  %5255 = vmatpush3.bf16.msra.mxu0 %v8169_v35  ;;  %v1816_v59 = vmul.f32 %v5957_v45, %v8175_v34 }
 0x466   :  { %2016 = vmatprep.subr.bf16.mxu1 %v8170_v29  ;;  %5256 = vmatprep.subr.bf16.mxu0 %v8091_v36 }
 0x469   :  { %2017 = vmatpush1.bf16.msra.mxu1 %v8140_v32  ;;  %5257 = vmatpush3.bf16.msra.mxu0 %v8171_v27  ;;  %v8191_v27 = vld [vmem:[#allocation43_spill] sm:$0xff] }
 0x46a   :  { %2018 = vmatprep.subr.bf16.mxu1 %v8172_v33  ;;  %5258 = vmatprep.subr.bf16.mxu0 %v8091_v36 }
 0x46d   :  { %v5959_v5 = vpop.eup %5958  ;;  %2019 = vmatpush1.bf16.msra.mxu1 %v6833_v50  ;;  %5259 = vmatpush3.bf16.msra.mxu0 %v8173_v38  ;;  %v8179_v50 = vld [vmem:[#allocation61_spill] sm:$0xff] }
 0x46e   :  { %2020 = vmatprep.subr.bf16.mxu1 %v8174_v46  ;;  %5260 = vmatprep.subr.bf16.mxu0 %v8091_v36  ;;  %v1815_v2 = vmul.f32 %v5959_v5, %v1814_v9 }
 0x470   :  { %v7170_v32 = vadd.f32 %v1816_v59, %v1815_v2 }
 0x471   :  { %2021 = vmatpush1.bf16.msra.mxu1 %v8176_v58  ;;  %5261 = vmatpush3.bf16.msra.mxu0 %v8177_v55 }
 0x472   :  { %v2005_v0 = vpack.c.bf16 %v7170_v32, %v7170_v32  ;;  %2112 = vmatprep.subr.bf16.mxu1 %v8178_v21  ;;  %5266 = vmatprep.subr.bf16.mxu0 %v8091_v36 }
 0x474   :  { %2039 = vmatmul.mubr.bf16.vlgmr.msra.gmra.mxu1 %v2005_v0  ;;  %5263 = vmatmul.mubr.bf16.vlgmr.msra.gmra.mxu0 %v2005_v0 }
 0x475   :  { %2113 = vmatpush1.bf16.msra.mxu1 %v8179_v50  ;;  %5267 = vmatpush3.bf16.msra.mxu0 %v8180_v24 }
 0x476   :  { %2114 = vmatprep.subr.bf16.mxu1 %v8181_v28  ;;  %5268 = vmatprep.subr.bf16.mxu0 %v8091_v36 }
 0x477   :  { %2144 = vmatprep.mubr.bf16.mxu1 %v8092_v62  ;;  %5282 = vmatprep.mubr.msk.bf16.mxu0 %vm6281_vm1, %v8091_v36 }
 0x479   :  { %2115 = vmatpush1.bf16.msra.mxu1 %v8182_v26  ;;  %5269 = vmatpush3.bf16.msra.mxu0 %v7186_v25 }
 0x47a   :  { %2116 = vmatprep.subr.bf16.mxu1 %v8183_v31  ;;  %5270 = vmatprep.subr.bf16.mxu0 %v8091_v36 }
 0x47d   :  { %2117 = vmatpush1.bf16.msra.mxu1 %v8184_v19  ;;  %5271 = vmatpush3.bf16.msra.mxu0 %v7192_v30 }
 0x47e   :  { %2118 = vmatprep.subr.bf16.mxu1 %v8185_v16  ;;  %5272 = vmatprep.subr.bf16.mxu0 %v8091_v36 }
 0x481   :  { %2119 = vmatpush1.bf16.msra.mxu1 %v8186_v11  ;;  %5273 = vmatpush3.bf16.msra.mxu0 %v7198_v63 }
 0x482   :  { %2120 = vmatprep.subr.bf16.mxu1 %v8187_v43  ;;  %5274 = vmatprep.subr.bf16.mxu0 %v8091_v36 }
 0x485   :  { %2121 = vmatpush1.bf16.msra.mxu1 %v7203_v7  ;;  %5275 = vmatpush3.bf16.msra.mxu0 %v7206_v37 }
 0x486   :  { %2122 = vmatprep.subr.bf16.mxu1 %v7209_v18  ;;  %5276 = vmatprep.subr.bf16.mxu0 %v8091_v36 }
 0x489   :  { %2123 = vmatpush1.bf16.msra.mxu1 %v7213_v20  ;;  %5277 = vmatpush3.bf16.msra.mxu0 %v7216_v22 }
 0x48a   :  { %2124 = vmatprep.subr.bf16.mxu1 %v7219_v15  ;;  %5278 = vmatprep.subr.bf16.mxu0 %v8091_v36 }
 0x48d   :  { %2125 = vmatpush1.bf16.msra.mxu1 %v7223_v10  ;;  %5279 = vmatpush3.bf16.msra.mxu0 %v7226_v23 }
 0x48e   :  { %2126 = vmatprep.subr.bf16.mxu1 %v7229_v13  ;;  %5280 = vmatprep.subr.bf16.mxu0 %v8091_v36 }
 0x491   :  { %2127 = vmatpush1.bf16.msra.mxu1 %v7233_v44  ;;  %5281 = vmatpush3.bf16.msra.mxu0 %v7236_v52 }
 0x492   :  { %2214 = vmatprep.subr.bf16.mxu1 %v7239_v41  ;;  %5286 = vmatprep.subr.bf16.mxu0 %v8091_v36 }
 0x4f4   :  { %v1856_v42 = vpop.f32.mrf.mxu1  ;;  %v1897_v49 = vpop.f32.mrf.mxu0 }
 0x4f5   :  { %v1857_v48 = vadd.f32 %v1856_v42, %v8188_v54 }
 0x4f6   :  { %v1858_v60 = vpop.f32.mrf.mxu1  ;;  %v5224_v56 = vpop.f32.mrf.mxu0 }
 0x4f7   :  { %v1903_v4 = vadd.f32 %v1857_v48, %v8189_v51  ;;  %v1859_v57 = vadd.f32 %v1858_v60, %v8190_v40  ;;  %v1898_v60 = vadd.f32 %v1897_v49, %v6681_v47 }
 0x4f8   :  { %v1860_v3 = vpop.f32.mrf.mxu1  ;;  %v1900_v8 = vpop.f32.mrf.mxu0 }
 0x4f9   :  { %v1904_v14 = vsub.f32 0.0, %v1903_v4  ;;  %v1910_v33 = vadd.f32 %v1859_v57, %v8191_v27  ;;  %v8192_v3 = vld [vmem:[#allocation42_spill] sm:$0xff] }
 0x4fa   :  { %v1861_v35 = vpop.f32.mrf.mxu1  ;;  %v5225_v29 = vpop.f32.mrf.mxu0 }
 0x4fb   :  { %v1905_v45 = vmul.f32 1.442695, %v1904_v14  ;;  %v1911_v9 = vsub.f32 0.0, %v1910_v33 }
 0x4fd   :  { %5960 = vpow2.f32 %v1905_v45  ;;  %v1912_v5 = vmul.f32 1.442695, %v1911_v9 }
 0x4ff   :  { %5962 = vpow2.f32 %v1912_v5 }
 0x50a   :  { %v5961_v38 = vpop.eup %5960 }
 0x50b   :  { %v1907_v46 = vadd.f32 1.0, %v5961_v38  ;;  %v7262_v38 = vld [vmem:[#allocation11 + $0xa8] ss:$12 sps:$4 sm:$0xff]  }
 0x50c   :  { %v5963_v2 = vpop.eup %5962 }
 0x50d   :  { %5964 = vrcp.f32 %v1907_v46  ;;  %v1914_v0 = vadd.f32 1.0, %v5963_v2  ;;  %v7265_v46 = vld [vmem:[#allocation11 + $0xb0] ss:$12 sps:$4 sm:$0xff]  }
 0x50f   :  { %5966 = vrcp.f32 %v1914_v0 }
 0x514   :  { %v1958_v34 = vpop.f32.mrf.mxu1  ;;  %v7247_v59 = vpop.f32.mrf.mxu0 }
 0x516   :  { %v1960_v58 = vpop.f32.mrf.mxu1  ;;  %v5244_v55 = vpop.f32.mrf.mxu0 }
 0x517   :  { %v7270_v55 = vld [vmem:[#allocation11 + $0x94] ss:$12 sps:$4 sm:$0xff]  }
 0x518   :  { %v1962_v42 = vpop.f32.mrf.mxu1  ;;  %v2002_v48 = vpop.f32.mrf.mxu0 }
 0x51a   :  { %v5965_v56 = vpop.eup %5964  ;;  %v1963_v51 = vpop.f32.mrf.mxu1 }
 0x51b   :  { %v5245_v4 = vpop.f32.mrf.mxu0  ;;  %v1917_v57 = vmul.f32 %v5965_v56, %v1898_v60  ;;  %v7278_v51 = vld [vmem:[#allocation11 + $0x90] ss:$12 sps:$4 sm:$0xff]  }
 0x51c   :  { %v5967_v14 = vpop.eup %5966  ;;  %v7281_v4 = vld [vmem:[#allocation11 + $0x98] ss:$12 sps:$4 sm:$0xff]  }
 0x51d   :  { %v1918_v8 = vadd.f32 %v1917_v57, %v8192_v3  ;;  %v1920_v35 = vsub.f32 1.0, %v5967_v14  ;;  %v1922_v27 = vmul.f32 %v5967_v14, %v7089_v39  ;;  %v1959_v39 = vadd.f32 %v1958_v34, %v6914_v1 }
 0x51e   :  { %v1961_v57 = vadd.f32 %v1960_v58, %v6935_v17  ;;  %v7295_v58 = vld [vmem:[#allocation11 + $0x64] ss:$12 sps:$4 sm:$0xff]  }
 0x51f   :  { %5968 = vtanh.f32 %v1918_v8  ;;  %v7285_v8 = vld [vmem:[#allocation11 + $0x7c] ss:$12 sps:$4 sm:$0xff]  }
 0x52c   :  { %v5969_v29 = vpop.eup %5968 }
 0x52d   :  { %v1921_v45 = vmul.f32 %v5969_v29, %v1920_v35 }
 0x52f   :  { %v7252_v33 = vadd.f32 %v1922_v27, %v1921_v45  ;;  %v7289_v27 = vld [vmem:[#allocation11 + $0x78] ss:$12 sps:$4 sm:$0xff]  }
 0x531   :  { %v7256_v9 = vpack.c.bf16 %v7252_v33, %v7252_v33 }
 0x533   :  { %2145 = vmatmul.mubr.bf16.vlgmr.msra.gmra.mxu1 %v7256_v9  ;;  %5283 = vmatmul.mubr.bf16.vlgmr.msra.gmra.mxu0 %v7256_v9 }
 0x534   :  { %v2040_v49 = vpop.f32.mrf.mxu1  ;;  %v7260_v5 = vpop.f32.mrf.mxu0  ;;  %2215 = vmatpush1.bf16.msra.mxu1 %v7262_v38  ;;  %5287 = vmatpush3.bf16.msra.mxu0 %v7265_v46 }
 0x535   :  { %v2041_v2 = vadd.f32 %v2040_v49, %v6918_v12  ;;  %2216 = vmatprep.subr.bf16.mxu1 %v7270_v55  ;;  %5288 = vmatprep.subr.bf16.mxu0 %v8091_v36  ;;  %v7292_v49 = vld [vmem:[#allocation11 + $0x80] ss:$12 sps:$4 sm:$0xff]  }
 0x536   :  { %v2042_v0 = vpop.f32.mrf.mxu1  ;;  %v5264_v42 = vpop.f32.mrf.mxu0  ;;  %2246 = vmatprep.mubr.bf16.mxu1 %v8092_v62  ;;  %5302 = vmatprep.mubr.msk.bf16.mxu0 %vm6281_vm1, %v8091_v36 }
 0x537   :  { %v2087_v48 = vadd.f32 %v2041_v2, %v1959_v39  ;;  %v2043_v60 = vadd.f32 %v2042_v0, %v6928_v6  ;;  %v7299_v2 = vld [vmem:[#allocation11 + $0x60] ss:$12 sps:$4 sm:$0xff]   ;;  %v7302_v0 = vld [vmem:[#allocation11 + $0x68] ss:$12 sps:$4 sm:$0xff]  }
 0x538   :  { %v2044_v56 = vpop.f32.mrf.mxu1  ;;  %v2084_v34 = vpop.f32.mrf.mxu0  ;;  %2217 = vmatpush1.bf16.msra.mxu1 %v7278_v51  ;;  %5289 = vmatpush3.bf16.msra.mxu0 %v7281_v4  ;;  %v7305_v42 = vld [vmem:[#allocation11 + $0x4c] ss:$12 sps:$4 sm:$0xff]  }
 0x539   :  { %v2088_v3 = vsub.f32 0.0, %v2087_v48  ;;  %2218 = vmatprep.subr.bf16.mxu1 %v7285_v8  ;;  %5290 = vmatprep.subr.bf16.mxu0 %v8091_v36  ;;  %v2094_v45 = vadd.f32 %v2043_v60, %v1961_v57  ;;  %v7309_v60 = vld [vmem:[#allocation11 + $0x48] ss:$12 sps:$4 sm:$0xff]   ;;  %v7312_v56 = vld [vmem:[#allocation11 + $0x50] ss:$12 sps:$4 sm:$0xff]  }
 0x53a   :  { %v2045_v14 = vpop.f32.mrf.mxu1  ;;  %v5265_v35 = vpop.f32.mrf.mxu0  ;;  %v7315_v34 = vld [vmem:[#allocation11 + $0x34] ss:$12 sps:$4 sm:$0xff]   ;;  %v7319_v57 = vld [vmem:[#allocation11 + $0x30] ss:$12 sps:$4 sm:$0xff]  }
 0x53b   :  { %v2089_v29 = vmul.f32 1.442695, %v2088_v3  ;;  %v2095_v39 = vsub.f32 0.0, %v2094_v45  ;;  %v7322_v3 = vld [vmem:[#allocation11 + $0x38] ss:$12 sps:$4 sm:$0xff]  }
 0x53c   :  { %2219 = vmatpush1.bf16.msra.mxu1 %v7289_v27  ;;  %5291 = vmatpush3.bf16.msra.mxu0 %v7292_v49  ;;  %8193 = vst [vmem:[#allocation28_spill] sm:$0xff] %v7322_v3  ;;  %v7325_v14 = vld [vmem:[#allocation11 + $0x1c] ss:$12 sps:$4 sm:$0xff]   ;;  %v7329_v45 = vld [vmem:[#allocation11 + $0x18] ss:$12 sps:$4 sm:$0xff]  }
 0x53d   :  { %5970 = vpow2.f32 %v2089_v29  ;;  %2220 = vmatprep.subr.bf16.mxu1 %v7295_v58  ;;  %5292 = vmatprep.subr.bf16.mxu0 %v8091_v36  ;;  %v2096_v48 = vmul.f32 1.442695, %v2095_v39  ;;  %8194 = vst [vmem:[#allocation29_spill] sm:$0xff] %v7325_v14  ;;  %8195 = vst [vmem:[#allocation32_spill] sm:$0xff] %v7329_v45  ;;  %v7332_v39 = vld [vmem:[#allocation11 + $0x20] ss:$12 sps:$4 sm:$0xff]  }
 0x53e   :  { %8196 = vst [vmem:[#allocation30_spill] sm:$0xff] %v7332_v39 }
 0x53f   :  { %5972 = vpow2.f32 %v2096_v48  ;;  %v7335_v48 = vld [vmem:[#allocation11 + $0x4] ss:$12 sps:$4 sm:$0xff]  }
 0x540   :  { %2221 = vmatpush1.bf16.msra.mxu1 %v7299_v2  ;;  %5293 = vmatpush3.bf16.msra.mxu0 %v7302_v0  ;;  %8197 = vst [vmem:[#allocation31_spill] sm:$0xff] %v7335_v48 }
 0x541   :  { %2222 = vmatprep.subr.bf16.mxu1 %v7305_v42  ;;  %5294 = vmatprep.subr.bf16.mxu0 %v8091_v36 }
 0x544   :  { %2223 = vmatpush1.bf16.msra.mxu1 %v7309_v60  ;;  %5295 = vmatpush3.bf16.msra.mxu0 %v7312_v56 }
 0x545   :  { %2224 = vmatprep.subr.bf16.mxu1 %v7315_v34  ;;  %5296 = vmatprep.subr.bf16.mxu0 %v8091_v36 }
 0x548   :  { %2225 = vmatpush1.bf16.msra.mxu1 %v7319_v57  ;;  %5297 = vmatpush3.bf16.msra.mxu0 %v7322_v3 }
 0x549   :  { %2226 = vmatprep.subr.bf16.mxu1 %v7325_v14  ;;  %5298 = vmatprep.subr.bf16.mxu0 %v8091_v36  ;;  %v7339_v14 = vld [vmem:[#allocation11] ss:$12 sps:$4 sm:$0xff]  }
 0x54a   :  { %v5971_v35 = vpop.eup %5970  ;;  %8198 = vst [vmem:[#allocation33_spill] sm:$0xff] %v7339_v14 }
 0x54b   :  { %v2091_v29 = vadd.f32 1.0, %v5971_v35  ;;  %v7342_v35 = vld [vmem:[#allocation11 + $0x8] ss:$12 sps:$4 sm:$0xff]  }
 0x54c   :  { %2227 = vmatpush1.bf16.msra.mxu1 %v7329_v45  ;;  %5299 = vmatpush3.bf16.msra.mxu0 %v7332_v39  ;;  %8199 = vst [vmem:[#allocation34_spill] sm:$0xff] %v7342_v35  ;;  %v7345_v45 = vld [vmem:[#allocation12 + $0xac] ss:$12 sps:$4 sm:$0xff]  }
 0x54d   :  { %5974 = vrcp.f32 %v2091_v29  ;;  %2228 = vmatprep.subr.bf16.mxu1 %v7335_v48  ;;  %5300 = vmatprep.subr.bf16.mxu0 %v8091_v36  ;;  %8200 = vst [vmem:[#allocation38_spill] sm:$0xff] %v7345_v45  ;;  %v5973_v29 = vpop.eup %5972  ;;  %v7351_v48 = vld [vmem:[#allocation12 + $0xa8] ss:$12 sps:$4 sm:$0xff]  }
 0x54e   :  { %8201 = vst [vmem:[#allocation40_spill] sm:$0xff] %v7351_v48 }
 0x550   :  { %2229 = vmatpush1.bf16.msra.mxu1 %v7339_v14  ;;  %5301 = vmatpush3.bf16.msra.mxu0 %v7342_v35  ;;  %v7354_v14 = vld [vmem:[#allocation12 + $0xb0] ss:$12 sps:$4 sm:$0xff]   ;;  %v7357_v35 = vld [vmem:[#allocation12 + $0x94] ss:$12 sps:$4 sm:$0xff]  }
 0x551   :  { %2296 = vmatprep.subr.bf16.mxu1 %v7345_v45  ;;  %5306 = vmatprep.subr.bf16.mxu0 %v8091_v36  ;;  %8202 = vst [vmem:[#allocation39_spill] sm:$0xff] %v7354_v14  ;;  %8203 = vst [vmem:[#allocation55_spill] sm:$0xff] %v7357_v35  ;;  %v7364_v45 = vld [vmem:[#allocation12 + $0x90] ss:$12 sps:$4 sm:$0xff]  }
 0x552   :  { %8204 = vst [vmem:[#allocation56_spill] sm:$0xff] %v7364_v45 }
 0x553   :  { %2247 = vmatmul.mubr.bf16.vlgmr.msra.gmra.mxu1 %v7256_v9  ;;  %5303 = vmatmul.mubr.bf16.vlgmr.msra.gmra.mxu0 %v7256_v9  ;;  %v2098_v9 = vadd.f32 1.0, %v5973_v29  ;;  %v2000_v29 = vadd.f32 %v7247_v59, %v6988_v53  ;;  %v7391_v59 = vld [vmem:[#allocation12 + $0x68] ss:$12 sps:$4 sm:$0xff]  }
 0x554   :  { %2297 = vmatpush1.bf16.msra.mxu1 %v7351_v48  ;;  %5307 = vmatpush3.bf16.msra.mxu0 %v7354_v14  ;;  %v7367_v48 = vld [vmem:[#allocation12 + $0x98] ss:$12 sps:$4 sm:$0xff]   ;;  %v2082_v14 = vadd.f32 %v7260_v5, %v8167_v61  ;;  %8210 = vst [vmem:[#allocation73_spill] sm:$0xff] %v7391_v59 }
 0x555   :  { %2298 = vmatprep.subr.bf16.mxu1 %v7357_v35  ;;  %5308 = vmatprep.subr.bf16.mxu0 %v8091_v36  ;;  %8205 = vst [vmem:[#allocation58_spill] sm:$0xff] %v7367_v48  ;;  %v7372_v35 = vld [vmem:[#allocation12 + $0x7c] ss:$12 sps:$4 sm:$0xff]   ;;  %5976 = vrcp.f32 %v2098_v9  ;;  %v7384_v61 = vld [vmem:[#allocation12 + $0x64] ss:$12 sps:$4 sm:$0xff]  }
 0x556   :  { %2328 = vmatprep.mubr.bf16.mxu1 %v8092_v62  ;;  %5322 = vmatprep.mubr.msk.bf16.mxu0 %vm6281_vm1, %v8091_v36  ;;  %8206 = vst [vmem:[#allocation57_spill] sm:$0xff] %v7372_v35  ;;  %8208 = vst [vmem:[#allocation70_spill] sm:$0xff] %v7384_v61  ;;  %v7404_v9 = vld [vmem:[#allocation12 + $0x34] ss:$12 sps:$4 sm:$0xff]  }
 0x557   :  { %8214 = vst [vmem:[#allocation54_spill] sm:$0xff] %v7404_v9 }
 0x558   :  { %2299 = vmatpush1.bf16.msra.mxu1 %v7364_v45  ;;  %5309 = vmatpush3.bf16.msra.mxu0 %v7367_v48  ;;  %v7378_v45 = vld [vmem:[#allocation12 + $0x78] ss:$12 sps:$4 sm:$0xff]   ;;  %v7381_v48 = vld [vmem:[#allocation12 + $0x80] ss:$12 sps:$4 sm:$0xff]  }
 0x559   :  { %2300 = vmatprep.subr.bf16.mxu1 %v7372_v35  ;;  %5310 = vmatprep.subr.bf16.mxu0 %v8091_v36  ;;  %8207 = vst [vmem:[#allocation60_spill] sm:$0xff] %v7381_v48  ;;  %v7388_v35 = vld [vmem:[#allocation12 + $0x60] ss:$12 sps:$4 sm:$0xff]  }
 0x55a   :  { %v5975_v39 = vpop.eup %5974  ;;  %8209 = vst [vmem:[#allocation69_spill] sm:$0xff] %v7388_v35 }
 0x55b   :  { %v2101_v3 = vmul.f32 %v5975_v39, %v2082_v14  ;;  %v7394_v14 = vld [vmem:[#allocation12 + $0x4c] ss:$12 sps:$4 sm:$0xff]   ;;  %v7401_v39 = vld [vmem:[#allocation12 + $0x50] ss:$12 sps:$4 sm:$0xff]  }
 0x55c   :  { %2301 = vmatpush1.bf16.msra.mxu1 %v7378_v45  ;;  %5311 = vmatpush3.bf16.msra.mxu0 %v7381_v48  ;;  %8211 = vst [vmem:[#allocation72_spill] sm:$0xff] %v7394_v14  ;;  %8213 = vst [vmem:[#allocation74_spill] sm:$0xff] %v7401_v39  ;;  %v7431_v48 = vld [vmem:[#allocation12] ss:$12 sps:$4 sm:$0xff]  }
 0x55d   :  { %v2102_v5 = vadd.f32 %v2101_v3, %v2000_v29  ;;  %2302 = vmatprep.subr.bf16.mxu1 %v7384_v61  ;;  %5312 = vmatprep.subr.bf16.mxu0 %v8091_v36  ;;  %v7398_v3 = vld [vmem:[#allocation12 + $0x48] ss:$12 sps:$4 sm:$0xff]  }
 0x55e   :  { %8212 = vst [vmem:[#allocation75_spill] sm:$0xff] %v7398_v3 }
 0x55f   :  { %5978 = vtanh.f32 %v2102_v5  ;;  %v7408_v5 = vld [vmem:[#allocation12 + $0x30] ss:$12 sps:$4 sm:$0xff]  }
 0x560   :  { %2303 = vmatpush1.bf16.msra.mxu1 %v7388_v35  ;;  %5313 = vmatpush3.bf16.msra.mxu0 %v7391_v59  ;;  %8215 = vst [vmem:[#allocation76_spill] sm:$0xff] %v7408_v5  ;;  %v7421_v35 = vld [vmem:[#allocation12 + $0x20] ss:$12 sps:$4 sm:$0xff]  }
 0x561   :  { %2304 = vmatprep.subr.bf16.mxu1 %v7394_v14  ;;  %5314 = vmatprep.subr.bf16.mxu0 %v8091_v36  ;;  %v7411_v14 = vld [vmem:[#allocation12 + $0x38] ss:$12 sps:$4 sm:$0xff]   ;;  %8219 = vst [vmem:[#allocation62_spill] sm:$0xff] %v7421_v35 }
 0x562   :  { %v5977_v29 = vpop.eup %5976  ;;  %8216 = vst [vmem:[#allocation77_spill] sm:$0xff] %v7411_v14 }
 0x564   :  { %2305 = vmatpush1.bf16.msra.mxu1 %v7398_v3  ;;  %5315 = vmatpush3.bf16.msra.mxu0 %v7401_v39  ;;  %v7414_v3 = vld [vmem:[#allocation12 + $0x1c] ss:$12 sps:$4 sm:$0xff]   ;;  %v2104_v39 = vsub.f32 1.0, %v5977_v29 }
 0x565   :  { %2306 = vmatprep.subr.bf16.mxu1 %v7404_v9  ;;  %5316 = vmatprep.subr.bf16.mxu0 %v8091_v36  ;;  %8217 = vst [vmem:[#allocation59_spill] sm:$0xff] %v7414_v3  ;;  %v7418_v9 = vld [vmem:[#allocation12 + $0x18] ss:$12 sps:$4 sm:$0xff]  }
 0x566   :  { %8218 = vst [vmem:[#allocation61_spill] sm:$0xff] %v7418_v9 }
 0x568   :  { %2307 = vmatpush1.bf16.msra.mxu1 %v7408_v5  ;;  %5317 = vmatpush3.bf16.msra.mxu0 %v7411_v14  ;;  %v7424_v5 = vld [vmem:[#allocation12 + $0x4] ss:$12 sps:$4 sm:$0xff]  }
 0x569   :  { %2308 = vmatprep.subr.bf16.mxu1 %v7414_v3  ;;  %5318 = vmatprep.subr.bf16.mxu0 %v8091_v36  ;;  %v2106_v3 = vmul.f32 %v5977_v29, %v7170_v32 }
 0x56c   :  { %v5979_v59 = vpop.eup %5978  ;;  %2309 = vmatpush1.bf16.msra.mxu1 %v7418_v9  ;;  %5319 = vmatpush3.bf16.msra.mxu0 %v7421_v35  ;;  %v7434_v9 = vld [vmem:[#allocation12 + $0x8] ss:$12 sps:$4 sm:$0xff]  }
 0x56d   :  { %2310 = vmatprep.subr.bf16.mxu1 %v7424_v5  ;;  %5320 = vmatprep.subr.bf16.mxu0 %v8091_v36  ;;  %v2105_v14 = vmul.f32 %v5979_v59, %v2104_v39 }
 0x56f   :  { %v7429_v61 = vadd.f32 %v2106_v3, %v2105_v14 }
 0x570   :  { %2311 = vmatpush1.bf16.msra.mxu1 %v7431_v48  ;;  %5321 = vmatpush3.bf16.msra.mxu0 %v7434_v9 }
 0x571   :  { %v2295_v35 = vpack.c.bf16 %v7429_v61, %v7429_v61  ;;  %2402 = vmatprep.subr.bf16.mxu1 %v8178_v21  ;;  %5326 = vmatprep.subr.bf16.mxu0 %v8091_v36 }
 0x573   :  { %2329 = vmatmul.mubr.bf16.vlgmr.msra.gmra.mxu1 %v2295_v35  ;;  %5323 = vmatmul.mubr.bf16.vlgmr.msra.gmra.mxu0 %v2295_v35 }
 0x574   :  { %2403 = vmatpush1.bf16.msra.mxu1 %v8179_v50  ;;  %5327 = vmatpush3.bf16.msra.mxu0 %v8180_v24 }
 0x575   :  { %2404 = vmatprep.subr.bf16.mxu1 %v8181_v28  ;;  %5328 = vmatprep.subr.bf16.mxu0 %v8091_v36 }
 0x576   :  { %2434 = vmatprep.mubr.bf16.mxu1 %v8092_v62  ;;  %5342 = vmatprep.mubr.msk.bf16.mxu0 %vm6281_vm1, %v8091_v36 }
 0x578   :  { %2405 = vmatpush1.bf16.msra.mxu1 %v8182_v26  ;;  %5329 = vmatpush3.bf16.msra.mxu0 %v7186_v25  ;;  %v8220_v26 = vld [vmem:[#allocation44_spill] sm:$0xff] }
 0x579   :  { %2406 = vmatprep.subr.bf16.mxu1 %v8183_v31  ;;  %5330 = vmatprep.subr.bf16.mxu0 %v8091_v36 }
 0x57c   :  { %2407 = vmatpush1.bf16.msra.mxu1 %v8184_v19  ;;  %5331 = vmatpush3.bf16.msra.mxu0 %v7192_v30 }
 0x57d   :  { %2408 = vmatprep.subr.bf16.mxu1 %v8185_v16  ;;  %5332 = vmatprep.subr.bf16.mxu0 %v8091_v36 }
 0x580   :  { %2409 = vmatpush1.bf16.msra.mxu1 %v8186_v11  ;;  %5333 = vmatpush3.bf16.msra.mxu0 %v7198_v63 }
 0x581   :  { %2410 = vmatprep.subr.bf16.mxu1 %v8187_v43  ;;  %5334 = vmatprep.subr.bf16.mxu0 %v8091_v36 }
 0x584   :  { %2411 = vmatpush1.bf16.msra.mxu1 %v7203_v7  ;;  %5335 = vmatpush3.bf16.msra.mxu0 %v7206_v37  ;;  %v8221_v7 = vld [vmem:[#allocation46_spill] sm:$0xff] }
 0x585   :  { %2412 = vmatprep.subr.bf16.mxu1 %v7209_v18  ;;  %5336 = vmatprep.subr.bf16.mxu0 %v8091_v36 }
 0x588   :  { %2413 = vmatpush1.bf16.msra.mxu1 %v7213_v20  ;;  %5337 = vmatpush3.bf16.msra.mxu0 %v7216_v22 }
 0x589   :  { %2414 = vmatprep.subr.bf16.mxu1 %v7219_v15  ;;  %5338 = vmatprep.subr.bf16.mxu0 %v8091_v36 }
 0x58c   :  { %2415 = vmatpush1.bf16.msra.mxu1 %v7223_v10  ;;  %5339 = vmatpush3.bf16.msra.mxu0 %v7226_v23 }
 0x58d   :  { %2416 = vmatprep.subr.bf16.mxu1 %v7229_v13  ;;  %5340 = vmatprep.subr.bf16.mxu0 %v8091_v36 }
 0x590   :  { %2417 = vmatpush1.bf16.msra.mxu1 %v7233_v44  ;;  %5341 = vmatpush3.bf16.msra.mxu0 %v7236_v52 }
 0x591   :  { %2504 = vmatprep.subr.bf16.mxu1 %v7239_v41  ;;  %5346 = vmatprep.subr.bf16.mxu0 %v8091_v36 }
 0x5f3   :  { %v2146_v32 = vpop.f32.mrf.mxu1  ;;  %v2187_v21 = vpop.f32.mrf.mxu0 }
 0x5f4   :  { %v2147_v50 = vadd.f32 %v2146_v32, %v8188_v54  ;;  %v2188_v3 = vadd.f32 %v2187_v21, %v6681_v47 }
 0x5f5   :  { %v2148_v24 = vpop.f32.mrf.mxu1  ;;  %v5284_v28 = vpop.f32.mrf.mxu0 }
 0x5f6   :  { %v2193_v25 = vadd.f32 %v2147_v50, %v8220_v26  ;;  %v2149_v31 = vadd.f32 %v2148_v24, %v8190_v40  ;;  %v8222_v24 = vld [vmem:[#allocation45_spill] sm:$0xff] }
 0x5f7   :  { %v2150_v19 = vpop.f32.mrf.mxu1  ;;  %v2190_v30 = vpop.f32.mrf.mxu0 }
 0x5f8   :  { %v2194_v16 = vsub.f32 0.0, %v2193_v25  ;;  %v2200_v37 = vadd.f32 %v2149_v31, %v8221_v7 }
 0x5f9   :  { %v2151_v11 = vpop.f32.mrf.mxu1  ;;  %v5285_v63 = vpop.f32.mrf.mxu0 }
 0x5fa   :  { %v2195_v43 = vmul.f32 1.442695, %v2194_v16  ;;  %v2201_v18 = vsub.f32 0.0, %v2200_v37 }
 0x5fc   :  { %5980 = vpow2.f32 %v2195_v43  ;;  %v2202_v20 = vmul.f32 1.442695, %v2201_v18 }
 0x5fe   :  { %5982 = vpow2.f32 %v2202_v20 }
 0x609   :  { %v5981_v22 = vpop.eup %5980 }
 0x60a   :  { %v2197_v15 = vadd.f32 1.0, %v5981_v22 }
 0x60b   :  { %v5983_v10 = vpop.eup %5982 }
 0x60c   :  { %5984 = vrcp.f32 %v2197_v15  ;;  %v2204_v35 = vadd.f32 1.0, %v5983_v10 }
 0x60e   :  { %5986 = vrcp.f32 %v2204_v35 }
 0x613   :  { %v2248_v23 = vpop.f32.mrf.mxu1  ;;  %v7480_v13 = vpop.f32.mrf.mxu0 }
 0x614   :  { %v2249_v43 = vadd.f32 %v2248_v23, %v6914_v1 }
 0x615   :  { %v2250_v44 = vpop.f32.mrf.mxu1  ;;  %v5304_v52 = vpop.f32.mrf.mxu0 }
 0x616   :  { %v2251_v10 = vadd.f32 %v2250_v44, %v6935_v17 }
 0x617   :  { %v2252_v59 = vpop.f32.mrf.mxu1  ;;  %v2292_v14 = vpop.f32.mrf.mxu0 }
 0x619   :  { %v5985_v39 = vpop.eup %5984  ;;  %v2253_v29 = vpop.f32.mrf.mxu1 }
 0x61a   :  { %v5305_v32 = vpop.f32.mrf.mxu0  ;;  %v2207_v50 = vmul.f32 %v5985_v39, %v2188_v3  ;;  %v8223_v39 = vld [vmem:[#allocation28_spill] sm:$0xff]  ;;  %v8224_v29 = vld [vmem:[#allocation29_spill] sm:$0xff] }
 0x61b   :  { %v5987_v26 = vpop.eup %5986 }
 0x61c   :  { %v2208_v28 = vadd.f32 %v2207_v50, %v8222_v24  ;;  %v2210_v25 = vsub.f32 1.0, %v5987_v26  ;;  %v2212_v30 = vmul.f32 %v5987_v26, %v7252_v33  ;;  %v8225_v24 = vld [vmem:[#allocation32_spill] sm:$0xff]  ;;  %v8227_v26 = vld [vmem:[#allocation31_spill] sm:$0xff] }
 0x61e   :  { %5988 = vtanh.f32 %v2208_v28  ;;  %v8226_v28 = vld [vmem:[#allocation30_spill] sm:$0xff] }
 0x62b   :  { %v5989_v31 = vpop.eup %5988 }
 0x62c   :  { %v2211_v19 = vmul.f32 %v5989_v31, %v2210_v25  ;;  %v8228_v25 = vld [vmem:[#allocation33_spill] sm:$0xff]  ;;  %v8229_v31 = vld [vmem:[#allocation34_spill] sm:$0xff] }
 0x62e   :  { %v7485_v16 = vadd.f32 %v2212_v30, %v2211_v19  ;;  %v8230_v19 = vld [vmem:[#allocation38_spill] sm:$0xff] }
 0x630   :  { %v2401_v11 = vpack.c.bf16 %v7485_v16, %v7485_v16 }
 0x632   :  { %2435 = vmatmul.mubr.bf16.vlgmr.msra.gmra.mxu1 %v2401_v11  ;;  %5343 = vmatmul.mubr.bf16.vlgmr.msra.gmra.mxu0 %v2401_v11 }
 0x633   :  { %v2330_v21 = vpop.f32.mrf.mxu1  ;;  %v7489_v63 = vpop.f32.mrf.mxu0  ;;  %2505 = vmatpush1.bf16.msra.mxu1 %v7262_v38  ;;  %5347 = vmatpush3.bf16.msra.mxu0 %v7265_v46 }
 0x634   :  { %v2331_v7 = vadd.f32 %v2330_v21, %v6918_v12  ;;  %2506 = vmatprep.subr.bf16.mxu1 %v7270_v55  ;;  %5348 = vmatprep.subr.bf16.mxu0 %v8091_v36  ;;  %v8231_v21 = vld [vmem:[#allocation40_spill] sm:$0xff] }
 0x635   :  { %v2332_v33 = vpop.f32.mrf.mxu1  ;;  %v5324_v37 = vpop.f32.mrf.mxu0  ;;  %2536 = vmatprep.mubr.bf16.mxu1 %v8092_v62  ;;  %5362 = vmatprep.mubr.msk.bf16.mxu0 %vm6281_vm1, %v8091_v36 }
 0x636   :  { %v2377_v18 = vadd.f32 %v2331_v7, %v2249_v43  ;;  %v2333_v20 = vadd.f32 %v2332_v33, %v6928_v6  ;;  %v8232_v43 = vld [vmem:[#allocation39_spill] sm:$0xff]  ;;  %v8234_v37 = vld [vmem:[#allocation56_spill] sm:$0xff] }
 0x637   :  { %v2334_v22 = vpop.f32.mrf.mxu1  ;;  %v2374_v15 = vpop.f32.mrf.mxu0  ;;  %2507 = vmatpush1.bf16.msra.mxu1 %v7278_v51  ;;  %5349 = vmatpush3.bf16.msra.mxu0 %v7281_v4  ;;  %v8233_v7 = vld [vmem:[#allocation55_spill] sm:$0xff] }
 0x638   :  { %v2378_v23 = vsub.f32 0.0, %v2377_v18  ;;  %2508 = vmatprep.subr.bf16.mxu1 %v7285_v8  ;;  %5350 = vmatprep.subr.bf16.mxu0 %v8091_v36  ;;  %v2384_v14 = vadd.f32 %v2333_v20, %v2251_v10  ;;  %v8235_v18 = vld [vmem:[#allocation58_spill] sm:$0xff]  ;;  %v8237_v22 = vld [vmem:[#allocation57_spill] sm:$0xff]  ;;  %v2290_v10 = vadd.f32 %v7480_v13, %v6988_v53  ;;  %v8243_v13 = vld [vmem:[#allocation75_spill] sm:$0xff] }
 0x639   :  { %v2335_v52 = vpop.f32.mrf.mxu1  ;;  %v5325_v35 = vpop.f32.mrf.mxu0 }
 0x63a   :  { %v2379_v59 = vmul.f32 1.442695, %v2378_v23  ;;  %v2385_v3 = vsub.f32 0.0, %v2384_v14  ;;  %v8238_v52 = vld [vmem:[#allocation60_spill] sm:$0xff]  ;;  %v8241_v14 = vld [vmem:[#allocation73_spill] sm:$0xff] }
 0x63b   :  { %2509 = vmatpush1.bf16.msra.mxu1 %v7289_v27  ;;  %5351 = vmatpush3.bf16.msra.mxu0 %v7292_v49 }
 0x63c   :  { %5990 = vpow2.f32 %v2379_v59  ;;  %2510 = vmatprep.subr.bf16.mxu1 %v7295_v58  ;;  %5352 = vmatprep.subr.bf16.mxu0 %v8091_v36  ;;  %v2386_v44 = vmul.f32 1.442695, %v2385_v3  ;;  %v8239_v59 = vld [vmem:[#allocation70_spill] sm:$0xff]  ;;  %v8242_v3 = vld [vmem:[#allocation72_spill] sm:$0xff] }
 0x63e   :  { %5992 = vpow2.f32 %v2386_v44  ;;  %v8244_v44 = vld [vmem:[#allocation74_spill] sm:$0xff] }
 0x63f   :  { %2511 = vmatpush1.bf16.msra.mxu1 %v7299_v2  ;;  %5353 = vmatpush3.bf16.msra.mxu0 %v7302_v0 }
 0x640   :  { %2512 = vmatprep.subr.bf16.mxu1 %v7305_v42  ;;  %5354 = vmatprep.subr.bf16.mxu0 %v8091_v36 }
 0x643   :  { %2513 = vmatpush1.bf16.msra.mxu1 %v7309_v60  ;;  %5355 = vmatpush3.bf16.msra.mxu0 %v7312_v56 }
 0x644   :  { %2514 = vmatprep.subr.bf16.mxu1 %v7315_v34  ;;  %5356 = vmatprep.subr.bf16.mxu0 %v8091_v36 }
 0x647   :  { %2515 = vmatpush1.bf16.msra.mxu1 %v7319_v57  ;;  %5357 = vmatpush3.bf16.msra.mxu0 %v8223_v39 }
 0x648   :  { %2516 = vmatprep.subr.bf16.mxu1 %v8224_v29  ;;  %5358 = vmatprep.subr.bf16.mxu0 %v8091_v36 }
 0x649   :  { %v5991_v32 = vpop.eup %5990 }
 0x64a   :  { %v2381_v50 = vadd.f32 1.0, %v5991_v32  ;;  %v8245_v32 = vld [vmem:[#allocation54_spill] sm:$0xff] }
 0x64b   :  { %2517 = vmatpush1.bf16.msra.mxu1 %v8225_v24  ;;  %5359 = vmatpush3.bf16.msra.mxu0 %v8226_v28  ;;  %v5993_v30 = vpop.eup %5992 }
 0x64c   :  { %5994 = vrcp.f32 %v2381_v50  ;;  %2518 = vmatprep.subr.bf16.mxu1 %v8227_v26  ;;  %5360 = vmatprep.subr.bf16.mxu0 %v8091_v36  ;;  %v2388_v33 = vadd.f32 1.0, %v5993_v30  ;;  %v8246_v30 = vld [vmem:[#allocation76_spill] sm:$0xff] }
 0x64e   :  { %5996 = vrcp.f32 %v2388_v33  ;;  %v8247_v33 = vld [vmem:[#allocation77_spill] sm:$0xff] }
 0x64f   :  { %2519 = vmatpush1.bf16.msra.mxu1 %v8228_v25  ;;  %5361 = vmatpush3.bf16.msra.mxu0 %v8229_v31 }
 0x650   :  { %2586 = vmatprep.subr.bf16.mxu1 %v8230_v19  ;;  %5366 = vmatprep.subr.bf16.mxu0 %v8091_v36 }
 0x652   :  { %2537 = vmatmul.mubr.bf16.vlgmr.msra.gmra.mxu1 %v2401_v11  ;;  %5363 = vmatmul.mubr.bf16.vlgmr.msra.gmra.mxu0 %v2401_v11  ;;  %v8236_v11 = vld [vmem:[#allocation52_spill] sm:$0xff] }
 0x653   :  { %2587 = vmatpush1.bf16.msra.mxu1 %v8231_v21  ;;  %5367 = vmatpush3.bf16.msra.mxu0 %v8232_v43  ;;  %v2372_v20 = vadd.f32 %v7489_v63, %v8236_v11  ;;  %v8240_v63 = vld [vmem:[#allocation69_spill] sm:$0xff] }
 0x654   :  { %2588 = vmatprep.subr.bf16.mxu1 %v8233_v7  ;;  %5368 = vmatprep.subr.bf16.mxu0 %v8091_v36 }
 0x655   :  { %2618 = vmatprep.mubr.bf16.mxu1 %v8092_v62  ;;  %5382 = vmatprep.mubr.msk.bf16.mxu0 %vm6281_vm1, %v8091_v36 }
 0x657   :  { %2589 = vmatpush1.bf16.msra.mxu1 %v8234_v37  ;;  %5369 = vmatpush3.bf16.msra.mxu0 %v8235_v18 }
 0x658   :  { %2590 = vmatprep.subr.bf16.mxu1 %v8237_v22  ;;  %5370 = vmatprep.subr.bf16.mxu0 %v8091_v36 }
 0x659   :  { %v5995_v15 = vpop.eup %5994 }
 0x65a   :  { %v2391_v23 = vmul.f32 %v5995_v15, %v2372_v20  ;;  %v8248_v20 = vld [vmem:[#allocation59_spill] sm:$0xff] }
 0x65b   :  { %2591 = vmatpush1.bf16.msra.mxu1 %v7378_v45  ;;  %5371 = vmatpush3.bf16.msra.mxu0 %v8238_v52  ;;  %v5997_v50 = vpop.eup %5996 }
 0x65c   :  { %v2392_v35 = vadd.f32 %v2391_v23, %v2290_v10  ;;  %2592 = vmatprep.subr.bf16.mxu1 %v8239_v59  ;;  %5372 = vmatprep.subr.bf16.mxu0 %v8091_v36  ;;  %v2394_v15 = vsub.f32 1.0, %v5997_v50  ;;  %v8249_v23 = vld [vmem:[#allocation61_spill] sm:$0xff]  ;;  %v2396_v11 = vmul.f32 %v5997_v50, %v7429_v61 }
 0x65e   :  { %5998 = vtanh.f32 %v2392_v35  ;;  %v8250_v35 = vld [vmem:[#allocation62_spill] sm:$0xff] }
 0x65f   :  { %2593 = vmatpush1.bf16.msra.mxu1 %v8240_v63  ;;  %5373 = vmatpush3.bf16.msra.mxu0 %v8241_v14 }
 0x660   :  { %2594 = vmatprep.subr.bf16.mxu1 %v8242_v3  ;;  %5374 = vmatprep.subr.bf16.mxu0 %v8091_v36 }
 0x663   :  { %2595 = vmatpush1.bf16.msra.mxu1 %v8243_v13  ;;  %5375 = vmatpush3.bf16.msra.mxu0 %v8244_v44 }
 0x664   :  { %2596 = vmatprep.subr.bf16.mxu1 %v8245_v32  ;;  %5376 = vmatprep.subr.bf16.mxu0 %v8091_v36 }
 0x667   :  { %2597 = vmatpush1.bf16.msra.mxu1 %v8246_v30  ;;  %5377 = vmatpush3.bf16.msra.mxu0 %v8247_v33 }
 0x668   :  { %2598 = vmatprep.subr.bf16.mxu1 %v8248_v20  ;;  %5378 = vmatprep.subr.bf16.mxu0 %v8091_v36 }
 0x66b   :  { %v5999_v10 = vpop.eup %5998  ;;  %2599 = vmatpush1.bf16.msra.mxu1 %v8249_v23  ;;  %5379 = vmatpush3.bf16.msra.mxu0 %v8250_v35 }
 0x66c   :  { %2600 = vmatprep.subr.bf16.mxu1 %v7424_v5  ;;  %5380 = vmatprep.subr.bf16.mxu0 %v8091_v36  ;;  %v2395_v53 = vmul.f32 %v5999_v10, %v2394_v15 }
 0x66e   :  { %v7566_v30 = vadd.f32 %v2396_v11, %v2395_v53 }
 0x66f   :  { %2601 = vmatpush1.bf16.msra.mxu1 %v7431_v48  ;;  %5381 = vmatpush3.bf16.msra.mxu0 %v7434_v9 }
 0x670   :  { %v2585_v20 = vpack.c.bf16 %v7566_v30, %v7566_v30  ;;  %2689 = vmatprep.subr.bf16.mxu1 %v7239_v41  ;;  %5386 = vmatprep.subr.bf16.mxu0 %v8091_v36 }
 0x672   :  { %2619 = vmatmul.mubr.bf16.vlgmr.msra.gmra.mxu1 %v2585_v20  ;;  %5383 = vmatmul.mubr.bf16.vlgmr.msra.gmra.mxu0 %v2585_v20 }
 0x673   :  { %2690 = vmatpush1.bf16.msra.mxu1 %v7262_v38  ;;  %5387 = vmatpush3.bf16.msra.mxu0 %v7265_v46 }
 0x674   :  { %2691 = vmatprep.subr.bf16.mxu1 %v7270_v55  ;;  %5388 = vmatprep.subr.bf16.mxu0 %v8091_v36  ;;  %v8251_v55 = vld [vmem:[#allocation47_spill] sm:$0xff] }
 0x675   :  { %2721 = vmatprep.mubr.bf16.mxu1 %v8092_v62  ;;  %5402 = vmatprep.mubr.msk.bf16.mxu0 %vm6281_vm1, %v8091_v36 }
 0x677   :  { %2692 = vmatpush1.bf16.msra.mxu1 %v7278_v51  ;;  %5389 = vmatpush3.bf16.msra.mxu0 %v7281_v4 }
 0x678   :  { %2693 = vmatprep.subr.bf16.mxu1 %v7285_v8  ;;  %5390 = vmatprep.subr.bf16.mxu0 %v8091_v36 }
 0x67b   :  { %2694 = vmatpush1.bf16.msra.mxu1 %v7289_v27  ;;  %5391 = vmatpush3.bf16.msra.mxu0 %v7292_v49 }
 0x67c   :  { %2695 = vmatprep.subr.bf16.mxu1 %v7295_v58  ;;  %5392 = vmatprep.subr.bf16.mxu0 %v8091_v36 }
 0x67f   :  { %2696 = vmatpush1.bf16.msra.mxu1 %v7299_v2  ;;  %5393 = vmatpush3.bf16.msra.mxu0 %v7302_v0 }
 0x680   :  { %2697 = vmatprep.subr.bf16.mxu1 %v7305_v42  ;;  %5394 = vmatprep.subr.bf16.mxu0 %v8091_v36  ;;  %v8252_v42 = vld [vmem:[#allocation49_spill] sm:$0xff] }
 0x683   :  { %2698 = vmatpush1.bf16.msra.mxu1 %v7309_v60  ;;  %5395 = vmatpush3.bf16.msra.mxu0 %v7312_v56 }
 0x684   :  { %2699 = vmatprep.subr.bf16.mxu1 %v7315_v34  ;;  %5396 = vmatprep.subr.bf16.mxu0 %v8091_v36 }
 0x687   :  { %2700 = vmatpush1.bf16.msra.mxu1 %v7319_v57  ;;  %5397 = vmatpush3.bf16.msra.mxu0 %v8223_v39 }
 0x688   :  { %2701 = vmatprep.subr.bf16.mxu1 %v8224_v29  ;;  %5398 = vmatprep.subr.bf16.mxu0 %v8091_v36 }
 0x68b   :  { %2702 = vmatpush1.bf16.msra.mxu1 %v8225_v24  ;;  %5399 = vmatpush3.bf16.msra.mxu0 %v8226_v28 }
 0x68c   :  { %2703 = vmatprep.subr.bf16.mxu1 %v8227_v26  ;;  %5400 = vmatprep.subr.bf16.mxu0 %v8091_v36 }
 0x68f   :  { %2704 = vmatpush1.bf16.msra.mxu1 %v8228_v25  ;;  %5401 = vmatpush3.bf16.msra.mxu0 %v8229_v31 }
 0x690   :  { %2771 = vmatprep.subr.bf16.mxu1 %v8230_v19  ;;  %5406 = vmatprep.subr.bf16.mxu0 %v8091_v36 }
 0x6f2   :  { %v2436_v53 = vpop.f32.mrf.mxu1  ;;  %v2477_v61 = vpop.f32.mrf.mxu0 }
 0x6f3   :  { %v2437_v41 = vadd.f32 %v2436_v53, %v8188_v54  ;;  %v2478_v50 = vadd.f32 %v2477_v61, %v6681_v47 }
 0x6f4   :  { %v2438_v38 = vpop.f32.mrf.mxu1  ;;  %v5344_v46 = vpop.f32.mrf.mxu0 }
 0x6f5   :  { %v2483_v51 = vadd.f32 %v2437_v41, %v8251_v55  ;;  %v2439_v4 = vadd.f32 %v2438_v38, %v8190_v40  ;;  %v8253_v41 = vld [vmem:[#allocation48_spill] sm:$0xff] }
 0x6f6   :  { %v2440_v8 = vpop.f32.mrf.mxu1  ;;  %v2480_v27 = vpop.f32.mrf.mxu0 }
 0x6f7   :  { %v2484_v49 = vsub.f32 0.0, %v2483_v51  ;;  %v2490_v60 = vadd.f32 %v2439_v4, %v8252_v42 }
 0x6f8   :  { %v2441_v58 = vpop.f32.mrf.mxu1  ;;  %v5345_v2 = vpop.f32.mrf.mxu0 }
 0x6f9   :  { %v2485_v0 = vmul.f32 1.442695, %v2484_v49  ;;  %v2491_v56 = vsub.f32 0.0, %v2490_v60 }
 0x6fb   :  { %6000 = vpow2.f32 %v2485_v0  ;;  %v2492_v34 = vmul.f32 1.442695, %v2491_v56 }
 0x6fd   :  { %6002 = vpow2.f32 %v2492_v34 }
 0x708   :  { %v6001_v57 = vpop.eup %6000 }
 0x709   :  { %v2487_v39 = vadd.f32 1.0, %v6001_v57 }
 0x70a   :  { %v6003_v29 = vpop.eup %6002 }
 0x70b   :  { %6004 = vrcp.f32 %v2487_v39  ;;  %v2494_v31 = vadd.f32 1.0, %v6003_v29 }
 0x70d   :  { %6006 = vrcp.f32 %v2494_v31 }
 0x712   :  { %v2538_v24 = vpop.f32.mrf.mxu1  ;;  %v7613_v28 = vpop.f32.mrf.mxu0 }
 0x713   :  { %v2539_v2 = vadd.f32 %v2538_v24, %v6914_v1 }
 0x714   :  { %v2540_v26 = vpop.f32.mrf.mxu1  ;;  %v5364_v25 = vpop.f32.mrf.mxu0 }
 0x716   :  { %v2542_v19 = vpop.f32.mrf.mxu1  ;;  %v2582_v11 = vpop.f32.mrf.mxu0 }
 0x717   :  { %v5752_v11 = vld [vmem:[%s7896_s12 + $0x28] sm:$0xff]  }
 0x718   :  { %v6005_v20 = vpop.eup %6004  ;;  %v2543_v15 = vpop.f32.mrf.mxu1 }
 0x719   :  { %v5365_v10 = vpop.f32.mrf.mxu0  ;;  %v2497_v53 = vmul.f32 %v6005_v20, %v2478_v50  ;;  %v5753_v50 = vld [vmem:[%s7896_s12 + $0x20] sm:$0xff]   ;;  %v5754_v20 = vld [vmem:[%s7896_s12 + $0x18] sm:$0xff]   ;;  %v5755_v15 = vld [vmem:[%s7896_s12 + $0x10] sm:$0xff]  }
 0x71a   :  { %v6007_v46 = vpop.eup %6006  ;;  %v5756_v10 = vld [vmem:[%s7896_s12 + $0x8] sm:$0xff]  }
 0x71b   :  { %v2498_v38 = vadd.f32 %v2497_v53, %v8253_v41  ;;  %v2500_v55 = vsub.f32 1.0, %v6007_v46  ;;  %v2502_v8 = vmul.f32 %v6007_v46, %v7485_v16  ;;  %v5757_v53 = vld [vmem:[%s7896_s12] sm:$0xff]   ;;  %v5758_v41 = vld [vmem:[#allocation14 + $0x38] sm:$0xff]  }
 0x71d   :  { %6008 = vtanh.f32 %v2498_v38 }
 0x72a   :  { %v6009_v51 = vpop.eup %6008 }
 0x72b   :  { %v2501_v4 = vmul.f32 %v6009_v51, %v2500_v55  ;;  %v5759_v55 = vld [vmem:[#allocation14 + $0x30] sm:$0xff]  }
 0x72d   :  { %v7618_v27 = vadd.f32 %v2502_v8, %v2501_v4 }
 0x72f   :  { %v7622_v49 = vpack.c.bf16 %v7618_v27, %v7618_v27 }
 0x731   :  { %2722 = vmatmul.mubr.bf16.vlgmr.msra.gmra.mxu1 %v7622_v49  ;;  %5403 = vmatmul.mubr.bf16.vlgmr.msra.gmra.mxu0 %v7622_v49 }
 0x732   :  { %v2620_v61 = vpop.f32.mrf.mxu1  ;;  %v2661_v58 = vpop.f32.mrf.mxu0  ;;  %2772 = vmatpush1.bf16.msra.mxu1 %v8231_v21  ;;  %5407 = vmatpush3.bf16.msra.mxu0 %v8232_v43 }
 0x733   :  { %v2621_v16 = vadd.f32 %v2620_v61, %v6918_v12  ;;  %2773 = vmatprep.subr.bf16.mxu1 %v8233_v7  ;;  %5408 = vmatprep.subr.bf16.mxu0 %v8091_v36  ;;  %v2541_v7 = vadd.f32 %v2540_v26, %v6935_v17 }
 0x734   :  { %v2622_v0 = vpop.f32.mrf.mxu1  ;;  %v5384_v42 = vpop.f32.mrf.mxu0  ;;  %2803 = vmatprep.mubr.bf16.mxu1 %v8092_v62  ;;  %5422 = vmatprep.mubr.msk.bf16.mxu0 %vm6281_vm1, %v8091_v36 }
 0x735   :  { %v2667_v60 = vadd.f32 %v2621_v16, %v2539_v2  ;;  %v2623_v21 = vadd.f32 %v2622_v0, %v6928_v6  ;;  %v5761_v0 = vld [vmem:[#allocation14 + $0x20] sm:$0xff]   ;;  %v5762_v42 = vld [vmem:[#allocation14 + $0x18] sm:$0xff]  }
 0x736   :  { %v2624_v56 = vpop.f32.mrf.mxu1  ;;  %v2664_v43 = vpop.f32.mrf.mxu0  ;;  %2774 = vmatpush1.bf16.msra.mxu1 %v8234_v37  ;;  %5409 = vmatpush3.bf16.msra.mxu0 %v8235_v18 }
 0x737   :  { %v2668_v34 = vsub.f32 0.0, %v2667_v60  ;;  %2775 = vmatprep.subr.bf16.mxu1 %v8237_v22  ;;  %5410 = vmatprep.subr.bf16.mxu0 %v8091_v36  ;;  %v2674_v24 = vadd.f32 %v2623_v21, %v2541_v7  ;;  %v8255_v22 = vld [vmem:[#allocation59_spill] sm:$0xff]  ;;  %v5763_v60 = vld [vmem:[#allocation14 + $0x10] sm:$0xff]  }
 0x738   :  { %v2625_v57 = vpop.f32.mrf.mxu1  ;;  %v5385_v39 = vpop.f32.mrf.mxu0 }
 0x739   :  { %v2669_v29 = vmul.f32 1.442695, %v2668_v34  ;;  %v2675_v37 = vsub.f32 0.0, %v2674_v24 }
 0x73a   :  { %2776 = vmatpush1.bf16.msra.mxu1 %v7378_v45  ;;  %5411 = vmatpush3.bf16.msra.mxu0 %v8238_v52  ;;  %v8254_v45 = vld [vmem:[#allocation76_spill] sm:$0xff] }
 0x73b   :  { %6010 = vpow2.f32 %v2669_v29  ;;  %2777 = vmatprep.subr.bf16.mxu1 %v8239_v59  ;;  %5412 = vmatprep.subr.bf16.mxu0 %v8091_v36  ;;  %v2676_v18 = vmul.f32 1.442695, %v2675_v37 }
 0x73d   :  { %6012 = vpow2.f32 %v2676_v18 }
 0x73e   :  { %2778 = vmatpush1.bf16.msra.mxu1 %v8240_v63  ;;  %5413 = vmatpush3.bf16.msra.mxu0 %v8241_v14 }
 0x73f   :  { %2779 = vmatprep.subr.bf16.mxu1 %v8242_v3  ;;  %5414 = vmatprep.subr.bf16.mxu0 %v8091_v36  ;;  %v8256_v3 = vld [vmem:[#allocation52_spill] sm:$0xff] }
 0x742   :  { %2780 = vmatpush1.bf16.msra.mxu1 %v8243_v13  ;;  %5415 = vmatpush3.bf16.msra.mxu0 %v8244_v44  ;;  %v2662_v13 = vadd.f32 %v2661_v58, %v8256_v3  ;;  %v5760_v58 = vld [vmem:[#allocation14 + $0x28] sm:$0xff]  }
 0x743   :  { %2781 = vmatprep.subr.bf16.mxu1 %v8245_v32  ;;  %5416 = vmatprep.subr.bf16.mxu0 %v8091_v36  ;;  %v8257_v32 = vld [vmem:[#allocation53_spill] sm:$0xff] }
 0x746   :  { %2782 = vmatpush1.bf16.msra.mxu1 %v8254_v45  ;;  %5417 = vmatpush3.bf16.msra.mxu0 %v8247_v33  ;;  %v2580_v33 = vadd.f32 %v7613_v28, %v8257_v32  ;;  %v5750_v28 = vld [vmem:[%s7896_s12 + $0x38] sm:$0xff]  }
 0x747   :  { %2783 = vmatprep.subr.bf16.mxu1 %v8255_v22  ;;  %5418 = vmatprep.subr.bf16.mxu0 %v8091_v36 }
 0x748   :  { %v6011_v52 = vpop.eup %6010 }
 0x749   :  { %v2671_v59 = vadd.f32 1.0, %v6011_v52 }
 0x74a   :  { %2784 = vmatpush1.bf16.msra.mxu1 %v8249_v23  ;;  %5419 = vmatpush3.bf16.msra.mxu0 %v8250_v35  ;;  %v6013_v63 = vpop.eup %6012 }
 0x74b   :  { %6014 = vrcp.f32 %v2671_v59  ;;  %2785 = vmatprep.subr.bf16.mxu1 %v7424_v5  ;;  %5420 = vmatprep.subr.bf16.mxu0 %v8091_v36  ;;  %v2678_v14 = vadd.f32 1.0, %v6013_v63 }
 0x74d   :  { %6016 = vrcp.f32 %v2678_v14 }
 0x74e   :  { %2786 = vmatpush1.bf16.msra.mxu1 %v7431_v48  ;;  %5421 = vmatpush3.bf16.msra.mxu0 %v7434_v9 }
 0x74f   :  { %5426 = vmatprep.subr.bf16.mxu1 %v8091_v36  ;;  %5446 = vmatprep.subr.bf16.mxu0 %v8091_v36 }
 0x758   :  { %v6015_v44 = vpop.eup %6014 }
 0x759   :  { %v2681_v23 = vmul.f32 %v6015_v44, %v2662_v13 }
 0x75a   :  { %v6017_v35 = vpop.eup %6016 }
 0x75b   :  { %v2682_v5 = vadd.f32 %v2681_v23, %v2580_v33  ;;  %v2684_v48 = vsub.f32 1.0, %v6017_v35  ;;  %v2686_v25 = vmul.f32 %v6017_v35, %v7566_v30  ;;  %v5751_v30 = vld [vmem:[%s7896_s12 + $0x30] sm:$0xff]  }
 0x75d   :  { %6018 = vtanh.f32 %v2682_v5 }
 0x76a   :  { %v6019_v26 = vpop.eup %6018 }
 0x76b   :  { %v2685_v9 = vmul.f32 %v6019_v26, %v2684_v48 }
 0x76d   :  { %v7669_v31 = vadd.f32 %v2686_v25, %v2685_v9 }
 0x76f   :  { %v2770_v19 = vpack.c.bf16 %v7669_v31, %v7669_v31 }
 0x771   :  { %2804 = vmatmul.mubr.bf16.vlgmr.msra.gmra.mxu1 %v2770_v19  ;;  %5423 = vmatmul.mubr.bf16.vlgmr.msra.gmra.mxu0 %v2770_v19 }
 0x772   :  { %5442 = vmatprep.mubr.msk.bf16.mxu1 %vm6281_vm1, %v8091_v36  ;;  %5462 = vmatprep.mubr.msk.bf16.mxu0 %vm6281_vm1, %v8091_v36 }
 0x773   :  { %5427 = vmatpush3.bf16.msra.mxu1 %v5750_v28  ;;  %5447 = vmatpush3.bf16.msra.mxu0 %v5758_v41  ;;  %v5766_v41 = vld [vmem:[#allocation6 + $0xa8] ss:$12 sps:$4 sm:$0xff]  }
 0x774   :  { %5428 = vmatprep.subr.bf16.mxu1 %v8091_v36  ;;  %5448 = vmatprep.subr.bf16.mxu0 %v8091_v36 }
 0x777   :  { %5429 = vmatpush3.bf16.msra.mxu1 %v5751_v30  ;;  %5449 = vmatpush3.bf16.msra.mxu0 %v5759_v55  ;;  %v5776_v55 = vld [vmem:[#allocation6 + $0x7c] ss:$12 sps:$4 sm:$0xff]  }
 0x778   :  { %5430 = vmatprep.subr.bf16.mxu1 %v8091_v36  ;;  %5450 = vmatprep.subr.bf16.mxu0 %v8091_v36 }
 0x77b   :  { %5431 = vmatpush3.bf16.msra.mxu1 %v5752_v11  ;;  %5451 = vmatpush3.bf16.msra.mxu0 %v5760_v58  ;;  %v5782_v58 = vld [vmem:[#allocation6 + $0x48] ss:$12 sps:$4 sm:$0xff]  }
 0x77c   :  { %5432 = vmatprep.subr.bf16.mxu1 %v8091_v36  ;;  %5452 = vmatprep.subr.bf16.mxu0 %v8091_v36 }
 0x77f   :  { %5433 = vmatpush3.bf16.msra.mxu1 %v5753_v50  ;;  %5453 = vmatpush3.bf16.msra.mxu0 %v5761_v0  ;;  %v5792_v0 = vld [vmem:[#allocation6 + $0x1c] ss:$12 sps:$4 sm:$0xff]  }
 0x780   :  { %5434 = vmatprep.subr.bf16.mxu1 %v8091_v36  ;;  %5454 = vmatprep.subr.bf16.mxu0 %v8091_v36 }
 0x783   :  { %5435 = vmatpush3.bf16.msra.mxu1 %v5754_v20  ;;  %5455 = vmatpush3.bf16.msra.mxu0 %v5762_v42  ;;  %v5790_v42 = vld [vmem:[#allocation6 + $0x18] ss:$12 sps:$4 sm:$0xff]  }
 0x784   :  { %5436 = vmatprep.subr.bf16.mxu1 %v8091_v36  ;;  %5456 = vmatprep.subr.bf16.mxu0 %v8091_v36 }
 0x787   :  { %5437 = vmatpush3.bf16.msra.mxu1 %v5755_v15  ;;  %5457 = vmatpush3.bf16.msra.mxu0 %v5763_v60  ;;  %v7734_v60 = vld [vmem:[%s7897_s13] ss:$0 sm:$0xff] }
 0x788   :  { %5438 = vmatprep.subr.bf16.mxu1 %v8091_v36  ;;  %5458 = vmatprep.subr.bf16.mxu0 %v8091_v36 }
 0x78b   :  { %5439 = vmatpush3.bf16.msra.mxu1 %v5756_v10  ;;  %v5764_v10 = vld [vmem:[#allocation14 + $0x8] sm:$0xff]  }
 0x78c   :  { %5440 = vmatprep.subr.bf16.mxu1 %v8091_v36  ;;  %5459 = vmatpush3.bf16.msra.mxu0 %v5764_v10  ;;  %v5809_v10 = vld [vmem:[#allocation9 + $0x80] ss:$12 sps:$4 sm:$0xff]  }
 0x78d   :  { %5460 = vmatprep.subr.bf16.mxu0 %v8091_v36 }
 0x78f   :  { %5441 = vmatpush3.bf16.msra.mxu1 %v5757_v53  ;;  %v5765_v53 = vld [vmem:[#allocation14] sm:$0xff]  }
 0x790   :  { %5461 = vmatpush3.bf16.msra.mxu0 %v5765_v53  ;;  %v5812_v53 = vld [vmem:[#allocation9 + $0x64] ss:$12 sps:$4 sm:$0xff]  }
 0x791   :  { %5466 = vmatprep.subr.bf16.mxu0 %v8091_v36 }
 0x7f1   :  { %v2723_v38 = vpop.f32.mrf.mxu1  ;;  %v2764_v46 = vpop.f32.mrf.mxu0 }
 0x7f2   :  { %v2724_v43 = vadd.f32 %v2723_v38, %v6914_v1  ;;  %v2765_v26 = vadd.f32 %v2764_v46, %v8257_v32  ;;  %v5772_v38 = vld [vmem:[#allocation6 + $0x94] ss:$12 sps:$4 sm:$0xff]   ;;  %v5770_v46 = vld [vmem:[#allocation6 + $0x90] ss:$12 sps:$4 sm:$0xff]  }
 0x7f3   :  { %v2725_v51 = vpop.f32.mrf.mxu1  ;;  %v5404_v4 = vpop.f32.mrf.mxu0 }
 0x7f4   :  { %v2726_v18 = vadd.f32 %v2725_v51, %v6935_v17  ;;  %v5774_v51 = vld [vmem:[#allocation6 + $0x78] ss:$12 sps:$4 sm:$0xff]  }
 0x7f5   :  { %v2727_v8 = vpop.f32.mrf.mxu1  ;;  %v2767_v61 = vpop.f32.mrf.mxu0  ;;  %v5780_v4 = vld [vmem:[#allocation6 + $0x64] ss:$12 sps:$4 sm:$0xff]  }
 0x7f6   :  { %v5778_v8 = vld [vmem:[#allocation6 + $0x60] ss:$12 sps:$4 sm:$0xff]  }
 0x7f7   :  { %v2728_v2 = vpop.f32.mrf.mxu1  ;;  %v5405_v16 = vpop.f32.mrf.mxu0  ;;  %v5784_v61 = vld [vmem:[#allocation6 + $0x4c] ss:$12 sps:$4 sm:$0xff]  }
 0x7f8   :  { %v5788_v2 = vld [vmem:[#allocation6 + $0x34] ss:$12 sps:$4 sm:$0xff]   ;;  %v5786_v16 = vld [vmem:[#allocation6 + $0x30] ss:$12 sps:$4 sm:$0xff]  }
 0x831   :  { %v2805_v21 = vpop.f32.mrf.mxu1  ;;  %v2846_v56 = vpop.f32.mrf.mxu0 }
 0x832   :  { %v2806_v7 = vadd.f32 %v2805_v21, %v6918_v12  ;;  %v2847_v35 = vadd.f32 %v2846_v56, %v8256_v3 }
 0x833   :  { %v2807_v34 = vpop.f32.mrf.mxu1  ;;  %v5424_v57 = vpop.f32.mrf.mxu0 }
 0x834   :  { %v2852_v39 = vadd.f32 %v2806_v7, %v2724_v43  ;;  %v2808_v29 = vadd.f32 %v2807_v34, %v6928_v6  ;;  %v5769_v57 = vld [vmem:[#allocation6 + $0xb0] ss:$12 sps:$4 sm:$0xff]  }
 0x835   :  { %v2809_v24 = vpop.f32.mrf.mxu1  ;;  %v2849_v37 = vpop.f32.mrf.mxu0 }
 0x836   :  { %v2853_v45 = vsub.f32 0.0, %v2852_v39  ;;  %v2859_v63 = vadd.f32 %v2808_v29, %v2726_v18  ;;  %v5773_v24 = vld [vmem:[#allocation6 + $0x98] ss:$12 sps:$4 sm:$0xff]   ;;  %v5777_v37 = vld [vmem:[#allocation6 + $0x80] ss:$12 sps:$4 sm:$0xff]  }
 0x837   :  { %v2810_v22 = vpop.f32.mrf.mxu1  ;;  %v5425_v52 = vpop.f32.mrf.mxu0  ;;  %v5781_v18 = vld [vmem:[#allocation6 + $0x68] ss:$12 sps:$4 sm:$0xff]  }
 0x838   :  { %v2854_v59 = vmul.f32 1.442695, %v2853_v45  ;;  %v2860_v14 = vsub.f32 0.0, %v2859_v63  ;;  %v5785_v45 = vld [vmem:[#allocation6 + $0x50] ss:$12 sps:$4 sm:$0xff]  }
 0x839   :  { %v5789_v22 = vld [vmem:[#allocation6 + $0x38] ss:$12 sps:$4 sm:$0xff]   ;;  %v5793_v52 = vld [vmem:[#allocation6 + $0x20] ss:$12 sps:$4 sm:$0xff]  }
 0x83a   :  { %6020 = vpow2.f32 %v2854_v59  ;;  %v2861_v13 = vmul.f32 1.442695, %v2860_v14  ;;  %v5796_v59 = vld [vmem:[#allocation6 + $0x4] ss:$12 sps:$4 sm:$0xff]   ;;  %v5794_v63 = vld [vmem:[#allocation6] ss:$12 sps:$4 sm:$0xff]  }
 0x83b   :  { %v5797_v14 = vld [vmem:[#allocation6 + $0x8] ss:$12 sps:$4 sm:$0xff]  }
 0x83c   :  { %6022 = vpow2.f32 %v2861_v13  ;;  %v5800_v13 = vld [vmem:[#allocation9 + $0xac] ss:$12 sps:$4 sm:$0xff]  }
 0x847   :  { %v6021_v44 = vpop.eup %6020 }
 0x848   :  { %v2856_v33 = vadd.f32 1.0, %v6021_v44  ;;  %v7750_v44 = vld [vmem:[%s7899_s15] ss:$0 sm:$0xff] }
 0x849   :  { %v6023_v23 = vpop.eup %6022 }
 0x84a   :  { %6024 = vrcp.f32 %v2856_v33  ;;  %v2863_v5 = vadd.f32 1.0, %v6023_v23 }
 0x84c   :  { %6026 = vrcp.f32 %v2863_v5 }
 0x857   :  { %v6025_v48 = vpop.eup %6024 }
 0x858   :  { %v2866_v9 = vmul.f32 %v6025_v48, %v2847_v35  ;;  %v5798_v35 = vld [vmem:[#allocation9 + $0xa8] ss:$12 sps:$4 sm:$0xff]   ;;  %v5801_v48 = vld [vmem:[#allocation9 + $0xb0] ss:$12 sps:$4 sm:$0xff]  }
 0x859   :  { %v6027_v19 = vpop.eup %6026 }
 0x85a   :  { %v2867_v25 = vadd.f32 %v2866_v9, %v2765_v26  ;;  %v2869_v28 = vsub.f32 1.0, %v6027_v19  ;;  %v2871_v50 = vmul.f32 %v6027_v19, %v7669_v31  ;;  %v5768_v31 = vld [vmem:[#allocation6 + $0xac] ss:$12 sps:$4 sm:$0xff]   ;;  %v5804_v9 = vld [vmem:[#allocation9 + $0x94] ss:$12 sps:$4 sm:$0xff]  }
 0x85b   :  { %3246 = vmatprep.subr.bf16.mxu1 %v5768_v31  ;;  %v5813_v31 = vld [vmem:[#allocation9 + $0x68] ss:$12 sps:$4 sm:$0xff]  }
 0x85c   :  { %6028 = vtanh.f32 %v2867_v25 }
 0x869   :  { %v6029_v30 = vpop.eup %6028 }
 0x86a   :  { %v2870_v11 = vmul.f32 %v6029_v30, %v2869_v28  ;;  %v5802_v28 = vld [vmem:[#allocation9 + $0x90] ss:$12 sps:$4 sm:$0xff]   ;;  %v5805_v30 = vld [vmem:[#allocation9 + $0x98] ss:$12 sps:$4 sm:$0xff]  }
 0x86c   :  { %v7721_v20 = vadd.f32 %v2871_v50, %v2870_v11  ;;  %v5808_v11 = vld [vmem:[#allocation9 + $0x7c] ss:$12 sps:$4 sm:$0xff]   ;;  %v5806_v50 = vld [vmem:[#allocation9 + $0x78] ss:$12 sps:$4 sm:$0xff]  }
 0x86e   :  { %v7725_v15 = vpack.c.bf16 %v7721_v20, %v7721_v20 }
 0x870   :  { %5443 = vmatmul.mubr.bf16.vlgmr.msra.gmra.mxu1 %v7725_v15 }
 0x871   :  { %3278 = vmatprep.mubr.bf16.mxu1 %v8092_v62  ;;  %3247 = vmatpush1.bf16.msra.mxu1 %v5766_v41  ;;  %v5810_v41 = vld [vmem:[#allocation9 + $0x60] ss:$12 sps:$4 sm:$0xff]  }
 0x872   :  { %3248 = vmatprep.subr.bf16.mxu1 %v5772_v38  ;;  %v5816_v38 = vld [vmem:[#allocation9 + $0x4c] ss:$12 sps:$4 sm:$0xff]  }
 0x875   :  { %3249 = vmatpush1.bf16.msra.mxu1 %v5770_v46  ;;  %v5814_v46 = vld [vmem:[#allocation9 + $0x48] ss:$12 sps:$4 sm:$0xff]  }
 0x876   :  { %3250 = vmatprep.subr.bf16.mxu1 %v5776_v55  ;;  %v5817_v55 = vld [vmem:[#allocation9 + $0x50] ss:$12 sps:$4 sm:$0xff]  }
 0x879   :  { %3251 = vmatpush1.bf16.msra.mxu1 %v5774_v51  ;;  %v5820_v51 = vld [vmem:[#allocation9 + $0x34] ss:$12 sps:$4 sm:$0xff]  }
 0x87a   :  { %3252 = vmatprep.subr.bf16.mxu1 %v5780_v4  ;;  %v5818_v4 = vld [vmem:[#allocation9 + $0x30] ss:$12 sps:$4 sm:$0xff]  }
 0x87d   :  { %3253 = vmatpush1.bf16.msra.mxu1 %v5778_v8  ;;  %v5821_v8 = vld [vmem:[#allocation9 + $0x38] ss:$12 sps:$4 sm:$0xff]  }
 0x87e   :  { %3254 = vmatprep.subr.bf16.mxu1 %v5784_v61  ;;  %v5824_v61 = vld [vmem:[#allocation9 + $0x1c] ss:$12 sps:$4 sm:$0xff]  }
 0x881   :  { %3255 = vmatpush1.bf16.msra.mxu1 %v5782_v58  ;;  %v5822_v58 = vld [vmem:[#allocation9 + $0x18] ss:$12 sps:$4 sm:$0xff]  }
 0x882   :  { %3256 = vmatprep.subr.bf16.mxu1 %v5788_v2  ;;  %v5825_v2 = vld [vmem:[#allocation9 + $0x20] ss:$12 sps:$4 sm:$0xff]  }
 0x885   :  { %3257 = vmatpush1.bf16.msra.mxu1 %v5786_v16  ;;  %v5828_v16 = vld [vmem:[#allocation9 + $0x4] ss:$12 sps:$4 sm:$0xff]  }
 0x886   :  { %3258 = vmatprep.subr.bf16.mxu1 %v5792_v0  ;;  %v5826_v0 = vld [vmem:[#allocation9] ss:$12 sps:$4 sm:$0xff]  }
 0x889   :  { %3259 = vmatpush1.bf16.msra.mxu1 %v5790_v42  ;;  %v5829_v42 = vld [vmem:[#allocation9 + $0x8] ss:$12 sps:$4 sm:$0xff]  }
 0x88a   :  { %3260 = vmatprep.subr.bf16.mxu1 %v5796_v59  ;;  %v5852_v59 = vld [vmem:[#allocation11 + $0x34] ss:$12 sps:$4 sm:$0xff]  }
 0x88d   :  { %3261 = vmatpush1.bf16.msra.mxu1 %v5794_v63  ;;  %v5850_v63 = vld [vmem:[#allocation11 + $0x30] ss:$12 sps:$4 sm:$0xff]  }
 0x88e   :  { %3487 = vmatprep.subr.bf16.mxu1 %v5800_v13  ;;  %v5856_v13 = vld [vmem:[#allocation11 + $0x1c] ss:$12 sps:$4 sm:$0xff]  }
 0x930   :  { %v2972_v21 = vpop.f32.mrf.mxu1 }
 0x931   :  { %v2973_v56 = vadd.f32 %v7734_v60, %v2972_v21  ;;  %v5832_v21 = vld [vmem:[#allocation11 + $0xac] ss:$12 sps:$4 sm:$0xff]  }
 0x932   :  { %v5444_v43 = vpop.f32.mrf.mxu1 }
 0x933   :  { %v2978_v7 = vmax.f32 %v2973_v56, 0.0  ;;  %v5830_v56 = vld [vmem:[#allocation11 + $0xa8] ss:$12 sps:$4 sm:$0xff]   ;;  %v5833_v43 = vld [vmem:[#allocation11 + $0xb0] ss:$12 sps:$4 sm:$0xff]  }
 0x934   :  { %v2975_v34 = vpop.f32.mrf.mxu1 }
 0x935   :  { %v2979_v39 = vpack.c.bf16 %v2978_v7, %v2978_v7  ;;  %v5836_v7 = vld [vmem:[#allocation11 + $0x94] ss:$12 sps:$4 sm:$0xff]   ;;  %v5834_v34 = vld [vmem:[#allocation11 + $0x90] ss:$12 sps:$4 sm:$0xff]  }
 0x936   :  { %v5445_v29 = vpop.f32.mrf.mxu1 }
 0x937   :  { %5463 = vmatmul.mubr.bf16.vlgmr.msra.gmra.mxu0 %v2979_v39  ;;  %v5838_v39 = vld [vmem:[#allocation11 + $0x78] ss:$12 sps:$4 sm:$0xff]   ;;  %v5841_v29 = vld [vmem:[#allocation11 + $0x80] ss:$12 sps:$4 sm:$0xff]  }
 0x938   :  { %5467 = vmatpush3.bf16.msra.mxu0 %v5769_v57  ;;  %5482 = vmatprep.mubr.msk.bf16.mxu0 %vm6281_vm1, %v8091_v36  ;;  %v5837_v57 = vld [vmem:[#allocation11 + $0x98] ss:$12 sps:$4 sm:$0xff]  }
 0x939   :  { %5468 = vmatprep.subr.bf16.mxu0 %v8091_v36 }
 0x93c   :  { %5469 = vmatpush3.bf16.msra.mxu0 %v5773_v24  ;;  %v5844_v24 = vld [vmem:[#allocation11 + $0x64] ss:$12 sps:$4 sm:$0xff]  }
 0x93d   :  { %5470 = vmatprep.subr.bf16.mxu0 %v8091_v36 }
 0x940   :  { %5471 = vmatpush3.bf16.msra.mxu0 %v5777_v37  ;;  %v5842_v37 = vld [vmem:[#allocation11 + $0x60] ss:$12 sps:$4 sm:$0xff]  }
 0x941   :  { %5472 = vmatprep.subr.bf16.mxu0 %v8091_v36 }
 0x944   :  { %5473 = vmatpush3.bf16.msra.mxu0 %v5781_v18  ;;  %v5845_v18 = vld [vmem:[#allocation11 + $0x68] ss:$12 sps:$4 sm:$0xff]  }
 0x945   :  { %5474 = vmatprep.subr.bf16.mxu0 %v8091_v36 }
 0x948   :  { %5475 = vmatpush3.bf16.msra.mxu0 %v5785_v45  ;;  %v5846_v45 = vld [vmem:[#allocation11 + $0x48] ss:$12 sps:$4 sm:$0xff]  }
 0x949   :  { %5476 = vmatprep.subr.bf16.mxu0 %v8091_v36 }
 0x94c   :  { %5477 = vmatpush3.bf16.msra.mxu0 %v5789_v22  ;;  %v5848_v22 = vld [vmem:[#allocation11 + $0x4c] ss:$12 sps:$4 sm:$0xff]  }
 0x94d   :  { %5478 = vmatprep.subr.bf16.mxu0 %v8091_v36 }
 0x950   :  { %5479 = vmatpush3.bf16.msra.mxu0 %v5793_v52  ;;  %v5849_v52 = vld [vmem:[#allocation11 + $0x50] ss:$12 sps:$4 sm:$0xff]  }
 0x951   :  { %5480 = vmatprep.subr.bf16.mxu0 %v8091_v36 }
 0x954   :  { %5481 = vmatpush3.bf16.msra.mxu0 %v5797_v14  ;;  %v5853_v14 = vld [vmem:[#allocation11 + $0x38] ss:$12 sps:$4 sm:$0xff]  }
 0x955   :  { %5486 = vmatprep.subr.bf16.mxu0 %v8091_v36 }
 0x9f7   :  { %v3078_v33 = vpop.f32.mrf.mxu0 }
 0x9f8   :  { %v7753_v23 = vadd.f32 %v7750_v44, %v3078_v33  ;;  %v5854_v33 = vld [vmem:[#allocation11 + $0x18] ss:$12 sps:$4 sm:$0xff]  }
 0x9f9   :  { %v5464_v5 = vpop.f32.mrf.mxu0 }
 0x9fa   :  { %v3085_v26 = vpack.c.bf16 %v7753_v23, %v7753_v23  ;;  %v5857_v5 = vld [vmem:[#allocation11 + $0x20] ss:$12 sps:$4 sm:$0xff]  }
 0x9fb   :  { %v3081_v25 = vpop.f32.mrf.mxu0 }
 0x9fc   :  { %3279 = vmatmul.mubr.bf16.vlgmr.msra.gmra.mxu1 %v3085_v26  ;;  %5483 = vmatmul.mubr.bf16.vlgmr.msra.gmra.mxu0 %v3085_v26  ;;  %v5861_v26 = vld [vmem:[#allocation11 + $0x8] ss:$12 sps:$4 sm:$0xff]  }
 0x9fd   :  { %3488 = vmatpush1.bf16.msra.mxu1 %v5798_v35  ;;  %5487 = vmatpush3.bf16.msra.mxu0 %v5801_v48  ;;  %v5465_v19 = vpop.f32.mrf.mxu0  ;;  %v5860_v35 = vld [vmem:[#allocation11 + $0x4] ss:$12 sps:$4 sm:$0xff]   ;;  %v5858_v48 = vld [vmem:[#allocation11] ss:$12 sps:$4 sm:$0xff]  }
 0x9fe   :  { %3489 = vmatprep.subr.bf16.mxu1 %v5804_v9  ;;  %5488 = vmatprep.subr.bf16.mxu0 %v8091_v36  ;;  %v5864_v9 = vld [vmem:[#allocation12 + $0xac] ss:$12 sps:$4 sm:$0xff]  }
 0x9ff   :  { %3519 = vmatprep.mubr.bf16.mxu1 %v8092_v62  ;;  %5502 = vmatprep.mubr.msk.bf16.mxu0 %vm6281_vm1, %v8091_v36 }
 0xa01   :  { %3490 = vmatpush1.bf16.msra.mxu1 %v5802_v28  ;;  %5489 = vmatpush3.bf16.msra.mxu0 %v5805_v30 }
 0xa02   :  { %3491 = vmatprep.subr.bf16.mxu1 %v5808_v11  ;;  %5490 = vmatprep.subr.bf16.mxu0 %v8091_v36 }
 0xa05   :  { %3492 = vmatpush1.bf16.msra.mxu1 %v5806_v50  ;;  %5491 = vmatpush3.bf16.msra.mxu0 %v5809_v10 }
 0xa06   :  { %3493 = vmatprep.subr.bf16.mxu1 %v5812_v53  ;;  %5492 = vmatprep.subr.bf16.mxu0 %v8091_v36 }
 0xa09   :  { %3494 = vmatpush1.bf16.msra.mxu1 %v5810_v41  ;;  %5493 = vmatpush3.bf16.msra.mxu0 %v5813_v31  ;;  %v572_v41 = vld [vmem:[%s7890_s6] sm:$0x7]  ;;  %v8258_v31 = vld [vmem:[#allocation35_spill] sm:$0xff] }
 0xa0a   :  { %3495 = vmatprep.subr.bf16.mxu1 %v5816_v38  ;;  %5494 = vmatprep.subr.bf16.mxu0 %v8091_v36  ;;  %v577_v38 = vrot.slane %v572_v41, %v8258_v31  ;;  %v5880_v31 = vld [vmem:[#allocation12 + $0x4c] ss:$12 sps:$4 sm:$0xff]  }
 0xa0d   :  { %3496 = vmatpush1.bf16.msra.mxu1 %v5814_v46  ;;  %5495 = vmatpush3.bf16.msra.mxu0 %v5817_v55 }
 0xa0e   :  { %3497 = vmatprep.subr.bf16.mxu1 %v5820_v51  ;;  %5496 = vmatprep.subr.bf16.mxu0 %v8091_v36 }
 0xa11   :  { %3498 = vmatpush1.bf16.msra.mxu1 %v5818_v4  ;;  %5497 = vmatpush3.bf16.msra.mxu0 %v5821_v8  ;;  %v8259_v4 = vld [vmem:[#allocation37_spill] sm:$0xff] }
 0xa12   :  { %3499 = vmatprep.subr.bf16.mxu1 %v5824_v61  ;;  %5498 = vmatprep.subr.bf16.mxu0 %v8091_v36  ;;  %v581_v8 = vrot.slane %v572_v41, %v8259_v4  ;;  %v5888_v4 = vld [vmem:[#allocation12 + $0x1c] ss:$12 sps:$4 sm:$0xff]  }
 0xa15   :  { %3500 = vmatpush1.bf16.msra.mxu1 %v5822_v58  ;;  %5499 = vmatpush3.bf16.msra.mxu0 %v5825_v2 }
 0xa16   :  { %3501 = vmatprep.subr.bf16.mxu1 %v5828_v16  ;;  %5500 = vmatprep.subr.bf16.mxu0 %v8091_v36 }
 0xa19   :  { %3502 = vmatpush1.bf16.msra.mxu1 %v5826_v0  ;;  %5501 = vmatpush3.bf16.msra.mxu0 %v5829_v42 }
 0xa1a   :  { %5506 = vmatprep.subr.bf16.mxu0 %v8091_v36  ;;  %3750 = vmatprep.subr.bf16.mxu1 %v5832_v21 }
 0xa1c   :  { %3520 = vmatmul.mubr.bf16.vlgmr.msra.gmra.mxu1 %v7622_v49  ;;  %5503 = vmatmul.mubr.bf16.vlgmr.msra.gmra.mxu0 %v7622_v49  ;;  %v5840_v49 = vld [vmem:[#allocation11 + $0x7c] ss:$12 sps:$4 sm:$0xff]  }
 0xa1d   :  { %3782 = vmatprep.mubr.bf16.mxu1 %v8092_v62  ;;  %5522 = vmatprep.mubr.msk.bf16.mxu0 %vm6281_vm1, %v8091_v36 }
 0xa1e   :  { %3751 = vmatpush1.bf16.msra.mxu1 %v5830_v56  ;;  %5507 = vmatpush3.bf16.msra.mxu0 %v5833_v43 }
 0xa1f   :  { %5508 = vmatprep.subr.bf16.mxu0 %v8091_v36  ;;  %3752 = vmatprep.subr.bf16.mxu1 %v5836_v7 }
 0xa22   :  { %3753 = vmatpush1.bf16.msra.mxu1 %v5834_v34  ;;  %5509 = vmatpush3.bf16.msra.mxu0 %v5837_v57 }
 0xa23   :  { %5510 = vmatprep.subr.bf16.mxu0 %v8091_v36  ;;  %3754 = vmatprep.subr.bf16.mxu1 %v5840_v49 }
 0xa26   :  { %3755 = vmatpush1.bf16.msra.mxu1 %v5838_v39  ;;  %5511 = vmatpush3.bf16.msra.mxu0 %v5841_v29 }
 0xa27   :  { %5512 = vmatprep.subr.bf16.mxu0 %v8091_v36  ;;  %3756 = vmatprep.subr.bf16.mxu1 %v5844_v24 }
 0xa2a   :  { %3757 = vmatpush1.bf16.msra.mxu1 %v5842_v37  ;;  %5513 = vmatpush3.bf16.msra.mxu0 %v5845_v18  ;;  %v8260_v18 = vld [vmem:[#allocation36_spill] sm:$0xff] }
 0xa2b   :  { %5514 = vmatprep.subr.bf16.mxu0 %v8091_v36  ;;  %3758 = vmatprep.subr.bf16.mxu1 %v5848_v22 }
 0xa2e   :  { %3759 = vmatpush1.bf16.msra.mxu1 %v5846_v45  ;;  %5515 = vmatpush3.bf16.msra.mxu0 %v5849_v52  ;;  %v585_v45 = vrot.slane %v572_v41, %v8260_v18  ;;  %v5877_v41 = vld [vmem:[#allocation12 + $0x68] ss:$12 sps:$4 sm:$0xff]  }
 0xa2f   :  { %3760 = vmatprep.subr.bf16.mxu1 %v5852_v59  ;;  %5516 = vmatprep.subr.bf16.mxu0 %v8091_v36 }
 0xa32   :  { %3761 = vmatpush1.bf16.msra.mxu1 %v5850_v63  ;;  %5517 = vmatpush3.bf16.msra.mxu0 %v5853_v14 }
 0xa33   :  { %3762 = vmatprep.subr.bf16.mxu1 %v5856_v13  ;;  %5518 = vmatprep.subr.bf16.mxu0 %v8091_v36 }
 0xa36   :  { %3763 = vmatpush1.bf16.msra.mxu1 %v5854_v33  ;;  %5519 = vmatpush3.bf16.msra.mxu0 %v5857_v5 }
 0xa37   :  { %3764 = vmatprep.subr.bf16.mxu1 %v5860_v35  ;;  %5520 = vmatprep.subr.bf16.mxu0 %v8091_v36 }
 0xa3a   :  { %3765 = vmatpush1.bf16.msra.mxu1 %v5858_v48  ;;  %5521 = vmatpush3.bf16.msra.mxu0 %v5861_v26 }
 0xa3b   :  { %3991 = vmatprep.subr.bf16.mxu1 %v5864_v9  ;;  %5526 = vmatprep.subr.bf16.mxu0 %v8091_v36  ;;  %v5862_v9 = vld [vmem:[#allocation12 + $0xa8] ss:$12 sps:$4 sm:$0xff]  }
 0xabc   :  { %v3280_v25 = vpop.f32.mrf.mxu1  ;;  %v3321_v19 = vpop.f32.mrf.mxu0 }
 0xabd   :  { %v3281_v51 = vadd.f32 %v3280_v25, %v577_v38  ;;  %v3322_v59 = vadd.f32 %v3321_v19, %v585_v45  ;;  %v5865_v25 = vld [vmem:[#allocation12 + $0xb0] ss:$12 sps:$4 sm:$0xff]   ;;  %v5869_v19 = vld [vmem:[#allocation12 + $0x98] ss:$12 sps:$4 sm:$0xff]  }
 0xabe   :  { %v3282_v28 = vpop.f32.mrf.mxu1  ;;  %v5484_v30 = vpop.f32.mrf.mxu0  ;;  %v5881_v38 = vld [vmem:[#allocation12 + $0x50] ss:$12 sps:$4 sm:$0xff]  }
 0xabf   :  { %v3283_v56 = vadd.f32 %v3282_v28, %v581_v8  ;;  %v5868_v30 = vld [vmem:[#allocation12 + $0x94] ss:$12 sps:$4 sm:$0xff]   ;;  %v5886_v8 = vld [vmem:[#allocation12 + $0x18] ss:$12 sps:$4 sm:$0xff]  }
 0xac0   :  { %v3284_v11 = vpop.f32.mrf.mxu1  ;;  %v3324_v50 = vpop.f32.mrf.mxu0 }
 0xac1   :  { %v5872_v11 = vld [vmem:[#allocation12 + $0x7c] ss:$12 sps:$4 sm:$0xff]   ;;  %v5873_v50 = vld [vmem:[#allocation12 + $0x80] ss:$12 sps:$4 sm:$0xff]  }
 0xac2   :  { %v3285_v10 = vpop.f32.mrf.mxu1  ;;  %v5485_v53 = vpop.f32.mrf.mxu0 }
 0xac3   :  { %v5876_v10 = vld [vmem:[#allocation12 + $0x64] ss:$12 sps:$4 sm:$0xff]   ;;  %v5874_v53 = vld [vmem:[#allocation12 + $0x60] ss:$12 sps:$4 sm:$0xff]  }
 0xadc   :  { %v3521_v46 = vpop.f32.mrf.mxu1  ;;  %v3562_v55 = vpop.f32.mrf.mxu0 }
 0xadd   :  { %v3522_v61 = vadd.f32 %v3521_v46, %v8188_v54  ;;  %v5884_v46 = vld [vmem:[#allocation12 + $0x34] ss:$12 sps:$4 sm:$0xff]  }
 0xade   :  { %v3523_v58 = vpop.f32.mrf.mxu1  ;;  %v5504_v2 = vpop.f32.mrf.mxu0 }
 0xadf   :  { %v3568_v16 = vadd.f32 %v3522_v61, %v3281_v51  ;;  %v3524_v0 = vadd.f32 %v3523_v58, %v8190_v40  ;;  %v3563_v40 = vadd.f32 %v3562_v55, %v6681_v47  ;;  %v5866_v47 = vld [vmem:[#allocation12 + $0x90] ss:$12 sps:$4 sm:$0xff]   ;;  %v5885_v51 = vld [vmem:[#allocation12 + $0x38] ss:$12 sps:$4 sm:$0xff]   ;;  %v5889_v61 = vld [vmem:[#allocation12 + $0x20] ss:$12 sps:$4 sm:$0xff]  }
 0xae0   :  { %v3525_v42 = vpop.f32.mrf.mxu1  ;;  %v3565_v21 = vpop.f32.mrf.mxu0  ;;  %v5882_v55 = vld [vmem:[#allocation12 + $0x30] ss:$12 sps:$4 sm:$0xff]   ;;  %v5890_v2 = vld [vmem:[#allocation12] ss:$12 sps:$4 sm:$0xff]  }
 0xae1   :  { %v3569_v43 = vsub.f32 0.0, %v3568_v16  ;;  %v3575_v49 = vadd.f32 %v3524_v0, %v3283_v56  ;;  %v5892_v58 = vld [vmem:[#allocation12 + $0x4] ss:$12 sps:$4 sm:$0xff]   ;;  %v5893_v16 = vld [vmem:[#allocation12 + $0x8] ss:$12 sps:$4 sm:$0xff]   ;;  %v5894_v0 = vld [vmem:[%s7896_s12 + $0x38] sm:$0xff]  }
 0xae2   :  { %v3526_v7 = vpop.f32.mrf.mxu1  ;;  %v5505_v34 = vpop.f32.mrf.mxu0  ;;  %v5895_v42 = vld [vmem:[%s7896_s12 + $0x30] sm:$0xff]   ;;  %v5897_v21 = vld [vmem:[%s7896_s12 + $0x20] sm:$0xff]   ;;  %v5898_v56 = vld [vmem:[%s7896_s12 + $0x18] sm:$0xff]  }
 0xae3   :  { %v3570_v57 = vmul.f32 1.442695, %v3569_v43  ;;  %v3576_v39 = vsub.f32 0.0, %v3575_v49  ;;  %v5899_v43 = vld [vmem:[%s7896_s12 + $0x10] sm:$0xff]   ;;  %v5900_v7 = vld [vmem:[%s7896_s12 + $0x8] sm:$0xff]   ;;  %v5901_v34 = vld [vmem:[%s7896_s12] sm:$0xff]  }
 0xae4   :  { %v5903_v49 = vld [vmem:[#allocation14 + $0x30] sm:$0xff]  }
 0xae5   :  { %6030 = vpow2.f32 %v3570_v57  ;;  %v3577_v29 = vmul.f32 1.442695, %v3576_v39  ;;  %v5902_v57 = vld [vmem:[#allocation14 + $0x38] sm:$0xff]   ;;  %v5904_v39 = vld [vmem:[#allocation14 + $0x28] sm:$0xff]  }
 0xae7   :  { %6032 = vpow2.f32 %v3577_v29  ;;  %v5905_v29 = vld [vmem:[#allocation14 + $0x20] sm:$0xff]  }
 0xaf2   :  { %v6031_v24 = vpop.eup %6030 }
 0xaf3   :  { %v3572_v37 = vadd.f32 1.0, %v6031_v24  ;;  %v5906_v24 = vld [vmem:[#allocation14 + $0x18] sm:$0xff]  }
 0xaf4   :  { %v6033_v54 = vpop.eup %6032 }
 0xaf5   :  { %6034 = vrcp.f32 %v3572_v37  ;;  %v3579_v22 = vadd.f32 1.0, %v6033_v54  ;;  %v5907_v37 = vld [vmem:[#allocation14 + $0x10] sm:$0xff]   ;;  %v5908_v54 = vld [vmem:[#allocation14 + $0x8] sm:$0xff]  }
 0xaf7   :  { %6036 = vrcp.f32 %v3579_v22 }
 0xb02   :  { %v6035_v52 = vpop.eup %6034 }
 0xb03   :  { %v3582_v63 = vmul.f32 %v6035_v52, %v3563_v40 }
 0xb04   :  { %v6037_v13 = vpop.eup %6036 }
 0xb05   :  { %v3583_v14 = vadd.f32 %v3582_v63, %v3322_v59  ;;  %v3585_v33 = vsub.f32 1.0, %v6037_v13  ;;  %v3587_v48 = vmul.f32 %v6037_v13, %v7618_v27  ;;  %v5870_v27 = vld [vmem:[#allocation12 + $0x78] ss:$12 sps:$4 sm:$0xff]  }
 0xb07   :  { %6038 = vtanh.f32 %v3583_v14 }
 0xb14   :  { %v6039_v5 = vpop.eup %6038 }
 0xb15   :  { %v3586_v35 = vmul.f32 %v6039_v5, %v3585_v33 }
 0xb17   :  { %v3588_v26 = vadd.f32 %v3587_v48, %v3586_v35 }
 0xb19   :  { %v3589_v28 = vpack.c.bf16 %v3588_v26, %v3588_v26 }
 0xb1b   :  { %3783 = vmatmul.mubr.bf16.vlgmr.msra.gmra.mxu1 %v3589_v28  ;;  %5523 = vmatmul.mubr.bf16.vlgmr.msra.gmra.mxu0 %v3589_v28 }
 0xb1c   :  { %3992 = vmatpush1.bf16.msra.mxu1 %v5862_v9  ;;  %5527 = vmatpush3.bf16.msra.mxu0 %v5865_v25 }
 0xb1d   :  { %3993 = vmatprep.subr.bf16.mxu1 %v5868_v30  ;;  %5528 = vmatprep.subr.bf16.mxu0 %v8091_v36 }
 0xb1e   :  { %4023 = vmatprep.mubr.bf16.mxu1 %v8092_v62  ;;  %5542 = vmatprep.mubr.msk.bf16.mxu0 %vm6281_vm1, %v8091_v36  ;;  %v5878_v62 = vld [vmem:[#allocation12 + $0x48] ss:$12 sps:$4 sm:$0xff]  }
 0xb20   :  { %3994 = vmatpush1.bf16.msra.mxu1 %v5866_v47  ;;  %5529 = vmatpush3.bf16.msra.mxu0 %v5869_v19 }
 0xb21   :  { %3995 = vmatprep.subr.bf16.mxu1 %v5872_v11  ;;  %5530 = vmatprep.subr.bf16.mxu0 %v8091_v36 }
 0xb24   :  { %3996 = vmatpush1.bf16.msra.mxu1 %v5870_v27  ;;  %5531 = vmatpush3.bf16.msra.mxu0 %v5873_v50 }
 0xb25   :  { %3997 = vmatprep.subr.bf16.mxu1 %v5876_v10  ;;  %5532 = vmatprep.subr.bf16.mxu0 %v8091_v36 }
 0xb28   :  { %3998 = vmatpush1.bf16.msra.mxu1 %v5874_v53  ;;  %5533 = vmatpush3.bf16.msra.mxu0 %v5877_v41 }
 0xb29   :  { %3999 = vmatprep.subr.bf16.mxu1 %v5880_v31  ;;  %5534 = vmatprep.subr.bf16.mxu0 %v8091_v36 }
 0xb2c   :  { %4000 = vmatpush1.bf16.msra.mxu1 %v5878_v62  ;;  %5535 = vmatpush3.bf16.msra.mxu0 %v5881_v38 }
 0xb2d   :  { %4001 = vmatprep.subr.bf16.mxu1 %v5884_v46  ;;  %5536 = vmatprep.subr.bf16.mxu0 %v8091_v36 }
 0xb30   :  { %4002 = vmatpush1.bf16.msra.mxu1 %v5882_v55  ;;  %5537 = vmatpush3.bf16.msra.mxu0 %v5885_v51 }
 0xb31   :  { %4003 = vmatprep.subr.bf16.mxu1 %v5888_v4  ;;  %5538 = vmatprep.subr.bf16.mxu0 %v8091_v36 }
 0xb34   :  { %4004 = vmatpush1.bf16.msra.mxu1 %v5886_v8  ;;  %5539 = vmatpush3.bf16.msra.mxu0 %v5889_v61 }
 0xb35   :  { %4005 = vmatprep.subr.bf16.mxu1 %v5892_v58  ;;  %5540 = vmatprep.subr.bf16.mxu0 %v8091_v36 }
 0xb38   :  { %4006 = vmatpush1.bf16.msra.mxu1 %v5890_v2  ;;  %5541 = vmatpush3.bf16.msra.mxu0 %v5893_v16 }
 0xb39   :  { %5546 = vmatprep.subr.bf16.mxu1 %v8091_v36  ;;  %5566 = vmatprep.subr.bf16.mxu0 %v8091_v36 }
 0xb3b   :  { %4024 = vmatmul.mubr.bf16.vlgmr.msra.gmra.mxu1 %v7725_v15  ;;  %5543 = vmatmul.mubr.bf16.vlgmr.msra.gmra.mxu0 %v7725_v15  ;;  %v5896_v15 = vld [vmem:[%s7896_s12 + $0x28] sm:$0xff]  }
 0xb3c   :  { %5562 = vmatprep.mubr.msk.bf16.mxu1 %vm6281_vm1, %v8091_v36  ;;  %5582 = vmatprep.mubr.msk.bf16.mxu0 %vm6281_vm1, %v8091_v36 }
 0xb3d   :  { %5547 = vmatpush3.bf16.msra.mxu1 %v5894_v0  ;;  %5567 = vmatpush3.bf16.msra.mxu0 %v5902_v57  ;;  %v5909_v0 = vld [vmem:[#allocation14] sm:$0xff]  }
 0xb3e   :  { %5548 = vmatprep.subr.bf16.mxu1 %v8091_v36  ;;  %5568 = vmatprep.subr.bf16.mxu0 %v8091_v36 }
 0xb41   :  { %5549 = vmatpush3.bf16.msra.mxu1 %v5895_v42  ;;  %5569 = vmatpush3.bf16.msra.mxu0 %v5903_v49 }
 0xb42   :  { %5550 = vmatprep.subr.bf16.mxu1 %v8091_v36  ;;  %5570 = vmatprep.subr.bf16.mxu0 %v8091_v36 }
 0xb45   :  { %5551 = vmatpush3.bf16.msra.mxu1 %v5896_v15  ;;  %5571 = vmatpush3.bf16.msra.mxu0 %v5904_v39 }
 0xb46   :  { %5552 = vmatprep.subr.bf16.mxu1 %v8091_v36  ;;  %5572 = vmatprep.subr.bf16.mxu0 %v8091_v36 }
 0xb49   :  { %5553 = vmatpush3.bf16.msra.mxu1 %v5897_v21  ;;  %5573 = vmatpush3.bf16.msra.mxu0 %v5905_v29 }
 0xb4a   :  { %5554 = vmatprep.subr.bf16.mxu1 %v8091_v36  ;;  %5574 = vmatprep.subr.bf16.mxu0 %v8091_v36 }
 0xb4d   :  { %5555 = vmatpush3.bf16.msra.mxu1 %v5898_v56  ;;  %5575 = vmatpush3.bf16.msra.mxu0 %v5906_v24 }
 0xb4e   :  { %5556 = vmatprep.subr.bf16.mxu1 %v8091_v36  ;;  %5576 = vmatprep.subr.bf16.mxu0 %v8091_v36 }
 0xb51   :  { %5557 = vmatpush3.bf16.msra.mxu1 %v5899_v43  ;;  %5577 = vmatpush3.bf16.msra.mxu0 %v5907_v37 }
 0xb52   :  { %5558 = vmatprep.subr.bf16.mxu1 %v8091_v36  ;;  %5578 = vmatprep.subr.bf16.mxu0 %v8091_v36 }
 0xb55   :  { %5559 = vmatpush3.bf16.msra.mxu1 %v5900_v7  ;;  %5579 = vmatpush3.bf16.msra.mxu0 %v5908_v54 }
 0xb56   :  { %5560 = vmatprep.subr.bf16.mxu1 %v8091_v36  ;;  %5580 = vmatprep.subr.bf16.mxu0 %v8091_v36 }
 0xb59   :  { %5561 = vmatpush3.bf16.msra.mxu1 %v5901_v34  ;;  %5581 = vmatpush3.bf16.msra.mxu0 %v5909_v0 }
 0xb5a   :  { %5593 = vmatprep.subr.bf16.mxu0 %v8091_v36 }
 0xbdb   :  { %v3784_v18 = vpop.f32.mrf.mxu1  ;;  %v3825_v45 = vpop.f32.mrf.mxu0 }
 0xbdc   :  { %v3785_v5 = vadd.f32 %v3784_v18, %v6914_v1  ;;  %v3826_v46 = vadd.f32 %v3825_v45, %v8257_v32  ;;  %v4428_v32 = vpop.xlane.xlu1 %4427  ;;  %v8261_v18 = vld [vmem:[#allocation26_spill] sm:$0xff] }
 0xbdd   :  { %v3786_v22 = vpop.f32.mrf.mxu1  ;;  %v5524_v40 = vpop.f32.mrf.mxu0  ;;  %v4439_v7 = vmax.f32 %v4428_v32, 1e-24 }
 0xbde   :  { %v3787_v47 = vadd.f32 %v3786_v22, %v6935_v17 }
 0xbdf   :  { %v3788_v52 = vpop.f32.mrf.mxu1  ;;  %v3828_v59 = vpop.f32.mrf.mxu0 }
 0xbe0   :  { %v4430_v56 = vpop.xlane.xlu1 %4429  ;;  %v8262_v59 = vld [vmem:[#allocation22_spill] sm:$0xff] }
 0xbe1   :  { %v3789_v63 = vpop.f32.mrf.mxu1  ;;  %v5525_v14 = vpop.f32.mrf.mxu0  ;;  %v4440_v43 = vmax.f32 %v4430_v56, 1e-24 }
 0xbe4   :  { %v4426_v34 = vpop.xlane.xlu1 %4425 }
 0xbe5   :  { %v4438_v57 = vmax.f32 %v4426_v34, 1e-24 }
 0xbe8   :  { %v4422_v22 = vpop.xlane.xlu1 %4421 }
 0xbfb   :  { %v4025_v13 = vpop.f32.mrf.mxu1  ;;  %v4066_v33 = vpop.f32.mrf.mxu0 }
 0xbfc   :  { %v4026_v35 = vadd.f32 %v4025_v13, %v6918_v12 }
 0xbfd   :  { %v4027_v48 = vpop.f32.mrf.mxu1  ;;  %v5544_v26 = vpop.f32.mrf.mxu0 }
 0xbfe   :  { %v4072_v9 = vadd.f32 %v4026_v35, %v3785_v5  ;;  %v4028_v25 = vadd.f32 %v4027_v48, %v6928_v6  ;;  %v4067_v6 = vadd.f32 %v4066_v33, %v8256_v3  ;;  %v4432_v3 = vpop.xlane.xlu0 %4431  ;;  %v4436_v33 = vmax.f32 %v4422_v22, 1e-24 }
 0xbff   :  { %v4029_v28 = vpop.f32.mrf.mxu1  ;;  %v4069_v30 = vpop.f32.mrf.mxu0  ;;  %v4441_v21 = vmax.f32 %v4432_v3, 1e-24 }
 0xc00   :  { %v4073_v19 = vsub.f32 0.0, %v4072_v9  ;;  %v4079_v10 = vadd.f32 %v4028_v25, %v3787_v47  ;;  %v8263_v9 = vld [vmem:[#allocation27_spill] sm:$0xff]  ;;  %v8264_v28 = vld [vmem:[#allocation24_spill] sm:$0xff] }
 0xc01   :  { %v4030_v11 = vpop.f32.mrf.mxu1  ;;  %v5545_v27 = vpop.f32.mrf.mxu0 }
 0xc02   :  { %v4074_v50 = vmul.f32 1.442695, %v4073_v19  ;;  %v4080_v53 = vsub.f32 0.0, %v4079_v10  ;;  %v4434_v42 = vpop.xlane.xlu0 %4433  ;;  %v8265_v27 = vld [vmem:[#allocation23_spill] sm:$0xff]  ;;  %v8266_v10 = vld [vmem:[#allocation25_spill] sm:$0xff] }
 0xc03   :  { %v4442_v15 = vmax.f32 %v4434_v42, 1e-24 }
 0xc04   :  { %6040 = vpow2.f32 %v4074_v50  ;;  %v4081_v41 = vmul.f32 1.442695, %v4080_v53 }
 0xc06   :  { %6042 = vpow2.f32 %v4081_v41 }
 0xc11   :  { %v6041_v1 = vpop.eup %6040 }
 0xc12   :  { %v4076_v12 = vadd.f32 1.0, %v6041_v1 }
 0xc13   :  { %v6043_v31 = vpop.eup %6042 }
 0xc14   :  { %6044 = vrcp.f32 %v4076_v12  ;;  %v4083_v62 = vadd.f32 1.0, %v6043_v31  ;;  %v8267_v31 = vld [vmem:[#allocation21_spill] sm:$0xff] }
 0xc16   :  { %6046 = vrcp.f32 %v4083_v62 }
 0xc21   :  { %v6045_v38 = vpop.eup %6044 }
 0xc22   :  { %v4086_v17 = vmul.f32 %v6045_v38, %v4067_v6  ;;  %v8268_v6 = vld [vmem:[#allocation20_spill] sm:$0xff] }
 0xc23   :  { %v6047_v51 = vpop.eup %6046 }
 0xc24   :  { %v4087_v55 = vadd.f32 %v4086_v17, %v3826_v46  ;;  %v4089_v4 = vsub.f32 1.0, %v6047_v51  ;;  %v4091_v58 = vmul.f32 %v6047_v51, %v7721_v20  ;;  %v4424_v20 = vpop.xlane.xlu0 %4423  ;;  %v4305_v17 = vld [vmem:[%s7900_s16] sm:$0xff] }
 0xc25   :  { %v4437_v39 = vmax.f32 %v4424_v20, 1e-24 }
 0xc26   :  { %6048 = vtanh.f32 %v4087_v55 }
 0xc27   :  { %6050 = vrsqrt.f32 %v4442_v15 }
 0xc28   :  { %6052 = vrsqrt.f32 %v4441_v21  ;;  %v4420_v14 = vpop.xlane.xlu0 %4419 }
 0xc29   :  { %6054 = vrsqrt.f32 %v4440_v43  ;;  %v4435_v26 = vmax.f32 %v4420_v14, 1e-24 }
 0xc2a   :  { %6056 = vrsqrt.f32 %v4439_v7 }
 0xc2b   :  { %6058 = vrsqrt.f32 %v4438_v57 }
 0xc2c   :  { %6060 = vrsqrt.f32 %v4437_v39 }
 0xc2d   :  { %6062 = vrsqrt.f32 %v4436_v33 }
 0xc2e   :  { %6064 = vrsqrt.f32 %v4435_v26 }
 0xc33   :  { %v6049_v8 = vpop.eup %6048 }
 0xc34   :  { %v4090_v61 = vmul.f32 %v6049_v8, %v4089_v4  ;;  %v6051_v49 = vpop.eup %6050 }
 0xc35   :  { %v6053_v24 = vpop.eup %6052  ;;  %v4458_v45 = vmul.f32 %v6051_v49, %v8261_v18 }
 0xc36   :  { %v4092_v2 = vadd.f32 %v4091_v58, %v4090_v61  ;;  %v4457_v63 = vmul.f32 %v6053_v24, %v8262_v59  ;;  %v6055_v48 = vpop.eup %6054 }
 0xc37   :  { %v4456_v25 = vmul.f32 %v6055_v48, %v8263_v9 }
 0xc38   :  { %v4093_v16 = vpack.c.bf16 %v4092_v2, %v4092_v2  ;;  %v4463_v35 = vpack.c.bf16 %v4458_v45, %v4457_v63 }
 0xc3a   :  { %5563 = vmatmul.mubr.bf16.vlgmr.msra.gmra.mxu1 %v4093_v16 }
 0xc3b   :  { %5590 = vmatprep.mubr.msk.f32.mxu1 %vm4309_vm2, %v4305_v17 }
 0xcfa   :  { %v4192_v29 = vpop.f32.mrf.mxu1 }
 0xcfb   :  { %v4193_v37 = vadd.f32 %v7734_v60, %v4192_v29  ;;  %v6057_v60 = vpop.eup %6056 }
 0xcfc   :  { %v5564_v54 = vpop.f32.mrf.mxu1  ;;  %v4455_v30 = vmul.f32 %v6057_v60, %v8264_v28  ;;  %v6059_v19 = vpop.eup %6058 }
 0xcfd   :  { %v4198_v40 = vmax.f32 %v4193_v37, 0.0  ;;  %v6061_v11 = vpop.eup %6060  ;;  %v4454_v50 = vmul.f32 %v6059_v19, %v8265_v27 }
 0xcfe   :  { %v4195_v52 = vpop.f32.mrf.mxu1  ;;  %v4462_v47 = vpack.c.bf16 %v4456_v25, %v4455_v30  ;;  %v4453_v53 = vmul.f32 %v6061_v11, %v8266_v10  ;;  %v6063_v1 = vpop.eup %6062 }
 0xcff   :  { %v4199_v13 = vpack.c.bf16 %v4198_v40, %v4198_v40  ;;  %v6065_v12 = vpop.eup %6064  ;;  %v4452_v62 = vmul.f32 %v6063_v1, %v8267_v31 }
 0xd00   :  { %v5565_v5 = vpop.f32.mrf.mxu1  ;;  %v4461_v41 = vpack.c.bf16 %v4454_v50, %v4453_v53  ;;  %v4451_v38 = vmul.f32 %v6065_v12, %v8268_v6 }
 0xd01   :  { %5583 = vmatmul.mubr.bf16.vlgmr.msra.gmra.mxu0 %v4199_v13 }
 0xd02   :  { %5594 = vmatpush3.bf16.xpose.msra.mxu0 %v4463_v35  ;;  %5601 = vmatprep.mubr.msk.bf16.mxu0 %vm6281_vm1, %v8091_v36  ;;  %v4460_v46 = vpack.c.bf16 %v4452_v62, %v4451_v38 }
 0xd03   :  { %5595 = vmatprep.subr.bf16.mxu0 %v8091_v36 }
 0xd0a   :  { %5596 = vmatpush3.bf16.xpose.msra.mxu0 %v4462_v47 }
 0xd0b   :  { %5597 = vmatprep.subr.bf16.mxu0 %v8091_v36 }
 0xd12   :  { %5598 = vmatpush3.bf16.xpose.msra.mxu0 %v4461_v41 }
 0xd13   :  { %5599 = vmatprep.subr.bf16.mxu0 %v8091_v36  ;;  %v4306_v36 = vld [vmem:[%s7900_s16 + $0x8] sm:$0xff] }
 0xd1a   :  { %5600 = vmatpush3.bf16.xpose.msra.mxu0 %v4460_v46 }
 0xdc1   :  { %v4298_v55 = vpop.f32.mrf.mxu0 }
 0xdc2   :  { %v4299_v51 = vadd.f32 %v7750_v44, %v4298_v55 }
 0xdc3   :  { %v5584_v4 = vpop.f32.mrf.mxu0 }
 0xdc4   :  { %5586 = vmatprep.subr.mxu1 %v4299_v51 }
 0xdc5   :  { %v4301_v8 = vpop.f32.mrf.mxu0  ;;  %5587 = vmatpush3.msra.mxu1 %v4299_v51 }
 0xdc6   :  { %5588 = vmatprep.subr.mxu1 %v7753_v23 }
 0xdc7   :  { %v5585_v61 = vpop.f32.mrf.mxu0  ;;  %5589 = vmatpush3.msra.mxu1 %v7753_v23  ;;  %v4506_v23 = vstv %s8269_s21 }
 0xdc8   :  { %5591 = vmatmul.mubr.msk.f32.vlgmr.msra.gmra.mxu1 %vm4309_vm2, %v4306_v36 }
 0xe88   :  { %v5592_v58 = vpop.f32.mrf.mxu1 }
 0xe89   :  { %v4392_v2 = vmul.f32 %v5592_v58, %v5592_v58 }
 0xe8a   :  { %v4382_v16 = vpop.f32.mrf.mxu1 }
 0xe8b   :  { %v4391_v0 = vmul.f32 %v4382_v16, %v4382_v16  ;;  %4395 = vadd.xlane.f32.xlu1 %v4392_v2 }
 0xe8d   :  { %4393 = vadd.xlane.f32.xlu0 %v4391_v0 }
 0xf14   :  { %v4396_v44 = vpop.xlane.xlu1 %4395 }
 0xf15   :  { %v4398_v3 = vmax.f32 %v4396_v44, 1e-24 }
 0xf16   :  { %v4394_v42 = vpop.xlane.xlu0 %4393 }
 0xf17   :  { %6066 = vrsqrt.f32 %v4398_v3  ;;  %v4397_v32 = vmax.f32 %v4394_v42, 1e-24 }
 0xf19   :  { %6068 = vrsqrt.f32 %v4397_v32 }
 0xf24   :  { %v6067_v15 = vpop.eup %6066 }
 0xf25   :  { %v4402_v43 = vmul.f32 %v6067_v15, %v5592_v58 }
 0xf26   :  { %v6069_v21 = vpop.eup %6068 }
 0xf27   :  { %v4401_v56 = vmul.f32 %v6069_v21, %v4382_v16 }
 0xf29   :  { %v4459_v7 = vpack.c.bf16 %v4402_v43, %v4401_v56 }
 0xf2b   :  { %5602 = vmatmul.mubr.bf16.vlgmr.msra.gmra.mxu0 %v4459_v7 }
 0xfeb   :  { %v4498_v34 = vpop.f32.mrf.mxu0 }
 0xfec   :  { %v4507_v20 = vmul.f32 %v4506_v23, %v4498_v34 }
 0xfed   :  { %v5603_v57 = vpop.f32.mrf.mxu0 }
 0xfee   :  { %4510 = vst.msk [vmem:[#allocation15] sm:$0xff] %vm4509_vm3, %v4507_v20 }
 0xfef   :  { %v4501_v49 = vpop.f32.mrf.mxu0 }
 0xff0   :  { %v4508_v39 = vmul.f32 %v4506_v23, %v4501_v49 }
 0xff1   :  { %v5604_v29 = vpop.f32.mrf.mxu0 }
 0xff2   :  { %4511 = vst.msk [vmem:[#allocation15 + $0x8] sm:$0xff] %vm4509_vm3, %v4508_v39 }
 0xff3   :  { %6253 = shalt.err (!%p6250_p1)
}
 0xff4   :  { %s6283_s13 = smov 128   ;;  %s6284_s0 = smov 8  }
 0xff5   :  { %4523 = dma.vmem_to_hbm [thread:$0]  %s4518_s29, 256, %s7901_s17, [#allocation8], %s6283_s13, %s6283_s13, %s6284_s0  }
 0xff6   :  { %6268 = dma.done.wait [#allocation8], 256  }
 0xff7   :  { %6269 = vsyncadd [#allocation8], 4294967040 }
 0xff8   :  { %4527 = vsyncpa [#allocation7], 1 }
 0xff9   :  { %4528 = vsyncpa [#allocation10], 1 }
 0xffa   :  { %4529 = vsyncpa [#allocation13], 1 }
 0xffb   :  { %4530 = vsyncpa [#allocation8], 1 }

</bundles_post_ra>
